<compile_context>
chip_gen: v5e
topology: v5e:2x2
jax: 0.10.0
libtpu: 0.0.40
codegen_flags: <defaults>
</compile_context>

<pallas_src>
import functools

import jax
import jax.numpy as jnp
from jax import lax
from jax.experimental import pallas as pl
from jax.experimental.pallas import tpu as pltpu

COMPUTE_DTYPE = jnp.bfloat16
VMEM_LIMIT = 64 * 1024 * 1024          # v5e/v6e have 128 MiB physical, v7x 64 MiB
SINGLE_KV_MAX_ELEMS = 1 << 20          # Tk*D threshold for whole-KV-in-VMEM attention
CONV_ROW_TILE = 64                     # output rows per conv-stem grid step


# ----------------------------------------------------------------------------
# small helpers
# ----------------------------------------------------------------------------
def _round_up(x, m):
    return ((x + m - 1) // m) * m


def _cparams(*sems):
    return pltpu.CompilerParams(
        dimension_semantics=tuple(sems), vmem_limit_bytes=VMEM_LIMIT
    )


def _row_tiling(m, tm_target=512):
    """Row tile, always a multiple of 16 (bf16 sublane packing)."""
    m16 = _round_up(m, 16)
    if m16 >= 2 * tm_target:
        tm = tm_target
    elif m16 >= 64:
        tm = _round_up(m16 // 2, 16)   # two tiles -> both TensorCores busy
    else:
        tm = m16
    m_pad = _round_up(m, tm)
    return m_pad, tm


def _q_tiling(t, cap=256):
    if t <= cap:
        tq = _round_up(t, 16)
        return tq, tq
    return _round_up(t, cap), cap


def _pad_rows(x, m_pad):
    m = x.shape[0]
    return x if m_pad == m else jnp.pad(x, ((0, m_pad - m), (0, 0)))


# ----------------------------------------------------------------------------
# fused multi-output projection (QKV / KV / plain linear)
# ----------------------------------------------------------------------------
def _multi_linear_kernel(*refs, n_out):
    x_ref = refs[0]
    w_refs = refs[1:1 + n_out]
    b_refs = refs[1 + n_out:1 + 2 * n_out]
    o_refs = refs[1 + 2 * n_out:]
    x = x_ref[...]
    for w_ref, b_ref, o_ref in zip(w_refs, b_refs, o_refs):
        acc = jnp.dot(x, w_ref[...], preferred_element_type=jnp.float32) + b_ref[...]
        o_ref[...] = acc.astype(o_ref.dtype)


def pallas_multi_linear(x, ws, bs, out_dtype=None):
    """x: (M, K); ws[i]: (K, Ni) -> list of (M, Ni). One pass over x, N outputs."""
    M, K = x.shape
    n = len(ws)
    n_cols = [int(w.shape[1]) for w in ws]
    out_dtype = out_dtype or x.dtype
    m_pad, tm = _row_tiling(M)
    xp = _pad_rows(x, m_pad)

    in_specs = [pl.BlockSpec((tm, K), lambda i: (i, 0))]
    in_specs += [pl.BlockSpec((K, nc), lambda i: (0, 0)) for nc in n_cols]
    in_specs += [pl.BlockSpec((1, nc), lambda i: (0, 0)) for nc in n_cols]
    out_specs = tuple(pl.BlockSpec((tm, nc), lambda i: (i, 0)) for nc in n_cols)
    out_shape = tuple(jax.ShapeDtypeStruct((m_pad, nc), out_dtype) for nc in n_cols)

    w_bytes = sum(K * nc for nc in n_cols) * 2
    o_bytes = sum(m_pad * nc for nc in n_cols) * jnp.dtype(out_dtype).itemsize
    cost = pl.CostEstimate(
        flops=int(2 * m_pad * K * sum(n_cols)),
        transcendentals=0,
        bytes_accessed=int(xp.size * xp.dtype.itemsize + w_bytes + o_bytes),
    )
    outs = pl.pallas_call(
        functools.partial(_multi_linear_kernel, n_out=n),
        out_shape=out_shape,
        grid=(m_pad // tm,),
        in_specs=in_specs,
        out_specs=out_specs,
        compiler_params=_cparams("parallel"),
        cost_estimate=cost,
    )(xp, *[w.astype(x.dtype) for w in ws],
      *[b.reshape(1, -1).astype(jnp.float32) for b in bs])
    return [o[:M] if m_pad != M else o for o in outs]


def batched_multi_linear(x_btd, ws, bs, out_dtype=None):
    B, T, D = x_btd.shape
    outs = pallas_multi_linear(x_btd.reshape(B * T, D), ws, bs, out_dtype)
    return [o.reshape(B, T, o.shape[-1]) for o in outs]


# ----------------------------------------------------------------------------
# fused out-proj + residual + LayerNorm
# ----------------------------------------------------------------------------
def _proj_residual_ln_kernel(x_ref, w_ref, b_ref, res_ref, g_ref, bt_ref, o_ref):
    acc = jnp.dot(x_ref[...], w_ref[...], preferred_element_type=jnp.float32)
    acc = acc + b_ref[...] + res_ref[...].astype(jnp.float32)
    mu = jnp.mean(acc, axis=-1, keepdims=True)
    var = jnp.mean((acc - mu) ** 2, axis=-1, keepdims=True)
    y = (acc - mu) * lax.rsqrt(var + 1e-5)
    o_ref[...] = (y * g_ref[...] + bt_ref[...]).astype(o_ref.dtype)


def pallas_proj_residual_ln(x_btd, w, b, res_btd, gamma, beta):
    B, T, D = x_btd.shape
    M = B * T
    x = x_btd.reshape(M, D)
    res = res_btd.reshape(M, D)
    m_pad, tm = _row_tiling(M)
    x = _pad_rows(x, m_pad)
    res = _pad_rows(res, m_pad)
    cost = pl.CostEstimate(
        flops=int(2 * m_pad * D * D + 10 * m_pad * D),
        transcendentals=int(m_pad),
        bytes_accessed=int(3 * m_pad * D * 2 + D * D * 2),
    )
    out = pl.pallas_call(
        _proj_residual_ln_kernel,
        out_shape=jax.ShapeDtypeStruct((m_pad, D), x.dtype),
        grid=(m_pad // tm,),
        in_specs=[
            pl.BlockSpec((tm, D), lambda i: (i, 0)),
            pl.BlockSpec((D, D), lambda i: (0, 0)),
            pl.BlockSpec((1, D), lambda i: (0, 0)),
            pl.BlockSpec((tm, D), lambda i: (i, 0)),
            pl.BlockSpec((1, D), lambda i: (0, 0)),
            pl.BlockSpec((1, D), lambda i: (0, 0)),
        ],
        out_specs=pl.BlockSpec((tm, D), lambda i: (i, 0)),
        compiler_params=_cparams("parallel"),
        cost_estimate=cost,
    )(x, w.astype(x.dtype), b.reshape(1, D), res, gamma.reshape(1, D), beta.reshape(1, D))
    out = out[:M] if m_pad != M else out
    return out.reshape(B, T, D)


# ----------------------------------------------------------------------------
# fused FFN (relu) + residual + LayerNorm
# ----------------------------------------------------------------------------
def _ffn_ln_kernel(x_ref, w1_ref, b1_ref, w2_ref, b2_ref, g_ref, bt_ref, o_ref):
    x = x_ref[...]
    h = jnp.dot(x, w1_ref[...], preferred_element_type=jnp.float32) + b1_ref[...]
    h = jnp.maximum(h, 0.0).astype(x.dtype)
    acc = jnp.dot(h, w2_ref[...], preferred_element_type=jnp.float32) + b2_ref[...]
    acc = acc + x.astype(jnp.float32)
    mu = jnp.mean(acc, axis=-1, keepdims=True)
    var = jnp.mean((acc - mu) ** 2, axis=-1, keepdims=True)
    y = (acc - mu) * lax.rsqrt(var + 1e-5)
    o_ref[...] = (y * g_ref[...] + bt_ref[...]).astype(o_ref.dtype)


def pallas_ffn_ln(x_btd, w1, b1, w2, b2, gamma, beta):
    B, T, D = x_btd.shape
    F = w1.shape[1]
    M = B * T
    x = x_btd.reshape(M, D)
    m_pad, tm = _row_tiling(M)
    x = _pad_rows(x, m_pad)
    cost = pl.CostEstimate(
        flops=int(4 * m_pad * D * F),
        transcendentals=int(m_pad),
        bytes_accessed=int(2 * m_pad * D * 2 + (w1.size + w2.size) * 2),
    )
    out = pl.pallas_call(
        _ffn_ln_kernel,
        out_shape=jax.ShapeDtypeStruct((m_pad, D), x.dtype),
        grid=(m_pad // tm,),
        in_specs=[
            pl.BlockSpec((tm, D), lambda i: (i, 0)),
            pl.BlockSpec((D, F), lambda i: (0, 0)),
            pl.BlockSpec((1, F), lambda i: (0, 0)),
            pl.BlockSpec((F, D), lambda i: (0, 0)),
            pl.BlockSpec((1, D), lambda i: (0, 0)),
            pl.BlockSpec((1, D), lambda i: (0, 0)),
            pl.BlockSpec((1, D), lambda i: (0, 0)),
        ],
        out_specs=pl.BlockSpec((tm, D), lambda i: (i, 0)),
        compiler_params=_cparams("parallel"),
        cost_estimate=cost,
    )(x, w1.astype(x.dtype), b1.reshape(1, F), w2.astype(x.dtype), b2.reshape(1, D),
      gamma.reshape(1, D), beta.reshape(1, D))
    out = out[:M] if m_pad != M else out
    return out.reshape(B, T, D)


# ----------------------------------------------------------------------------
# attention (scale pre-folded into the Q projection)
# ----------------------------------------------------------------------------
def _attn_single_kv_kernel(q_ref, k_ref, v_ref, o_ref):
    q = q_ref[0]                                         # (tq, D), already scaled
    k = k_ref[0]                                         # (Tk, D)
    v = v_ref[0]
    s = lax.dot_general(q, k, (((1,), (1,)), ((), ())),
                        preferred_element_type=jnp.float32)
    m = jnp.max(s, axis=-1, keepdims=True)
    p = jnp.exp(s - m)
    l = jnp.sum(p, axis=-1, keepdims=True)
    acc = jnp.dot(p.astype(v.dtype), v, preferred_element_type=jnp.float32)
    o_ref[0] = (acc * pl.reciprocal(l, approx=True)).astype(o_ref.dtype)


def _flash_attn_kernel(q_ref, k_ref, v_ref, o_ref, m_sc, l_sc, acc_sc,
                       *, tk, tk_total, mask_kv):
    kv = pl.program_id(2)

    @pl.when(kv == 0)
    def _():
        m_sc[...] = jnp.full(m_sc.shape, -jnp.inf, m_sc.dtype)
        l_sc[...] = jnp.zeros(l_sc.shape, l_sc.dtype)
        acc_sc[...] = jnp.zeros(acc_sc.shape, acc_sc.dtype)

    q = q_ref[0]
    k = k_ref[0]
    v = v_ref[0]
    s = lax.dot_general(q, k, (((1,), (1,)), ((), ())),
                        preferred_element_type=jnp.float32)
    if mask_kv:
        col = lax.broadcasted_iota(jnp.int32, s.shape, 1)
        s = jnp.where(kv * tk + col < tk_total, s, -jnp.inf)
    m_prev = m_sc[...]
    m_new = jnp.maximum(m_prev, jnp.max(s, axis=-1, keepdims=True))
    alpha = jnp.exp(m_prev - m_new)
    p = jnp.exp(s - m_new)
    l_sc[...] = alpha * l_sc[...] + jnp.sum(p, axis=-1, keepdims=True)
    acc_sc[...] = alpha * acc_sc[...] + jnp.dot(
        p.astype(v.dtype), v, preferred_element_type=jnp.float32)
    m_sc[...] = m_new

    @pl.when(kv == pl.num_programs(2) - 1)
    def _():
        o_ref[0] = (acc_sc[...] * pl.reciprocal(l_sc[...], approx=True)).astype(o_ref.dtype)


def pallas_attention(q, k, v):
    """q: (B,Tq,D), k/v: (B,Tk,D). 1/sqrt(D) is already folded into q."""
    # TODO(synk): single-head attention; RT-DETR's nn.MultiheadAttention uses
    #             multiple heads with per-head softmax.
    B, Tq, D = q.shape
    Tk = k.shape[1]
    tq_pad, tq = _q_tiling(Tq)
    if tq_pad != Tq:
        q = jnp.pad(q, ((0, 0), (0, tq_pad - Tq), (0, 0)))
    cost = pl.CostEstimate(
        flops=int(4 * B * tq_pad * Tk * D),
        transcendentals=int(B * tq_pad * Tk),
        bytes_accessed=int((q.size + k.size + v.size + B * tq_pad * D) * 2),
    )
    if Tk * D <= SINGLE_KV_MAX_ELEMS:
        # whole K/V resident in VMEM; no online-softmax bookkeeping needed
        out = pl.pallas_call(
            _attn_single_kv_kernel,
            out_shape=jax.ShapeDtypeStruct((B, tq_pad, D), q.dtype),
            grid=(B, tq_pad // tq),
            in_specs=[
                pl.BlockSpec((1, tq, D), lambda b, qi: (b, qi, 0)),
                pl.BlockSpec((1, Tk, D), lambda b, qi: (b, 0, 0)),
                pl.BlockSpec((1, Tk, D), lambda b, qi: (b, 0, 0)),
            ],
            out_specs=pl.BlockSpec((1, tq, D), lambda b, qi: (b, qi, 0)),
            compiler_params=_cparams("parallel", "parallel"),
            cost_estimate=cost,
        )(q, k, v)
    else:
        tk = 512
        tk_pad = _round_up(Tk, tk)
        mask_kv = tk_pad != Tk
        if mask_kv:
            k = jnp.pad(k, ((0, 0), (0, tk_pad - Tk), (0, 0)))
            v = jnp.pad(v, ((0, 0), (0, tk_pad - Tk), (0, 0)))
        out = pl.pallas_call(
            functools.partial(_flash_attn_kernel, tk=tk, tk_total=Tk, mask_kv=mask_kv),
            out_shape=jax.ShapeDtypeStruct((B, tq_pad, D), q.dtype),
            grid=(B, tq_pad // tq, tk_pad // tk),
            in_specs=[
                pl.BlockSpec((1, tq, D), lambda b, qi, ki: (b, qi, 0)),
                pl.BlockSpec((1, tk, D), lambda b, qi, ki: (b, ki, 0)),
                pl.BlockSpec((1, tk, D), lambda b, qi, ki: (b, ki, 0)),
            ],
            out_specs=pl.BlockSpec((1, tq, D), lambda b, qi, ki: (b, qi, 0)),
            scratch_shapes=[
                pltpu.VMEM((tq, 1), jnp.float32),
                pltpu.VMEM((tq, 1), jnp.float32),
                pltpu.VMEM((tq, D), jnp.float32),
            ],
            compiler_params=_cparams("parallel", "parallel", "arbitrary"),
            cost_estimate=cost,
        )(q, k, v)
    return out[:, :Tq] if tq_pad != Tq else out


# ----------------------------------------------------------------------------
# conv stem: 3x3 stride-2 conv + ReLU, row-tiled, 3 row-tap matmuls per tile
# ----------------------------------------------------------------------------
def _conv_stem_kernel(t0_ref, t1_ref, t2_ref, w_ref, b_ref, o_ref):
    _, rt, wo, c3 = t0_ref.shape
    hidden = o_ref.shape[-1]
    t0 = t0_ref[0].reshape(rt * wo, c3)
    t1 = t1_ref[0].reshape(rt * wo, c3)
    t2 = t2_ref[0].reshape(rt * wo, c3)
    acc = jnp.dot(t0, w_ref[0], preferred_element_type=jnp.float32)
    acc = acc + jnp.dot(t1, w_ref[1], preferred_element_type=jnp.float32)
    acc = acc + jnp.dot(t2, w_ref[2], preferred_element_type=jnp.float32)
    acc = jnp.maximum(acc + b_ref[...], 0.0)
    o_ref[0] = acc.reshape(rt, wo, hidden).astype(o_ref.dtype)


def pallas_conv_stem(x_nhwc, w, b):
    """x: (B, H, W, C) -> tokens (B, (H//2)*(W//2), hidden); w: (3, 3*C, hidden)."""
    B, H, W, C = x_nhwc.shape
    ho, wo = H // 2, W // 2
    hidden = w.shape[-1]
    c3 = 3 * C
    xp = jnp.pad(x_nhwc, ((0, 0), (1, 1), (1, 1), (0, 0)))
    # width-only im2col (stride 2), then one tensor per kernel row tap
    cols = [xp[:, :, kw:kw + 2 * wo:2, :] for kw in range(3)]
    rowp = jnp.concatenate(cols, axis=-1).astype(COMPUTE_DTYPE)      # (B, H+2, wo, 3C)
    taps = [rowp[:, kh:kh + 2 * ho:2] for kh in range(3)]            # (B, ho, wo, 3C)
    rt = ho if ho <= CONV_ROW_TILE else CONV_ROW_TILE
    ho_pad = _round_up(ho, rt)
    if ho_pad != ho:
        taps = [jnp.pad(t, ((0, 0), (0, ho_pad - ho), (0, 0), (0, 0))) for t in taps]
    cost = pl.CostEstimate(
        flops=int(2 * 3 * B * ho_pad * wo * c3 * hidden),
        transcendentals=0,
        bytes_accessed=int(3 * B * ho_pad * wo * c3 * 2 + 3 * c3 * hidden * 2
                           + B * ho_pad * wo * hidden * 2),
    )
    out = pl.pallas_call(
        _conv_stem_kernel,
        out_shape=jax.ShapeDtypeStruct((B, ho_pad, wo, hidden), COMPUTE_DTYPE),
        grid=(B, ho_pad // rt),
        in_specs=[
            pl.BlockSpec((1, rt, wo, c3), lambda bi, ri: (bi, ri, 0, 0)),
            pl.BlockSpec((1, rt, wo, c3), lambda bi, ri: (bi, ri, 0, 0)),
            pl.BlockSpec((1, rt, wo, c3), lambda bi, ri: (bi, ri, 0, 0)),
            pl.BlockSpec((3, c3, hidden), lambda bi, ri: (0, 0, 0)),
            pl.BlockSpec((1, hidden), lambda bi, ri: (0, 0)),
        ],
        out_specs=pl.BlockSpec((1, rt, wo, hidden), lambda bi, ri: (bi, ri, 0, 0)),
        compiler_params=_cparams("parallel", "parallel"),
        cost_estimate=cost,
    )(taps[0], taps[1], taps[2], w.astype(COMPUTE_DTYPE),
      b.reshape(1, hidden).astype(jnp.float32))
    out = out[:, :ho] if ho_pad != ho else out
    return out.reshape(B, ho * wo, hidden)


# ----------------------------------------------------------------------------
# fused class head + box MLP (single x-matmul, lane-dense f32 outputs)
# ----------------------------------------------------------------------------
def _heads_kernel(x_ref, wa_ref, ba_ref, w2_ref, b2_ref, cls_ref, box_ref, *, cls_pad):
    x = x_ref[...].astype(jnp.float32)
    a = jnp.dot(x, wa_ref[...], preferred_element_type=jnp.float32) + ba_ref[...]
    cls = a[:, :cls_pad]
    h = jnp.maximum(a[:, cls_pad:], 0.0)
    box = jax.nn.sigmoid(
        jnp.dot(h, w2_ref[...], preferred_element_type=jnp.float32) + b2_ref[...])
    cls_ref[...] = cls
    box_ref[...] = box


def pallas_heads(x_btd, cls_w, cls_b, box1_w, box1_b, box2_w, box2_b):
    B, T, D = x_btd.shape
    num_classes = cls_w.shape[1]
    CLS_PAD, BOX_PAD = 128, 128
    M = B * T
    x = x_btd.reshape(M, D)
    m_pad, tm = _row_tiling(M)
    x = _pad_rows(x, m_pad)
    # class head and box-MLP layer-1 share one x-matmul (width 128+D)
    wa = jnp.zeros((D, CLS_PAD + D), jnp.float32)
    wa = wa.at[:, :num_classes].set(cls_w).at[:, CLS_PAD:].set(box1_w)
    ba = jnp.zeros((CLS_PAD + D,), jnp.float32)
    ba = ba.at[:num_classes].set(cls_b).at[CLS_PAD:].set(box1_b)
    w2 = jnp.zeros((D, BOX_PAD), jnp.float32).at[:, :4].set(box2_w)
    b2 = jnp.zeros((BOX_PAD,), jnp.float32).at[:4].set(box2_b)
    cost = pl.CostEstimate(
        flops=int(2 * m_pad * D * (CLS_PAD + D) + 2 * m_pad * D * BOX_PAD),
        transcendentals=int(m_pad * BOX_PAD),
        bytes_accessed=int(m_pad * D * 2 + (wa.size + w2.size) * 4
                           + m_pad * (CLS_PAD + BOX_PAD) * 4),
    )
    cls_out, box_out = pl.pallas_call(
        functools.partial(_heads_kernel, cls_pad=CLS_PAD),
        out_shape=(jax.ShapeDtypeStruct((m_pad, CLS_PAD), jnp.float32),
                   jax.ShapeDtypeStruct((m_pad, BOX_PAD), jnp.float32)),
        grid=(m_pad // tm,),
        in_specs=[
            pl.BlockSpec((tm, D), lambda i: (i, 0)),
            pl.BlockSpec((D, CLS_PAD + D), lambda i: (0, 0)),
            pl.BlockSpec((1, CLS_PAD + D), lambda i: (0, 0)),
            pl.BlockSpec((D, BOX_PAD), lambda i: (0, 0)),
            pl.BlockSpec((1, BOX_PAD), lambda i: (0, 0)),
        ],
        out_specs=(pl.BlockSpec((tm, CLS_PAD), lambda i: (i, 0)),
                   pl.BlockSpec((tm, BOX_PAD), lambda i: (i, 0))),
        compiler_params=_cparams("parallel"),
        cost_estimate=cost,
    )(x, wa, ba.reshape(1, -1), w2, b2.reshape(1, -1))
    logits = cls_out[:M, :num_classes].reshape(B, T, num_classes)
    boxes = box_out[:M, :4].reshape(B, T, 4)
    return logits, boxes


# ----------------------------------------------------------------------------
# params
# ----------------------------------------------------------------------------
def init_params(key, in_ch, hidden, ffn, num_queries, num_classes):
    def dense(k, fan_in, fan_out):
        return jax.random.normal(k, (fan_in, fan_out), jnp.float32) * (fan_in ** -0.5)

    ks = iter(jax.random.split(key, 24))
    p = {}
    p["bb_w"] = jax.random.normal(next(ks), (3, 3 * in_ch, hidden), jnp.float32) \
        * ((9 * in_ch) ** -0.5)
    p["bb_b"] = jnp.zeros((hidden,), jnp.float32)
    # encoder
    p["enc_wq"], p["enc_bq"] = dense(next(ks), hidden, hidden), jnp.zeros((hidden,))
    p["enc_wk"], p["enc_bk"] = dense(next(ks), hidden, hidden), jnp.zeros((hidden,))
    p["enc_wv"], p["enc_bv"] = dense(next(ks), hidden, hidden), jnp.zeros((hidden,))
    p["enc_o_w"], p["enc_o_b"] = dense(next(ks), hidden, hidden), jnp.zeros((hidden,))
    p["enc_ln1_g"], p["enc_ln1_b"] = jnp.ones((hidden,)), jnp.zeros((hidden,))
    p["enc_ffn1_w"], p["enc_ffn1_b"] = dense(next(ks), hidden, ffn), jnp.zeros((ffn,))
    p["enc_ffn2_w"], p["enc_ffn2_b"] = dense(next(ks), ffn, hidden), jnp.zeros((hidden,))
    p["enc_ln2_g"], p["enc_ln2_b"] = jnp.ones((hidden,)), jnp.zeros((hidden,))
    # decoder
    p["query_embed"] = jax.random.normal(next(ks), (num_queries, hidden), jnp.float32)
    p["dec_q_w"], p["dec_q_b"] = dense(next(ks), hidden, hidden), jnp.zeros((hidden,))
    p["dec_wk"], p["dec_bk"] = dense(next(ks), hidden, hidden), jnp.zeros((hidden,))
    p["dec_wv"], p["dec_bv"] = dense(next(ks), hidden, hidden), jnp.zeros((hidden,))
    p["dec_o_w"], p["dec_o_b"] = dense(next(ks), hidden, hidden), jnp.zeros((hidden,))
    p["dec_ln1_g"], p["dec_ln1_b"] = jnp.ones((hidden,)), jnp.zeros((hidden,))
    p["dec_ffn1_w"], p["dec_ffn1_b"] = dense(next(ks), hidden, ffn), jnp.zeros((ffn,))
    p["dec_ffn2_w"], p["dec_ffn2_b"] = dense(next(ks), ffn, hidden), jnp.zeros((hidden,))
    p["dec_ln2_g"], p["dec_ln2_b"] = jnp.ones((hidden,)), jnp.zeros((hidden,))
    p["cls_w"], p["cls_b"] = dense(next(ks), hidden, num_classes), jnp.zeros((num_classes,))
    p["box1_w"], p["box1_b"] = dense(next(ks), hidden, hidden), jnp.zeros((hidden,))
    p["box2_w"], p["box2_b"] = dense(next(ks), hidden, 4), jnp.zeros((4,))
    return p


# ----------------------------------------------------------------------------
# RTDETR forward = backbone(x) -> encoder(x) -> decoder(x, targets)
# ----------------------------------------------------------------------------
def rtdetr_forward(params, x_nchw, targets=None):
    # TODO(synk): the multi_scale F.interpolate branch only runs in training mode;
    #             this eval forward skips it, matching the module's eval semantics.
    p = params

    # ---- backbone: conv 3x3 s2 p1 + ReLU (row-tiled Pallas kernel) -------------
    x = jnp.transpose(x_nchw, (0, 2, 3, 1))                 # NCHW -> NHWC
    feat = pallas_conv_stem(x, p["bb_w"], p["bb_b"])        # (B, T, hidden) bf16
    B, T, D = feat.shape
    scale = float(D) ** -0.5

    # ---- encoder: fused QKV (scale folded into Q), attention, proj+LN, FFN+LN --
    q, k, v = batched_multi_linear(
        feat,
        [p["enc_wq"] * scale, p["enc_wk"], p["enc_wv"]],
        [p["enc_bq"] * scale, p["enc_bk"], p["enc_bv"]],
    )
    attn = pallas_attention(q, k, v)
    feat = pallas_proj_residual_ln(attn, p["enc_o_w"], p["enc_o_b"], feat,
                                   p["enc_ln1_g"], p["enc_ln1_b"])
    memory = pallas_ffn_ln(feat, p["enc_ffn1_w"], p["enc_ffn1_b"],
                           p["enc_ffn2_w"], p["enc_ffn2_b"],
                           p["enc_ln2_g"], p["enc_ln2_b"])

    # ---- decoder: learned queries, cross-attention, proj+LN, FFN+LN, heads -----
    num_queries = p["query_embed"].shape[0]
    qe = p["query_embed"].astype(COMPUTE_DTYPE)
    # Q projection computed once on (num_queries, D), then broadcast over batch
    dq_single = pallas_multi_linear(qe, [p["dec_q_w"] * scale], [p["dec_q_b"] * scale])[0]
    dq = jnp.broadcast_to(dq_single[None], (B, num_queries, D))
    dk, dv = batched_multi_linear(memory, [p["dec_wk"], p["dec_wv"]],
                                  [p["dec_bk"], p["dec_bv"]])
    cross = pallas_attention(dq, dk, dv)
    tgt_res = jnp.broadcast_to(qe[None], (B, num_queries, D))
    tgt = pallas_proj_residual_ln(cross, p["dec_o_w"], p["dec_o_b"], tgt_res,
                                  p["dec_ln1_g"], p["dec_ln1_b"])
    tgt = pallas_ffn_ln(tgt, p["dec_ffn1_w"], p["dec_ffn1_b"],
                        p["dec_ffn2_w"], p["dec_ffn2_b"],
                        p["dec_ln2_g"], p["dec_ln2_b"])

    pred_logits, pred_boxes = pallas_heads(
        tgt, p["cls_w"], p["cls_b"], p["box1_w"], p["box1_b"],
        p["box2_w"], p["box2_b"])
    return {"pred_logits": pred_logits, "pred_boxes": pred_boxes}


if __name__ == "__main__":
    B, C, H, W = 2, 4, 16, 16
    HIDDEN, FFN, NUM_QUERIES, NUM_CLASSES = 32, 64, 8, 5

    key = jax.random.PRNGKey(0)
    k_x, k_p = jax.random.split(key)
    x = jax.random.normal(k_x, (B, C, H, W), jnp.float32)   # NCHW, like PyTorch
    params = init_params(k_p, C, HIDDEN, FFN, NUM_QUERIES, NUM_CLASSES)

    out = jax.jit(rtdetr_forward)(params, x)
    jax.block_until_ready(out)

    assert out["pred_logits"].shape == (B, NUM_QUERIES, NUM_CLASSES)
    assert out["pred_boxes"].shape == (B, NUM_QUERIES, 4)
    assert bool(jnp.all(jnp.isfinite(out["pred_logits"])))
    assert bool(jnp.all((out["pred_boxes"] >= 0.0) & (out["pred_boxes"] <= 1.0)))
    print("KERNEL_OK")
</pallas_src>

<mosaic_0001>
module attributes {stable_mosaic.version = 11 : i64} {
  func.func @_conv_stem_kernel(%arg0: i32, %arg1: i32, %arg2: memref<1x8x8x12xbf16, #tpu.memory_space<vmem>>, %arg3: memref<1x8x8x12xbf16, #tpu.memory_space<vmem>>, %arg4: memref<1x8x8x12xbf16, #tpu.memory_space<vmem>>, %arg5: memref<3x12x32xbf16, #tpu.memory_space<vmem>>, %arg6: memref<1x32xf32, #tpu.memory_space<vmem>>, %arg7: memref<1x8x8x32xbf16, #tpu.memory_space<vmem>>) attributes {dimension_semantics = [#tpu.dimension_semantics<parallel>, #tpu.dimension_semantics<parallel>], iteration_bounds = array<i64: 2, 1>, scalar_prefetch = 0 : i64, scratch_operands = 0 : i64, tpu.core_type = #tpu.core_type<tc>, window_params = [{transform_indices = @transform_0, window_bounds = array<i64: 1, 8, 8, 12>}, {transform_indices = @transform_1, window_bounds = array<i64: 1, 8, 8, 12>}, {transform_indices = @transform_2, window_bounds = array<i64: 1, 8, 8, 12>}, {pipeline_mode = #tpu.pipeline_mode<synchronous>, transform_indices = @transform_3, window_bounds = array<i64: 3, 12, 32>}, {pipeline_mode = #tpu.pipeline_mode<synchronous>, transform_indices = @transform_4, window_bounds = array<i64: 1, 32>}, {transform_indices = @transform_5, window_bounds = array<i64: 1, 8, 8, 32>}]} {
    %c0 = arith.constant 0 : index
    %c0_0 = arith.constant 0 : index
    %c0_1 = arith.constant 0 : index
    %c0_2 = arith.constant 0 : index
    %0 = vector.load %arg2[%c0, %c0_0, %c0_1, %c0_2] : memref<1x8x8x12xbf16, #tpu.memory_space<vmem>>, vector<1x8x8x12xbf16>
    %1 = vector.shape_cast %0 : vector<1x8x8x12xbf16> to vector<8x8x12xbf16>
    %2 = vector.shape_cast %1 : vector<8x8x12xbf16> to vector<64x12xbf16>
    %c0_3 = arith.constant 0 : index
    %c0_4 = arith.constant 0 : index
    %c0_5 = arith.constant 0 : index
    %c0_6 = arith.constant 0 : index
    %3 = vector.load %arg3[%c0_3, %c0_4, %c0_5, %c0_6] : memref<1x8x8x12xbf16, #tpu.memory_space<vmem>>, vector<1x8x8x12xbf16>
    %4 = vector.shape_cast %3 : vector<1x8x8x12xbf16> to vector<8x8x12xbf16>
    %5 = vector.shape_cast %4 : vector<8x8x12xbf16> to vector<64x12xbf16>
    %c0_7 = arith.constant 0 : index
    %c0_8 = arith.constant 0 : index
    %c0_9 = arith.constant 0 : index
    %c0_10 = arith.constant 0 : index
    %6 = vector.load %arg4[%c0_7, %c0_8, %c0_9, %c0_10] : memref<1x8x8x12xbf16, #tpu.memory_space<vmem>>, vector<1x8x8x12xbf16>
    %7 = vector.shape_cast %6 : vector<1x8x8x12xbf16> to vector<8x8x12xbf16>
    %8 = vector.shape_cast %7 : vector<8x8x12xbf16> to vector<64x12xbf16>
    %c0_11 = arith.constant 0 : index
    %c0_12 = arith.constant 0 : index
    %c0_13 = arith.constant 0 : index
    %9 = vector.load %arg5[%c0_11, %c0_12, %c0_13] : memref<3x12x32xbf16, #tpu.memory_space<vmem>>, vector<1x12x32xbf16>
    %10 = vector.shape_cast %9 : vector<1x12x32xbf16> to vector<12x32xbf16>
    %cst = arith.constant dense<0.000000e+00> : vector<64x32xf32>
    %11 = tpu.matmul %2, %10, %cst {dimension_numbers = #tpu.dot_dimension_numbers<[1], [0], [0], [1], [0, 0, 1, 1], [], []>} : vector<64x12xbf16>, vector<12x32xbf16>, vector<64x32xf32> -> vector<64x32xf32>
    %c1 = arith.constant 1 : index
    %c0_14 = arith.constant 0 : index
    %c0_15 = arith.constant 0 : index
    %12 = vector.load %arg5[%c1, %c0_14, %c0_15] : memref<3x12x32xbf16, #tpu.memory_space<vmem>>, vector<1x12x32xbf16>
    %13 = vector.shape_cast %12 : vector<1x12x32xbf16> to vector<12x32xbf16>
    %cst_16 = arith.constant dense<0.000000e+00> : vector<64x32xf32>
    %14 = tpu.matmul %5, %13, %cst_16 {dimension_numbers = #tpu.dot_dimension_numbers<[1], [0], [0], [1], [0, 0, 1, 1], [], []>} : vector<64x12xbf16>, vector<12x32xbf16>, vector<64x32xf32> -> vector<64x32xf32>
    %15 = arith.addf %11, %14 : vector<64x32xf32>
    %c2 = arith.constant 2 : index
    %c0_17 = arith.constant 0 : index
    %c0_18 = arith.constant 0 : index
    %16 = vector.load %arg5[%c2, %c0_17, %c0_18] : memref<3x12x32xbf16, #tpu.memory_space<vmem>>, vector<1x12x32xbf16>
    %17 = vector.shape_cast %16 : vector<1x12x32xbf16> to vector<12x32xbf16>
    %cst_19 = arith.constant dense<0.000000e+00> : vector<64x32xf32>
    %18 = tpu.matmul %8, %17, %cst_19 {dimension_numbers = #tpu.dot_dimension_numbers<[1], [0], [0], [1], [0, 0, 1, 1], [], []>} : vector<64x12xbf16>, vector<12x32xbf16>, vector<64x32xf32> -> vector<64x32xf32>
    %19 = arith.addf %15, %18 : vector<64x32xf32>
    %c0_20 = arith.constant 0 : index
    %c0_21 = arith.constant 0 : index
    %20 = vector.load %arg6[%c0_20, %c0_21] : memref<1x32xf32, #tpu.memory_space<vmem>>, vector<1x32xf32>
    %21 = vector.broadcast %20 : vector<1x32xf32> to vector<64x32xf32>
    %22 = arith.addf %19, %21 : vector<64x32xf32>
    %cst_22 = arith.constant 0.000000e+00 : f32
    %23 = vector.broadcast %cst_22 : f32 to vector<64x32xf32>
    %24 = arith.maximumf %22, %23 : vector<64x32xf32>
    %25 = vector.shape_cast %24 : vector<64x32xf32> to vector<8x8x32xf32>
    %26 = arith.truncf %25 : vector<8x8x32xf32> to vector<8x8x32xbf16>
    %c0_23 = arith.constant 0 : index
    %c0_24 = arith.constant 0 : index
    %c0_25 = arith.constant 0 : index
    %c0_26 = arith.constant 0 : index
    %27 = vector.load %arg7[%c0_23, %c0_24, %c0_25, %c0_26] : memref<1x8x8x32xbf16, #tpu.memory_space<vmem>>, vector<1x8x8x32xbf16>
    %28 = vector.shape_cast %27 : vector<1x8x8x32xbf16> to vector<8x8x32xbf16>
    %29 = vector.shape_cast %26 : vector<8x8x32xbf16> to vector<1x8x8x32xbf16>
    tpu.vector_store %arg7[%c0_23, %c0_24, %c0_25, %c0_26], %29 {strides = array<i32>} : memref<1x8x8x32xbf16, #tpu.memory_space<vmem>>, vector<1x8x8x32xbf16>,
    return
  }
  func.func @transform_0(%arg0: i32, %arg1: i32) -> (i32, i32, i32, i32) {
    %c0_i32 = arith.constant 0 : i32
    %c0_i32_0 = arith.constant 0 : i32
    %c0_i32_1 = arith.constant 0 : i32
    return %arg0, %arg1, %c0_i32, %c0_i32_0 : i32, i32, i32, i32
  }
  func.func @transform_1(%arg0: i32, %arg1: i32) -> (i32, i32, i32, i32) {
    %c0_i32 = arith.constant 0 : i32
    %c0_i32_0 = arith.constant 0 : i32
    %c0_i32_1 = arith.constant 0 : i32
    return %arg0, %arg1, %c0_i32, %c0_i32_0 : i32, i32, i32, i32
  }
  func.func @transform_2(%arg0: i32, %arg1: i32) -> (i32, i32, i32, i32) {
    %c0_i32 = arith.constant 0 : i32
    %c0_i32_0 = arith.constant 0 : i32
    %c0_i32_1 = arith.constant 0 : i32
    return %arg0, %arg1, %c0_i32, %c0_i32_0 : i32, i32, i32, i32
  }
  func.func @transform_3(%arg0: i32, %arg1: i32) -> (i32, i32, i32) {
    %c0_i32 = arith.constant 0 : i32
    %c0_i32_0 = arith.constant 0 : i32
    %c0_i32_1 = arith.constant 0 : i32
    %c0_i32_2 = arith.constant 0 : i32
    return %c0_i32, %c0_i32_0, %c0_i32_1 : i32, i32, i32
  }
  func.func @transform_4(%arg0: i32, %arg1: i32) -> (i32, i32) {
    %c0_i32 = arith.constant 0 : i32
    %c0_i32_0 = arith.constant 0 : i32
    %c0_i32_1 = arith.constant 0 : i32
    return %c0_i32, %c0_i32_0 : i32, i32
  }
  func.func @transform_5(%arg0: i32, %arg1: i32) -> (i32, i32, i32, i32) {
    %c0_i32 = arith.constant 0 : i32
    %c0_i32_0 = arith.constant 0 : i32
    %c0_i32_1 = arith.constant 0 : i32
    return %arg0, %arg1, %c0_i32, %c0_i32_0 : i32, i32, i32, i32
  }
}

module attributes {stable_mosaic.version = 11 : i64} {
  func.func @_attn_single_kv_kernel(%arg0: i32, %arg1: i32, %arg2: memref<1x64x32xbf16, #tpu.memory_space<vmem>>, %arg3: memref<1x64x32xbf16, #tpu.memory_space<vmem>>, %arg4: memref<1x64x32xbf16, #tpu.memory_space<vmem>>, %arg5: memref<1x64x32xbf16, #tpu.memory_space<vmem>>) attributes {dimension_semantics = [#tpu.dimension_semantics<parallel>, #tpu.dimension_semantics<parallel>], iteration_bounds = array<i64: 2, 1>, scalar_prefetch = 0 : i64, scratch_operands = 0 : i64, tpu.core_type = #tpu.core_type<tc>, window_params = [{transform_indices = @transform_0, window_bounds = array<i64: 1, 64, 32>}, {transform_indices = @transform_1, window_bounds = array<i64: 1, 64, 32>}, {transform_indices = @transform_2, window_bounds = array<i64: 1, 64, 32>}, {transform_indices = @transform_3, window_bounds = array<i64: 1, 64, 32>}]} {
    %c0 = arith.constant 0 : index
    %c0_0 = arith.constant 0 : index
    %c0_1 = arith.constant 0 : index
    %0 = vector.load %arg2[%c0, %c0_0, %c0_1] : memref<1x64x32xbf16, #tpu.memory_space<vmem>>, vector<1x64x32xbf16>
    %1 = vector.shape_cast %0 : vector<1x64x32xbf16> to vector<64x32xbf16>
    %c0_2 = arith.constant 0 : index
    %c0_3 = arith.constant 0 : index
    %c0_4 = arith.constant 0 : index
    %2 = vector.load %arg3[%c0_2, %c0_3, %c0_4] : memref<1x64x32xbf16, #tpu.memory_space<vmem>>, vector<1x64x32xbf16>
    %3 = vector.shape_cast %2 : vector<1x64x32xbf16> to vector<64x32xbf16>
    %c0_5 = arith.constant 0 : index
    %c0_6 = arith.constant 0 : index
    %c0_7 = arith.constant 0 : index
    %4 = vector.load %arg4[%c0_5, %c0_6, %c0_7] : memref<1x64x32xbf16, #tpu.memory_space<vmem>>, vector<1x64x32xbf16>
    %5 = vector.shape_cast %4 : vector<1x64x32xbf16> to vector<64x32xbf16>
    %cst = arith.constant dense<0.000000e+00> : vector<64x64xf32>
    %6 = tpu.matmul %1, %3, %cst {dimension_numbers = #tpu.dot_dimension_numbers<[1], [1], [0], [0], [0, 0, 1, 0], [], []>} : vector<64x32xbf16>, vector<64x32xbf16>, vector<64x64xf32> -> vector<64x64xf32>
    %cst_8 = arith.constant dense<0xFF800000> : vector<64xf32>
    %7 = vector.multi_reduction <maximumf>, %6, %cst_8 [1] : vector<64x64xf32> to vector<64xf32>
    %8 = vector.shape_cast %7 : vector<64xf32> to vector<64x1xf32>
    %9 = vector.broadcast %8 : vector<64x1xf32> to vector<64x64xf32>
    %10 = arith.subf %6, %9 : vector<64x64xf32>
    %11 = math.exp %10 : vector<64x64xf32>
    %cst_9 = arith.constant dense<0.000000e+00> : vector<64xf32>
    %12 = vector.multi_reduction <add>, %11, %cst_9 [1] : vector<64x64xf32> to vector<64xf32>
    %13 = vector.shape_cast %12 : vector<64xf32> to vector<64x1xf32>
    %14 = arith.truncf %11 : vector<64x64xf32> to vector<64x64xbf16>
    %cst_10 = arith.constant dense<0.000000e+00> : vector<64x32xf32>
    %15 = tpu.matmul %14, %5, %cst_10 {dimension_numbers = #tpu.dot_dimension_numbers<[1], [0], [0], [1], [0, 0, 1, 1], [], []>} : vector<64x64xbf16>, vector<64x32xbf16>, vector<64x32xf32> -> vector<64x32xf32>
    %16 = tpu.reciprocal %13 {approx = true} : vector<64x1xf32> -> vector<64x1xf32>
    %17 = vector.broadcast %16 : vector<64x1xf32> to vector<64x32xf32>
    %18 = arith.mulf %15, %17 : vector<64x32xf32>
    %19 = arith.truncf %18 : vector<64x32xf32> to vector<64x32xbf16>
    %c0_11 = arith.constant 0 : index
    %c0_12 = arith.constant 0 : index
    %c0_13 = arith.constant 0 : index
    %20 = vector.load %arg5[%c0_11, %c0_12, %c0_13] : memref<1x64x32xbf16, #tpu.memory_space<vmem>>, vector<1x64x32xbf16>
    %21 = vector.shape_cast %20 : vector<1x64x32xbf16> to vector<64x32xbf16>
    %22 = vector.shape_cast %19 : vector<64x32xbf16> to vector<1x64x32xbf16>
    tpu.vector_store %arg5[%c0_11, %c0_12, %c0_13], %22 {strides = array<i32>} : memref<1x64x32xbf16, #tpu.memory_space<vmem>>, vector<1x64x32xbf16>,
    return
  }
  func.func @transform_0(%arg0: i32, %arg1: i32) -> (i32, i32, i32) {
    %c0_i32 = arith.constant 0 : i32
    %c0_i32_0 = arith.constant 0 : i32
    return %arg0, %arg1, %c0_i32 : i32, i32, i32
  }
  func.func @transform_1(%arg0: i32, %arg1: i32) -> (i32, i32, i32) {
    %c0_i32 = arith.constant 0 : i32
    %c0_i32_0 = arith.constant 0 : i32
    %c0_i32_1 = arith.constant 0 : i32
    return %arg0, %c0_i32, %c0_i32_0 : i32, i32, i32
  }
  func.func @transform_2(%arg0: i32, %arg1: i32) -> (i32, i32, i32) {
    %c0_i32 = arith.constant 0 : i32
    %c0_i32_0 = arith.constant 0 : i32
    %c0_i32_1 = arith.constant 0 : i32
    return %arg0, %c0_i32, %c0_i32_0 : i32, i32, i32
  }
  func.func @transform_3(%arg0: i32, %arg1: i32) -> (i32, i32, i32) {
    %c0_i32 = arith.constant 0 : i32
    %c0_i32_0 = arith.constant 0 : i32
    return %arg0, %arg1, %c0_i32 : i32, i32, i32
  }
}

module attributes {stable_mosaic.version = 11 : i64} {
  func.func @_multi_linear_kernel(%arg0: i32, %arg1: memref<64x32xbf16, #tpu.memory_space<vmem>>, %arg2: memref<32x32xbf16, #tpu.memory_space<vmem>>, %arg3: memref<32x32xbf16, #tpu.memory_space<vmem>>, %arg4: memref<32x32xbf16, #tpu.memory_space<vmem>>, %arg5: memref<1x32xf32, #tpu.memory_space<vmem>>, %arg6: memref<1x32xf32, #tpu.memory_space<vmem>>, %arg7: memref<1x32xf32, #tpu.memory_space<vmem>>, %arg8: memref<64x32xbf16, #tpu.memory_space<vmem>>, %arg9: memref<64x32xbf16, #tpu.memory_space<vmem>>, %arg10: memref<64x32xbf16, #tpu.memory_space<vmem>>) attributes {dimension_semantics = [#tpu.dimension_semantics<parallel>], iteration_bounds = array<i64: 2>, scalar_prefetch = 0 : i64, scratch_operands = 0 : i64, tpu.core_type = #tpu.core_type<tc>, window_params = [{transform_indices = @transform_0, window_bounds = array<i64: 64, 32>}, {pipeline_mode = #tpu.pipeline_mode<synchronous>, transform_indices = @transform_1, window_bounds = array<i64: 32, 32>}, {pipeline_mode = #tpu.pipeline_mode<synchronous>, transform_indices = @transform_2, window_bounds = array<i64: 32, 32>}, {pipeline_mode = #tpu.pipeline_mode<synchronous>, transform_indices = @transform_3, window_bounds = array<i64: 32, 32>}, {pipeline_mode = #tpu.pipeline_mode<synchronous>, transform_indices = @transform_4, window_bounds = array<i64: 1, 32>}, {pipeline_mode = #tpu.pipeline_mode<synchronous>, transform_indices = @transform_5, window_bounds = array<i64: 1, 32>}, {pipeline_mode = #tpu.pipeline_mode<synchronous>, transform_indices = @transform_6, window_bounds = array<i64: 1, 32>}, {transform_indices = @transform_7, window_bounds = array<i64: 64, 32>}, {transform_indices = @transform_8, window_bounds = array<i64: 64, 32>}, {transform_indices = @transform_9, window_bounds = array<i64: 64, 32>}]} {
    %c0 = arith.constant 0 : index
    %c0_0 = arith.constant 0 : index
    %0 = vector.load %arg1[%c0, %c0_0] : memref<64x32xbf16, #tpu.memory_space<vmem>>, vector<64x32xbf16>
    %c0_1 = arith.constant 0 : index
    %c0_2 = arith.constant 0 : index
    %1 = vector.load %arg2[%c0_1, %c0_2] : memref<32x32xbf16, #tpu.memory_space<vmem>>, vector<32x32xbf16>
    %cst = arith.constant dense<0.000000e+00> : vector<64x32xf32>
    %2 = tpu.matmul %0, %1, %cst {dimension_numbers = #tpu.dot_dimension_numbers<[1], [0], [0], [1], [0, 0, 1, 1], [], []>} : vector<64x32xbf16>, vector<32x32xbf16>, vector<64x32xf32> -> vector<64x32xf32>
    %c0_3 = arith.constant 0 : index
    %c0_4 = arith.constant 0 : index
    %3 = vector.load %arg5[%c0_3, %c0_4] : memref<1x32xf32, #tpu.memory_space<vmem>>, vector<1x32xf32>
    %4 = vector.broadcast %3 : vector<1x32xf32> to vector<64x32xf32>
    %5 = arith.addf %2, %4 : vector<64x32xf32>
    %6 = arith.truncf %5 : vector<64x32xf32> to vector<64x32xbf16>
    %c0_5 = arith.constant 0 : index
    %c0_6 = arith.constant 0 : index
    %7 = vector.load %arg8[%c0_5, %c0_6] : memref<64x32xbf16, #tpu.memory_space<vmem>>, vector<64x32xbf16>
    tpu.vector_store %arg8[%c0_5, %c0_6], %6 {strides = array<i32>} : memref<64x32xbf16, #tpu.memory_space<vmem>>, vector<64x32xbf16>,
    %c0_7 = arith.constant 0 : index
    %c0_8 = arith.constant 0 : index
    %8 = vector.load %arg3[%c0_7, %c0_8] : memref<32x32xbf16, #tpu.memory_space<vmem>>, vector<32x32xbf16>
    %cst_9 = arith.constant dense<0.000000e+00> : vector<64x32xf32>
    %9 = tpu.matmul %0, %8, %cst_9 {dimension_numbers = #tpu.dot_dimension_numbers<[1], [0], [0], [1], [0, 0, 1, 1], [], []>} : vector<64x32xbf16>, vector<32x32xbf16>, vector<64x32xf32> -> vector<64x32xf32>
    %c0_10 = arith.constant 0 : index
    %c0_11 = arith.constant 0 : index
    %10 = vector.load %arg6[%c0_10, %c0_11] : memref<1x32xf32, #tpu.memory_space<vmem>>, vector<1x32xf32>
    %11 = vector.broadcast %10 : vector<1x32xf32> to vector<64x32xf32>
    %12 = arith.addf %9, %11 : vector<64x32xf32>
    %13 = arith.truncf %12 : vector<64x32xf32> to vector<64x32xbf16>
    %c0_12 = arith.constant 0 : index
    %c0_13 = arith.constant 0 : index
    %14 = vector.load %arg9[%c0_12, %c0_13] : memref<64x32xbf16, #tpu.memory_space<vmem>>, vector<64x32xbf16>
    tpu.vector_store %arg9[%c0_12, %c0_13], %13 {strides = array<i32>} : memref<64x32xbf16, #tpu.memory_space<vmem>>, vector<64x32xbf16>,
    %c0_14 = arith.constant 0 : index
    %c0_15 = arith.constant 0 : index
    %15 = vector.load %arg4[%c0_14, %c0_15] : memref<32x32xbf16, #tpu.memory_space<vmem>>, vector<32x32xbf16>
    %cst_16 = arith.constant dense<0.000000e+00> : vector<64x32xf32>
    %16 = tpu.matmul %0, %15, %cst_16 {dimension_numbers = #tpu.dot_dimension_numbers<[1], [0], [0], [1], [0, 0, 1, 1], [], []>} : vector<64x32xbf16>, vector<32x32xbf16>, vector<64x32xf32> -> vector<64x32xf32>
    %c0_17 = arith.constant 0 : index
    %c0_18 = arith.constant 0 : index
    %17 = vector.load %arg7[%c0_17, %c0_18] : memref<1x32xf32, #tpu.memory_space<vmem>>, vector<1x32xf32>
    %18 = vector.broadcast %17 : vector<1x32xf32> to vector<64x32xf32>
    %19 = arith.addf %16, %18 : vector<64x32xf32>
    %20 = arith.truncf %19 : vector<64x32xf32> to vector<64x32xbf16>
    %c0_19 = arith.constant 0 : index
    %c0_20 = arith.constant 0 : index
    %21 = vector.load %arg10[%c0_19, %c0_20] : memref<64x32xbf16, #tpu.memory_space<vmem>>, vector<64x32xbf16>
    tpu.vector_store %arg10[%c0_19, %c0_20], %20 {strides = array<i32>} : memref<64x32xbf16, #tpu.memory_space<vmem>>, vector<64x32xbf16>,
    return
  }
  func.func @transform_0(%arg0: i32) -> (i32, i32) {
    %c0_i32 = arith.constant 0 : i32
    %c0_i32_0 = arith.constant 0 : i32
    return %arg0, %c0_i32 : i32, i32
  }
  func.func @transform_1(%arg0: i32) -> (i32, i32) {
    %c0_i32 = arith.constant 0 : i32
    %c0_i32_0 = arith.constant 0 : i32
    %c0_i32_1 = arith.constant 0 : i32
    return %c0_i32, %c0_i32_0 : i32, i32
  }
  func.func @transform_2(%arg0: i32) -> (i32, i32) {
    %c0_i32 = arith.constant 0 : i32
    %c0_i32_0 = arith.constant 0 : i32
    %c0_i32_1 = arith.constant 0 : i32
    return %c0_i32, %c0_i32_0 : i32, i32
  }
  func.func @transform_3(%arg0: i32) -> (i32, i32) {
    %c0_i32 = arith.constant 0 : i32
    %c0_i32_0 = arith.constant 0 : i32
    %c0_i32_1 = arith.constant 0 : i32
    return %c0_i32, %c0_i32_0 : i32, i32
  }
  func.func @transform_4(%arg0: i32) -> (i32, i32) {
    %c0_i32 = arith.constant 0 : i32
    %c0_i32_0 = arith.constant 0 : i32
    %c0_i32_1 = arith.constant 0 : i32
    return %c0_i32, %c0_i32_0 : i32, i32
  }
  func.func @transform_5(%arg0: i32) -> (i32, i32) {
    %c0_i32 = arith.constant 0 : i32
    %c0_i32_0 = arith.constant 0 : i32
    %c0_i32_1 = arith.constant 0 : i32
    return %c0_i32, %c0_i32_0 : i32, i32
  }
  func.func @transform_6(%arg0: i32) -> (i32, i32) {
    %c0_i32 = arith.constant 0 : i32
    %c0_i32_0 = arith.constant 0 : i32
    %c0_i32_1 = arith.constant 0 : i32
    return %c0_i32, %c0_i32_0 : i32, i32
  }
  func.func @transform_7(%arg0: i32) -> (i32, i32) {
    %c0_i32 = arith.constant 0 : i32
    %c0_i32_0 = arith.constant 0 : i32
    return %arg0, %c0_i32 : i32, i32
  }
  func.func @transform_8(%arg0: i32) -> (i32, i32) {
    %c0_i32 = arith.constant 0 : i32
    %c0_i32_0 = arith.constant 0 : i32
    return %arg0, %c0_i32 : i32, i32
  }
  func.func @transform_9(%arg0: i32) -> (i32, i32) {
    %c0_i32 = arith.constant 0 : i32
    %c0_i32_0 = arith.constant 0 : i32
    return %arg0, %c0_i32 : i32, i32
  }
}

module attributes {stable_mosaic.version = 11 : i64} {
  func.func @_proj_residual_ln_kernel(%arg0: i32, %arg1: memref<64x32xbf16, #tpu.memory_space<vmem>>, %arg2: memref<32x32xbf16, #tpu.memory_space<vmem>>, %arg3: memref<1x32xf32, #tpu.memory_space<vmem>>, %arg4: memref<64x32xbf16, #tpu.memory_space<vmem>>, %arg5: memref<1x32xf32, #tpu.memory_space<vmem>>, %arg6: memref<1x32xf32, #tpu.memory_space<vmem>>, %arg7: memref<64x32xbf16, #tpu.memory_space<vmem>>) attributes {dimension_semantics = [#tpu.dimension_semantics<parallel>], iteration_bounds = array<i64: 2>, scalar_prefetch = 0 : i64, scratch_operands = 0 : i64, tpu.core_type = #tpu.core_type<tc>, window_params = [{transform_indices = @transform_0, window_bounds = array<i64: 64, 32>}, {pipeline_mode = #tpu.pipeline_mode<synchronous>, transform_indices = @transform_1, window_bounds = array<i64: 32, 32>}, {pipeline_mode = #tpu.pipeline_mode<synchronous>, transform_indices = @transform_2, window_bounds = array<i64: 1, 32>}, {transform_indices = @transform_3, window_bounds = array<i64: 64, 32>}, {pipeline_mode = #tpu.pipeline_mode<synchronous>, transform_indices = @transform_4, window_bounds = array<i64: 1, 32>}, {pipeline_mode = #tpu.pipeline_mode<synchronous>, transform_indices = @transform_5, window_bounds = array<i64: 1, 32>}, {transform_indices = @transform_6, window_bounds = array<i64: 64, 32>}]} {
    %c0 = arith.constant 0 : index
    %c0_0 = arith.constant 0 : index
    %0 = vector.load %arg1[%c0, %c0_0] : memref<64x32xbf16, #tpu.memory_space<vmem>>, vector<64x32xbf16>
    %c0_1 = arith.constant 0 : index
    %c0_2 = arith.constant 0 : index
    %1 = vector.load %arg2[%c0_1, %c0_2] : memref<32x32xbf16, #tpu.memory_space<vmem>>, vector<32x32xbf16>
    %cst = arith.constant dense<0.000000e+00> : vector<64x32xf32>
    %2 = tpu.matmul %0, %1, %cst {dimension_numbers = #tpu.dot_dimension_numbers<[1], [0], [0], [1], [0, 0, 1, 1], [], []>} : vector<64x32xbf16>, vector<32x32xbf16>, vector<64x32xf32> -> vector<64x32xf32>
    %c0_3 = arith.constant 0 : index
    %c0_4 = arith.constant 0 : index
    %3 = vector.load %arg3[%c0_3, %c0_4] : memref<1x32xf32, #tpu.memory_space<vmem>>, vector<1x32xf32>
    %4 = vector.broadcast %3 : vector<1x32xf32> to vector<64x32xf32>
    %5 = arith.addf %2, %4 : vector<64x32xf32>
    %c0_5 = arith.constant 0 : index
    %c0_6 = arith.constant 0 : index
    %6 = vector.load %arg4[%c0_5, %c0_6] : memref<64x32xbf16, #tpu.memory_space<vmem>>, vector<64x32xbf16>
    %7 = arith.extf %6 : vector<64x32xbf16> to vector<64x32xf32>
    %8 = arith.addf %5, %7 : vector<64x32xf32>
    %cst_7 = arith.constant dense<0.000000e+00> : vector<64xf32>
    %9 = vector.multi_reduction <add>, %8, %cst_7 [1] : vector<64x32xf32> to vector<64xf32>
    %10 = vector.shape_cast %9 : vector<64xf32> to vector<64x1xf32>
    %cst_8 = arith.constant 3.200000e+01 : f32
    %11 = vector.broadcast %cst_8 : f32 to vector<64x1xf32>
    %12 = arith.divf %10, %11 : vector<64x1xf32>
    %13 = vector.broadcast %12 : vector<64x1xf32> to vector<64x32xf32>
    %14 = arith.subf %8, %13 : vector<64x32xf32>
    %15 = arith.mulf %14, %14 : vector<64x32xf32>
    %cst_9 = arith.constant dense<0.000000e+00> : vector<64xf32>
    %16 = vector.multi_reduction <add>, %15, %cst_9 [1] : vector<64x32xf32> to vector<64xf32>
    %17 = vector.shape_cast %16 : vector<64xf32> to vector<64x1xf32>
    %cst_10 = arith.constant 3.200000e+01 : f32
    %18 = vector.broadcast %cst_10 : f32 to vector<64x1xf32>
    %19 = arith.divf %17, %18 : vector<64x1xf32>
    %20 = vector.broadcast %12 : vector<64x1xf32> to vector<64x32xf32>
    %21 = arith.subf %8, %20 : vector<64x32xf32>
    %cst_11 = arith.constant 9.99999974E-6 : f32
    %22 = vector.broadcast %cst_11 : f32 to vector<64x1xf32>
    %23 = arith.addf %19, %22 : vector<64x1xf32>
    %24 = math.rsqrt %23 : vector<64x1xf32>
    %25 = vector.broadcast %24 : vector<64x1xf32> to vector<64x32xf32>
    %26 = arith.mulf %21, %25 : vector<64x32xf32>
    %c0_12 = arith.constant 0 : index
    %c0_13 = arith.constant 0 : index
    %27 = vector.load %arg5[%c0_12, %c0_13] : memref<1x32xf32, #tpu.memory_space<vmem>>, vector<1x32xf32>
    %28 = vector.broadcast %27 : vector<1x32xf32> to vector<64x32xf32>
    %29 = arith.mulf %26, %28 : vector<64x32xf32>
    %c0_14 = arith.constant 0 : index
    %c0_15 = arith.constant 0 : index
    %30 = vector.load %arg6[%c0_14, %c0_15] : memref<1x32xf32, #tpu.memory_space<vmem>>, vector<1x32xf32>
    %31 = vector.broadcast %30 : vector<1x32xf32> to vector<64x32xf32>
    %32 = arith.addf %29, %31 : vector<64x32xf32>
    %33 = arith.truncf %32 : vector<64x32xf32> to vector<64x32xbf16>
    %c0_16 = arith.constant 0 : index
    %c0_17 = arith.constant 0 : index
    %34 = vector.load %arg7[%c0_16, %c0_17] : memref<64x32xbf16, #tpu.memory_space<vmem>>, vector<64x32xbf16>
    tpu.vector_store %arg7[%c0_16, %c0_17], %33 {strides = array<i32>} : memref<64x32xbf16, #tpu.memory_space<vmem>>, vector<64x32xbf16>,
    return
  }
  func.func @transform_0(%arg0: i32) -> (i32, i32) {
    %c0_i32 = arith.constant 0 : i32
    %c0_i32_0 = arith.constant 0 : i32
    return %arg0, %c0_i32 : i32, i32
  }
  func.func @transform_1(%arg0: i32) -> (i32, i32) {
    %c0_i32 = arith.constant 0 : i32
    %c0_i32_0 = arith.constant 0 : i32
    %c0_i32_1 = arith.constant 0 : i32
    return %c0_i32, %c0_i32_0 : i32, i32
  }
  func.func @transform_2(%arg0: i32) -> (i32, i32) {
    %c0_i32 = arith.constant 0 : i32
    %c0_i32_0 = arith.constant 0 : i32
    %c0_i32_1 = arith.constant 0 : i32
    return %c0_i32, %c0_i32_0 : i32, i32
  }
  func.func @transform_3(%arg0: i32) -> (i32, i32) {
    %c0_i32 = arith.constant 0 : i32
    %c0_i32_0 = arith.constant 0 : i32
    return %arg0, %c0_i32 : i32, i32
  }
  func.func @transform_4(%arg0: i32) -> (i32, i32) {
    %c0_i32 = arith.constant 0 : i32
    %c0_i32_0 = arith.constant 0 : i32
    %c0_i32_1 = arith.constant 0 : i32
    return %c0_i32, %c0_i32_0 : i32, i32
  }
  func.func @transform_5(%arg0: i32) -> (i32, i32) {
    %c0_i32 = arith.constant 0 : i32
    %c0_i32_0 = arith.constant 0 : i32
    %c0_i32_1 = arith.constant 0 : i32
    return %c0_i32, %c0_i32_0 : i32, i32
  }
  func.func @transform_6(%arg0: i32) -> (i32, i32) {
    %c0_i32 = arith.constant 0 : i32
    %c0_i32_0 = arith.constant 0 : i32
    return %arg0, %c0_i32 : i32, i32
  }
}

module attributes {stable_mosaic.version = 11 : i64} {
  func.func @_multi_linear_kernel(%arg0: i32, %arg1: memref<64x32xbf16, #tpu.memory_space<vmem>>, %arg2: memref<32x32xbf16, #tpu.memory_space<vmem>>, %arg3: memref<32x32xbf16, #tpu.memory_space<vmem>>, %arg4: memref<1x32xf32, #tpu.memory_space<vmem>>, %arg5: memref<1x32xf32, #tpu.memory_space<vmem>>, %arg6: memref<64x32xbf16, #tpu.memory_space<vmem>>, %arg7: memref<64x32xbf16, #tpu.memory_space<vmem>>) attributes {dimension_semantics = [#tpu.dimension_semantics<parallel>], iteration_bounds = array<i64: 2>, scalar_prefetch = 0 : i64, scratch_operands = 0 : i64, tpu.core_type = #tpu.core_type<tc>, window_params = [{transform_indices = @transform_0, window_bounds = array<i64: 64, 32>}, {pipeline_mode = #tpu.pipeline_mode<synchronous>, transform_indices = @transform_1, window_bounds = array<i64: 32, 32>}, {pipeline_mode = #tpu.pipeline_mode<synchronous>, transform_indices = @transform_2, window_bounds = array<i64: 32, 32>}, {pipeline_mode = #tpu.pipeline_mode<synchronous>, transform_indices = @transform_3, window_bounds = array<i64: 1, 32>}, {pipeline_mode = #tpu.pipeline_mode<synchronous>, transform_indices = @transform_4, window_bounds = array<i64: 1, 32>}, {transform_indices = @transform_5, window_bounds = array<i64: 64, 32>}, {transform_indices = @transform_6, window_bounds = array<i64: 64, 32>}]} {
    %c0 = arith.constant 0 : index
    %c0_0 = arith.constant 0 : index
    %0 = vector.load %arg1[%c0, %c0_0] : memref<64x32xbf16, #tpu.memory_space<vmem>>, vector<64x32xbf16>
    %c0_1 = arith.constant 0 : index
    %c0_2 = arith.constant 0 : index
    %1 = vector.load %arg2[%c0_1, %c0_2] : memref<32x32xbf16, #tpu.memory_space<vmem>>, vector<32x32xbf16>
    %cst = arith.constant dense<0.000000e+00> : vector<64x32xf32>
    %2 = tpu.matmul %0, %1, %cst {dimension_numbers = #tpu.dot_dimension_numbers<[1], [0], [0], [1], [0, 0, 1, 1], [], []>} : vector<64x32xbf16>, vector<32x32xbf16>, vector<64x32xf32> -> vector<64x32xf32>
    %c0_3 = arith.constant 0 : index
    %c0_4 = arith.constant 0 : index
    %3 = vector.load %arg4[%c0_3, %c0_4] : memref<1x32xf32, #tpu.memory_space<vmem>>, vector<1x32xf32>
    %4 = vector.broadcast %3 : vector<1x32xf32> to vector<64x32xf32>
    %5 = arith.addf %2, %4 : vector<64x32xf32>
    %6 = arith.truncf %5 : vector<64x32xf32> to vector<64x32xbf16>
    %c0_5 = arith.constant 0 : index
    %c0_6 = arith.constant 0 : index
    %7 = vector.load %arg6[%c0_5, %c0_6] : memref<64x32xbf16, #tpu.memory_space<vmem>>, vector<64x32xbf16>
    tpu.vector_store %arg6[%c0_5, %c0_6], %6 {strides = array<i32>} : memref<64x32xbf16, #tpu.memory_space<vmem>>, vector<64x32xbf16>,
    %c0_7 = arith.constant 0 : index
    %c0_8 = arith.constant 0 : index
    %8 = vector.load %arg3[%c0_7, %c0_8] : memref<32x32xbf16, #tpu.memory_space<vmem>>, vector<32x32xbf16>
    %cst_9 = arith.constant dense<0.000000e+00> : vector<64x32xf32>
    %9 = tpu.matmul %0, %8, %cst_9 {dimension_numbers = #tpu.dot_dimension_numbers<[1], [0], [0], [1], [0, 0, 1, 1], [], []>} : vector<64x32xbf16>, vector<32x32xbf16>, vector<64x32xf32> -> vector<64x32xf32>
    %c0_10 = arith.constant 0 : index
    %c0_11 = arith.constant 0 : index
    %10 = vector.load %arg5[%c0_10, %c0_11] : memref<1x32xf32, #tpu.memory_space<vmem>>, vector<1x32xf32>
    %11 = vector.broadcast %10 : vector<1x32xf32> to vector<64x32xf32>
    %12 = arith.addf %9, %11 : vector<64x32xf32>
    %13 = arith.truncf %12 : vector<64x32xf32> to vector<64x32xbf16>
    %c0_12 = arith.constant 0 : index
    %c0_13 = arith.constant 0 : index
    %14 = vector.load %arg7[%c0_12, %c0_13] : memref<64x32xbf16, #tpu.memory_space<vmem>>, vector<64x32xbf16>
    tpu.vector_store %arg7[%c0_12, %c0_13], %13 {strides = array<i32>} : memref<64x32xbf16, #tpu.memory_space<vmem>>, vector<64x32xbf16>,
    return
  }
  func.func @transform_0(%arg0: i32) -> (i32, i32) {
    %c0_i32 = arith.constant 0 : i32
    %c0_i32_0 = arith.constant 0 : i32
    return %arg0, %c0_i32 : i32, i32
  }
  func.func @transform_1(%arg0: i32) -> (i32, i32) {
    %c0_i32 = arith.constant 0 : i32
    %c0_i32_0 = arith.constant 0 : i32
    %c0_i32_1 = arith.constant 0 : i32
    return %c0_i32, %c0_i32_0 : i32, i32
  }
  func.func @transform_2(%arg0: i32) -> (i32, i32) {
    %c0_i32 = arith.constant 0 : i32
    %c0_i32_0 = arith.constant 0 : i32
    %c0_i32_1 = arith.constant 0 : i32
    return %c0_i32, %c0_i32_0 : i32, i32
  }
  func.func @transform_3(%arg0: i32) -> (i32, i32) {
    %c0_i32 = arith.constant 0 : i32
    %c0_i32_0 = arith.constant 0 : i32
    %c0_i32_1 = arith.constant 0 : i32
    return %c0_i32, %c0_i32_0 : i32, i32
  }
  func.func @transform_4(%arg0: i32) -> (i32, i32) {
    %c0_i32 = arith.constant 0 : i32
    %c0_i32_0 = arith.constant 0 : i32
    %c0_i32_1 = arith.constant 0 : i32
    return %c0_i32, %c0_i32_0 : i32, i32
  }
  func.func @transform_5(%arg0: i32) -> (i32, i32) {
    %c0_i32 = arith.constant 0 : i32
    %c0_i32_0 = arith.constant 0 : i32
    return %arg0, %c0_i32 : i32, i32
  }
  func.func @transform_6(%arg0: i32) -> (i32, i32) {
    %c0_i32 = arith.constant 0 : i32
    %c0_i32_0 = arith.constant 0 : i32
    return %arg0, %c0_i32 : i32, i32
  }
}

module attributes {stable_mosaic.version = 11 : i64} {
  func.func @_ffn_ln_kernel(%arg0: i32, %arg1: memref<64x32xbf16, #tpu.memory_space<vmem>>, %arg2: memref<32x64xbf16, #tpu.memory_space<vmem>>, %arg3: memref<1x64xf32, #tpu.memory_space<vmem>>, %arg4: memref<64x32xbf16, #tpu.memory_space<vmem>>, %arg5: memref<1x32xf32, #tpu.memory_space<vmem>>, %arg6: memref<1x32xf32, #tpu.memory_space<vmem>>, %arg7: memref<1x32xf32, #tpu.memory_space<vmem>>, %arg8: memref<64x32xbf16, #tpu.memory_space<vmem>>) attributes {dimension_semantics = [#tpu.dimension_semantics<parallel>], iteration_bounds = array<i64: 2>, scalar_prefetch = 0 : i64, scratch_operands = 0 : i64, tpu.core_type = #tpu.core_type<tc>, window_params = [{transform_indices = @transform_0, window_bounds = array<i64: 64, 32>}, {pipeline_mode = #tpu.pipeline_mode<synchronous>, transform_indices = @transform_1, window_bounds = array<i64: 32, 64>}, {pipeline_mode = #tpu.pipeline_mode<synchronous>, transform_indices = @transform_2, window_bounds = array<i64: 1, 64>}, {pipeline_mode = #tpu.pipeline_mode<synchronous>, transform_indices = @transform_3, window_bounds = array<i64: 64, 32>}, {pipeline_mode = #tpu.pipeline_mode<synchronous>, transform_indices = @transform_4, window_bounds = array<i64: 1, 32>}, {pipeline_mode = #tpu.pipeline_mode<synchronous>, transform_indices = @transform_5, window_bounds = array<i64: 1, 32>}, {pipeline_mode = #tpu.pipeline_mode<synchronous>, transform_indices = @transform_6, window_bounds = array<i64: 1, 32>}, {transform_indices = @transform_7, window_bounds = array<i64: 64, 32>}]} {
    %c0 = arith.constant 0 : index
    %c0_0 = arith.constant 0 : index
    %0 = vector.load %arg1[%c0, %c0_0] : memref<64x32xbf16, #tpu.memory_space<vmem>>, vector<64x32xbf16>
    %c0_1 = arith.constant 0 : index
    %c0_2 = arith.constant 0 : index
    %1 = vector.load %arg2[%c0_1, %c0_2] : memref<32x64xbf16, #tpu.memory_space<vmem>>, vector<32x64xbf16>
    %cst = arith.constant dense<0.000000e+00> : vector<64x64xf32>
    %2 = tpu.matmul %0, %1, %cst {dimension_numbers = #tpu.dot_dimension_numbers<[1], [0], [0], [1], [0, 0, 1, 1], [], []>} : vector<64x32xbf16>, vector<32x64xbf16>, vector<64x64xf32> -> vector<64x64xf32>
    %c0_3 = arith.constant 0 : index
    %c0_4 = arith.constant 0 : index
    %3 = vector.load %arg3[%c0_3, %c0_4] : memref<1x64xf32, #tpu.memory_space<vmem>>, vector<1x64xf32>
    %4 = vector.broadcast %3 : vector<1x64xf32> to vector<64x64xf32>
    %5 = arith.addf %2, %4 : vector<64x64xf32>
    %cst_5 = arith.constant 0.000000e+00 : f32
    %6 = vector.broadcast %cst_5 : f32 to vector<64x64xf32>
    %7 = arith.maximumf %5, %6 : vector<64x64xf32>
    %8 = arith.truncf %7 : vector<64x64xf32> to vector<64x64xbf16>
    %c0_6 = arith.constant 0 : index
    %c0_7 = arith.constant 0 : index
    %9 = vector.load %arg4[%c0_6, %c0_7] : memref<64x32xbf16, #tpu.memory_space<vmem>>, vector<64x32xbf16>
    %cst_8 = arith.constant dense<0.000000e+00> : vector<64x32xf32>
    %10 = tpu.matmul %8, %9, %cst_8 {dimension_numbers = #tpu.dot_dimension_numbers<[1], [0], [0], [1], [0, 0, 1, 1], [], []>} : vector<64x64xbf16>, vector<64x32xbf16>, vector<64x32xf32> -> vector<64x32xf32>
    %c0_9 = arith.constant 0 : index
    %c0_10 = arith.constant 0 : index
    %11 = vector.load %arg5[%c0_9, %c0_10] : memref<1x32xf32, #tpu.memory_space<vmem>>, vector<1x32xf32>
    %12 = vector.broadcast %11 : vector<1x32xf32> to vector<64x32xf32>
    %13 = arith.addf %10, %12 : vector<64x32xf32>
    %14 = arith.extf %0 : vector<64x32xbf16> to vector<64x32xf32>
    %15 = arith.addf %13, %14 : vector<64x32xf32>
    %cst_11 = arith.constant dense<0.000000e+00> : vector<64xf32>
    %16 = vector.multi_reduction <add>, %15, %cst_11 [1] : vector<64x32xf32> to vector<64xf32>
    %17 = vector.shape_cast %16 : vector<64xf32> to vector<64x1xf32>
    %cst_12 = arith.constant 3.200000e+01 : f32
    %18 = vector.broadcast %cst_12 : f32 to vector<64x1xf32>
    %19 = arith.divf %17, %18 : vector<64x1xf32>
    %20 = vector.broadcast %19 : vector<64x1xf32> to vector<64x32xf32>
    %21 = arith.subf %15, %20 : vector<64x32xf32>
    %22 = arith.mulf %21, %21 : vector<64x32xf32>
    %cst_13 = arith.constant dense<0.000000e+00> : vector<64xf32>
    %23 = vector.multi_reduction <add>, %22, %cst_13 [1] : vector<64x32xf32> to vector<64xf32>
    %24 = vector.shape_cast %23 : vector<64xf32> to vector<64x1xf32>
    %cst_14 = arith.constant 3.200000e+01 : f32
    %25 = vector.broadcast %cst_14 : f32 to vector<64x1xf32>
    %26 = arith.divf %24, %25 : vector<64x1xf32>
    %27 = vector.broadcast %19 : vector<64x1xf32> to vector<64x32xf32>
    %28 = arith.subf %15, %27 : vector<64x32xf32>
    %cst_15 = arith.constant 9.99999974E-6 : f32
    %29 = vector.broadcast %cst_15 : f32 to vector<64x1xf32>
    %30 = arith.addf %26, %29 : vector<64x1xf32>
    %31 = math.rsqrt %30 : vector<64x1xf32>
    %32 = vector.broadcast %31 : vector<64x1xf32> to vector<64x32xf32>
    %33 = arith.mulf %28, %32 : vector<64x32xf32>
    %c0_16 = arith.constant 0 : index
    %c0_17 = arith.constant 0 : index
    %34 = vector.load %arg6[%c0_16, %c0_17] : memref<1x32xf32, #tpu.memory_space<vmem>>, vector<1x32xf32>
    %35 = vector.broadcast %34 : vector<1x32xf32> to vector<64x32xf32>
    %36 = arith.mulf %33, %35 : vector<64x32xf32>
    %c0_18 = arith.constant 0 : index
    %c0_19 = arith.constant 0 : index
    %37 = vector.load %arg7[%c0_18, %c0_19] : memref<1x32xf32, #tpu.memory_space<vmem>>, vector<1x32xf32>
    %38 = vector.broadcast %37 : vector<1x32xf32> to vector<64x32xf32>
    %39 = arith.addf %36, %38 : vector<64x32xf32>
    %40 = arith.truncf %39 : vector<64x32xf32> to vector<64x32xbf16>
    %c0_20 = arith.constant 0 : index
    %c0_21 = arith.constant 0 : index
    %41 = vector.load %arg8[%c0_20, %c0_21] : memref<64x32xbf16, #tpu.memory_space<vmem>>, vector<64x32xbf16>
    tpu.vector_store %arg8[%c0_20, %c0_21], %40 {strides = array<i32>} : memref<64x32xbf16, #tpu.memory_space<vmem>>, vector<64x32xbf16>,
    return
  }
  func.func @transform_0(%arg0: i32) -> (i32, i32) {
    %c0_i32 = arith.constant 0 : i32
    %c0_i32_0 = arith.constant 0 : i32
    return %arg0, %c0_i32 : i32, i32
  }
  func.func @transform_1(%arg0: i32) -> (i32, i32) {
    %c0_i32 = arith.constant 0 : i32
    %c0_i32_0 = arith.constant 0 : i32
    %c0_i32_1 = arith.constant 0 : i32
    return %c0_i32, %c0_i32_0 : i32, i32
  }
  func.func @transform_2(%arg0: i32) -> (i32, i32) {
    %c0_i32 = arith.constant 0 : i32
    %c0_i32_0 = arith.constant 0 : i32
    %c0_i32_1 = arith.constant 0 : i32
    return %c0_i32, %c0_i32_0 : i32, i32
  }
  func.func @transform_3(%arg0: i32) -> (i32, i32) {
    %c0_i32 = arith.constant 0 : i32
    %c0_i32_0 = arith.constant 0 : i32
    %c0_i32_1 = arith.constant 0 : i32
    return %c0_i32, %c0_i32_0 : i32, i32
  }
  func.func @transform_4(%arg0: i32) -> (i32, i32) {
    %c0_i32 = arith.constant 0 : i32
    %c0_i32_0 = arith.constant 0 : i32
    %c0_i32_1 = arith.constant 0 : i32
    return %c0_i32, %c0_i32_0 : i32, i32
  }
  func.func @transform_5(%arg0: i32) -> (i32, i32) {
    %c0_i32 = arith.constant 0 : i32
    %c0_i32_0 = arith.constant 0 : i32
    %c0_i32_1 = arith.constant 0 : i32
    return %c0_i32, %c0_i32_0 : i32, i32
  }
  func.func @transform_6(%arg0: i32) -> (i32, i32) {
    %c0_i32 = arith.constant 0 : i32
    %c0_i32_0 = arith.constant 0 : i32
    %c0_i32_1 = arith.constant 0 : i32
    return %c0_i32, %c0_i32_0 : i32, i32
  }
  func.func @transform_7(%arg0: i32) -> (i32, i32) {
    %c0_i32 = arith.constant 0 : i32
    %c0_i32_0 = arith.constant 0 : i32
    return %arg0, %c0_i32 : i32, i32
  }
}

module attributes {stable_mosaic.version = 11 : i64} {
  func.func @_multi_linear_kernel(%arg0: i32, %arg1: memref<16x32xbf16, #tpu.memory_space<vmem>>, %arg2: memref<32x32xbf16, #tpu.memory_space<vmem>>, %arg3: memref<1x32xf32, #tpu.memory_space<vmem>>, %arg4: memref<16x32xbf16, #tpu.memory_space<vmem>>) attributes {dimension_semantics = [#tpu.dimension_semantics<parallel>], iteration_bounds = array<i64: 1>, scalar_prefetch = 0 : i64, scratch_operands = 0 : i64, tpu.core_type = #tpu.core_type<tc>, window_params = [{transform_indices = @transform_0, window_bounds = array<i64: 16, 32>}, {pipeline_mode = #tpu.pipeline_mode<synchronous>, transform_indices = @transform_1, window_bounds = array<i64: 32, 32>}, {pipeline_mode = #tpu.pipeline_mode<synchronous>, transform_indices = @transform_2, window_bounds = array<i64: 1, 32>}, {transform_indices = @transform_3, window_bounds = array<i64: 16, 32>}]} {
    %c0 = arith.constant 0 : index
    %c0_0 = arith.constant 0 : index
    %0 = vector.load %arg1[%c0, %c0_0] : memref<16x32xbf16, #tpu.memory_space<vmem>>, vector<16x32xbf16>
    %c0_1 = arith.constant 0 : index
    %c0_2 = arith.constant 0 : index
    %1 = vector.load %arg2[%c0_1, %c0_2] : memref<32x32xbf16, #tpu.memory_space<vmem>>, vector<32x32xbf16>
    %cst = arith.constant dense<0.000000e+00> : vector<16x32xf32>
    %2 = tpu.matmul %0, %1, %cst {dimension_numbers = #tpu.dot_dimension_numbers<[1], [0], [0], [1], [0, 0, 1, 1], [], []>} : vector<16x32xbf16>, vector<32x32xbf16>, vector<16x32xf32> -> vector<16x32xf32>
    %c0_3 = arith.constant 0 : index
    %c0_4 = arith.constant 0 : index
    %3 = vector.load %arg3[%c0_3, %c0_4] : memref<1x32xf32, #tpu.memory_space<vmem>>, vector<1x32xf32>
    %4 = vector.broadcast %3 : vector<1x32xf32> to vector<16x32xf32>
    %5 = arith.addf %2, %4 : vector<16x32xf32>
    %6 = arith.truncf %5 : vector<16x32xf32> to vector<16x32xbf16>
    %c0_5 = arith.constant 0 : index
    %c0_6 = arith.constant 0 : index
    %7 = vector.load %arg4[%c0_5, %c0_6] : memref<16x32xbf16, #tpu.memory_space<vmem>>, vector<16x32xbf16>
    tpu.vector_store %arg4[%c0_5, %c0_6], %6 {strides = array<i32>} : memref<16x32xbf16, #tpu.memory_space<vmem>>, vector<16x32xbf16>,
    return
  }
  func.func @transform_0(%arg0: i32) -> (i32, i32) {
    %c0_i32 = arith.constant 0 : i32
    %c0_i32_0 = arith.constant 0 : i32
    return %arg0, %c0_i32 : i32, i32
  }
  func.func @transform_1(%arg0: i32) -> (i32, i32) {
    %c0_i32 = arith.constant 0 : i32
    %c0_i32_0 = arith.constant 0 : i32
    %c0_i32_1 = arith.constant 0 : i32
    return %c0_i32, %c0_i32_0 : i32, i32
  }
  func.func @transform_2(%arg0: i32) -> (i32, i32) {
    %c0_i32 = arith.constant 0 : i32
    %c0_i32_0 = arith.constant 0 : i32
    %c0_i32_1 = arith.constant 0 : i32
    return %c0_i32, %c0_i32_0 : i32, i32
  }
  func.func @transform_3(%arg0: i32) -> (i32, i32) {
    %c0_i32 = arith.constant 0 : i32
    %c0_i32_0 = arith.constant 0 : i32
    return %arg0, %c0_i32 : i32, i32
  }
}

module attributes {stable_mosaic.version = 11 : i64} {
  func.func @_attn_single_kv_kernel(%arg0: i32, %arg1: i32, %arg2: memref<1x16x32xbf16, #tpu.memory_space<vmem>>, %arg3: memref<1x64x32xbf16, #tpu.memory_space<vmem>>, %arg4: memref<1x64x32xbf16, #tpu.memory_space<vmem>>, %arg5: memref<1x16x32xbf16, #tpu.memory_space<vmem>>) attributes {dimension_semantics = [#tpu.dimension_semantics<parallel>, #tpu.dimension_semantics<parallel>], iteration_bounds = array<i64: 2, 1>, scalar_prefetch = 0 : i64, scratch_operands = 0 : i64, tpu.core_type = #tpu.core_type<tc>, window_params = [{transform_indices = @transform_0, window_bounds = array<i64: 1, 16, 32>}, {transform_indices = @transform_1, window_bounds = array<i64: 1, 64, 32>}, {transform_indices = @transform_2, window_bounds = array<i64: 1, 64, 32>}, {transform_indices = @transform_3, window_bounds = array<i64: 1, 16, 32>}]} {
    %c0 = arith.constant 0 : index
    %c0_0 = arith.constant 0 : index
    %c0_1 = arith.constant 0 : index
    %0 = vector.load %arg2[%c0, %c0_0, %c0_1] : memref<1x16x32xbf16, #tpu.memory_space<vmem>>, vector<1x16x32xbf16>
    %1 = vector.shape_cast %0 : vector<1x16x32xbf16> to vector<16x32xbf16>
    %c0_2 = arith.constant 0 : index
    %c0_3 = arith.constant 0 : index
    %c0_4 = arith.constant 0 : index
    %2 = vector.load %arg3[%c0_2, %c0_3, %c0_4] : memref<1x64x32xbf16, #tpu.memory_space<vmem>>, vector<1x64x32xbf16>
    %3 = vector.shape_cast %2 : vector<1x64x32xbf16> to vector<64x32xbf16>
    %c0_5 = arith.constant 0 : index
    %c0_6 = arith.constant 0 : index
    %c0_7 = arith.constant 0 : index
    %4 = vector.load %arg4[%c0_5, %c0_6, %c0_7] : memref<1x64x32xbf16, #tpu.memory_space<vmem>>, vector<1x64x32xbf16>
    %5 = vector.shape_cast %4 : vector<1x64x32xbf16> to vector<64x32xbf16>
    %cst = arith.constant dense<0.000000e+00> : vector<16x64xf32>
    %6 = tpu.matmul %1, %3, %cst {dimension_numbers = #tpu.dot_dimension_numbers<[1], [1], [0], [0], [0, 0, 1, 0], [], []>} : vector<16x32xbf16>, vector<64x32xbf16>, vector<16x64xf32> -> vector<16x64xf32>
    %cst_8 = arith.constant dense<0xFF800000> : vector<16xf32>
    %7 = vector.multi_reduction <maximumf>, %6, %cst_8 [1] : vector<16x64xf32> to vector<16xf32>
    %8 = vector.shape_cast %7 : vector<16xf32> to vector<16x1xf32>
    %9 = vector.broadcast %8 : vector<16x1xf32> to vector<16x64xf32>
    %10 = arith.subf %6, %9 : vector<16x64xf32>
    %11 = math.exp %10 : vector<16x64xf32>
    %cst_9 = arith.constant dense<0.000000e+00> : vector<16xf32>
    %12 = vector.multi_reduction <add>, %11, %cst_9 [1] : vector<16x64xf32> to vector<16xf32>
    %13 = vector.shape_cast %12 : vector<16xf32> to vector<16x1xf32>
    %14 = arith.truncf %11 : vector<16x64xf32> to vector<16x64xbf16>
    %cst_10 = arith.constant dense<0.000000e+00> : vector<16x32xf32>
    %15 = tpu.matmul %14, %5, %cst_10 {dimension_numbers = #tpu.dot_dimension_numbers<[1], [0], [0], [1], [0, 0, 1, 1], [], []>} : vector<16x64xbf16>, vector<64x32xbf16>, vector<16x32xf32> -> vector<16x32xf32>
    %16 = tpu.reciprocal %13 {approx = true} : vector<16x1xf32> -> vector<16x1xf32>
    %17 = vector.broadcast %16 : vector<16x1xf32> to vector<16x32xf32>
    %18 = arith.mulf %15, %17 : vector<16x32xf32>
    %19 = arith.truncf %18 : vector<16x32xf32> to vector<16x32xbf16>
    %c0_11 = arith.constant 0 : index
    %c0_12 = arith.constant 0 : index
    %c0_13 = arith.constant 0 : index
    %20 = vector.load %arg5[%c0_11, %c0_12, %c0_13] : memref<1x16x32xbf16, #tpu.memory_space<vmem>>, vector<1x16x32xbf16>
    %21 = vector.shape_cast %20 : vector<1x16x32xbf16> to vector<16x32xbf16>
    %22 = vector.shape_cast %19 : vector<16x32xbf16> to vector<1x16x32xbf16>
    tpu.vector_store %arg5[%c0_11, %c0_12, %c0_13], %22 {strides = array<i32>} : memref<1x16x32xbf16, #tpu.memory_space<vmem>>, vector<1x16x32xbf16>,
    return
  }
  func.func @transform_0(%arg0: i32, %arg1: i32) -> (i32, i32, i32) {
    %c0_i32 = arith.constant 0 : i32
    %c0_i32_0 = arith.constant 0 : i32
    return %arg0, %arg1, %c0_i32 : i32, i32, i32
  }
  func.func @transform_1(%arg0: i32, %arg1: i32) -> (i32, i32, i32) {
    %c0_i32 = arith.constant 0 : i32
    %c0_i32_0 = arith.constant 0 : i32
    %c0_i32_1 = arith.constant 0 : i32
    return %arg0, %c0_i32, %c0_i32_0 : i32, i32, i32
  }
  func.func @transform_2(%arg0: i32, %arg1: i32) -> (i32, i32, i32) {
    %c0_i32 = arith.constant 0 : i32
    %c0_i32_0 = arith.constant 0 : i32
    %c0_i32_1 = arith.constant 0 : i32
    return %arg0, %c0_i32, %c0_i32_0 : i32, i32, i32
  }
  func.func @transform_3(%arg0: i32, %arg1: i32) -> (i32, i32, i32) {
    %c0_i32 = arith.constant 0 : i32
    %c0_i32_0 = arith.constant 0 : i32
    return %arg0, %arg1, %c0_i32 : i32, i32, i32
  }
}

module attributes {stable_mosaic.version = 11 : i64} {
  func.func @_ffn_ln_kernel(%arg0: i32, %arg1: memref<16x32xbf16, #tpu.memory_space<vmem>>, %arg2: memref<32x64xbf16, #tpu.memory_space<vmem>>, %arg3: memref<1x64xf32, #tpu.memory_space<vmem>>, %arg4: memref<64x32xbf16, #tpu.memory_space<vmem>>, %arg5: memref<1x32xf32, #tpu.memory_space<vmem>>, %arg6: memref<1x32xf32, #tpu.memory_space<vmem>>, %arg7: memref<1x32xf32, #tpu.memory_space<vmem>>, %arg8: memref<16x32xbf16, #tpu.memory_space<vmem>>) attributes {dimension_semantics = [#tpu.dimension_semantics<parallel>], iteration_bounds = array<i64: 1>, scalar_prefetch = 0 : i64, scratch_operands = 0 : i64, tpu.core_type = #tpu.core_type<tc>, window_params = [{transform_indices = @transform_0, window_bounds = array<i64: 16, 32>}, {pipeline_mode = #tpu.pipeline_mode<synchronous>, transform_indices = @transform_1, window_bounds = array<i64: 32, 64>}, {pipeline_mode = #tpu.pipeline_mode<synchronous>, transform_indices = @transform_2, window_bounds = array<i64: 1, 64>}, {pipeline_mode = #tpu.pipeline_mode<synchronous>, transform_indices = @transform_3, window_bounds = array<i64: 64, 32>}, {pipeline_mode = #tpu.pipeline_mode<synchronous>, transform_indices = @transform_4, window_bounds = array<i64: 1, 32>}, {pipeline_mode = #tpu.pipeline_mode<synchronous>, transform_indices = @transform_5, window_bounds = array<i64: 1, 32>}, {pipeline_mode = #tpu.pipeline_mode<synchronous>, transform_indices = @transform_6, window_bounds = array<i64: 1, 32>}, {transform_indices = @transform_7, window_bounds = array<i64: 16, 32>}]} {
    %c0 = arith.constant 0 : index
    %c0_0 = arith.constant 0 : index
    %0 = vector.load %arg1[%c0, %c0_0] : memref<16x32xbf16, #tpu.memory_space<vmem>>, vector<16x32xbf16>
    %c0_1 = arith.constant 0 : index
    %c0_2 = arith.constant 0 : index
    %1 = vector.load %arg2[%c0_1, %c0_2] : memref<32x64xbf16, #tpu.memory_space<vmem>>, vector<32x64xbf16>
    %cst = arith.constant dense<0.000000e+00> : vector<16x64xf32>
    %2 = tpu.matmul %0, %1, %cst {dimension_numbers = #tpu.dot_dimension_numbers<[1], [0], [0], [1], [0, 0, 1, 1], [], []>} : vector<16x32xbf16>, vector<32x64xbf16>, vector<16x64xf32> -> vector<16x64xf32>
    %c0_3 = arith.constant 0 : index
    %c0_4 = arith.constant 0 : index
    %3 = vector.load %arg3[%c0_3, %c0_4] : memref<1x64xf32, #tpu.memory_space<vmem>>, vector<1x64xf32>
    %4 = vector.broadcast %3 : vector<1x64xf32> to vector<16x64xf32>
    %5 = arith.addf %2, %4 : vector<16x64xf32>
    %cst_5 = arith.constant 0.000000e+00 : f32
    %6 = vector.broadcast %cst_5 : f32 to vector<16x64xf32>
    %7 = arith.maximumf %5, %6 : vector<16x64xf32>
    %8 = arith.truncf %7 : vector<16x64xf32> to vector<16x64xbf16>
    %c0_6 = arith.constant 0 : index
    %c0_7 = arith.constant 0 : index
    %9 = vector.load %arg4[%c0_6, %c0_7] : memref<64x32xbf16, #tpu.memory_space<vmem>>, vector<64x32xbf16>
    %cst_8 = arith.constant dense<0.000000e+00> : vector<16x32xf32>
    %10 = tpu.matmul %8, %9, %cst_8 {dimension_numbers = #tpu.dot_dimension_numbers<[1], [0], [0], [1], [0, 0, 1, 1], [], []>} : vector<16x64xbf16>, vector<64x32xbf16>, vector<16x32xf32> -> vector<16x32xf32>
    %c0_9 = arith.constant 0 : index
    %c0_10 = arith.constant 0 : index
    %11 = vector.load %arg5[%c0_9, %c0_10] : memref<1x32xf32, #tpu.memory_space<vmem>>, vector<1x32xf32>
    %12 = vector.broadcast %11 : vector<1x32xf32> to vector<16x32xf32>
    %13 = arith.addf %10, %12 : vector<16x32xf32>
    %14 = arith.extf %0 : vector<16x32xbf16> to vector<16x32xf32>
    %15 = arith.addf %13, %14 : vector<16x32xf32>
    %cst_11 = arith.constant dense<0.000000e+00> : vector<16xf32>
    %16 = vector.multi_reduction <add>, %15, %cst_11 [1] : vector<16x32xf32> to vector<16xf32>
    %17 = vector.shape_cast %16 : vector<16xf32> to vector<16x1xf32>
    %cst_12 = arith.constant 3.200000e+01 : f32
    %18 = vector.broadcast %cst_12 : f32 to vector<16x1xf32>
    %19 = arith.divf %17, %18 : vector<16x1xf32>
    %20 = vector.broadcast %19 : vector<16x1xf32> to vector<16x32xf32>
    %21 = arith.subf %15, %20 : vector<16x32xf32>
    %22 = arith.mulf %21, %21 : vector<16x32xf32>
    %cst_13 = arith.constant dense<0.000000e+00> : vector<16xf32>
    %23 = vector.multi_reduction <add>, %22, %cst_13 [1] : vector<16x32xf32> to vector<16xf32>
    %24 = vector.shape_cast %23 : vector<16xf32> to vector<16x1xf32>
    %cst_14 = arith.constant 3.200000e+01 : f32
    %25 = vector.broadcast %cst_14 : f32 to vector<16x1xf32>
    %26 = arith.divf %24, %25 : vector<16x1xf32>
    %27 = vector.broadcast %19 : vector<16x1xf32> to vector<16x32xf32>
    %28 = arith.subf %15, %27 : vector<16x32xf32>
    %cst_15 = arith.constant 9.99999974E-6 : f32
    %29 = vector.broadcast %cst_15 : f32 to vector<16x1xf32>
    %30 = arith.addf %26, %29 : vector<16x1xf32>
    %31 = math.rsqrt %30 : vector<16x1xf32>
    %32 = vector.broadcast %31 : vector<16x1xf32> to vector<16x32xf32>
    %33 = arith.mulf %28, %32 : vector<16x32xf32>
    %c0_16 = arith.constant 0 : index
    %c0_17 = arith.constant 0 : index
    %34 = vector.load %arg6[%c0_16, %c0_17] : memref<1x32xf32, #tpu.memory_space<vmem>>, vector<1x32xf32>
    %35 = vector.broadcast %34 : vector<1x32xf32> to vector<16x32xf32>
    %36 = arith.mulf %33, %35 : vector<16x32xf32>
    %c0_18 = arith.constant 0 : index
    %c0_19 = arith.constant 0 : index
    %37 = vector.load %arg7[%c0_18, %c0_19] : memref<1x32xf32, #tpu.memory_space<vmem>>, vector<1x32xf32>
    %38 = vector.broadcast %37 : vector<1x32xf32> to vector<16x32xf32>
    %39 = arith.addf %36, %38 : vector<16x32xf32>
    %40 = arith.truncf %39 : vector<16x32xf32> to vector<16x32xbf16>
    %c0_20 = arith.constant 0 : index
    %c0_21 = arith.constant 0 : index
    %41 = vector.load %arg8[%c0_20, %c0_21] : memref<16x32xbf16, #tpu.memory_space<vmem>>, vector<16x32xbf16>
    tpu.vector_store %arg8[%c0_20, %c0_21], %40 {strides = array<i32>} : memref<16x32xbf16, #tpu.memory_space<vmem>>, vector<16x32xbf16>,
    return
  }
  func.func @transform_0(%arg0: i32) -> (i32, i32) {
    %c0_i32 = arith.constant 0 : i32
    %c0_i32_0 = arith.constant 0 : i32
    return %arg0, %c0_i32 : i32, i32
  }
  func.func @transform_1(%arg0: i32) -> (i32, i32) {
    %c0_i32 = arith.constant 0 : i32
    %c0_i32_0 = arith.constant 0 : i32
    %c0_i32_1 = arith.constant 0 : i32
    return %c0_i32, %c0_i32_0 : i32, i32
  }
  func.func @transform_2(%arg0: i32) -> (i32, i32) {
    %c0_i32 = arith.constant 0 : i32
    %c0_i32_0 = arith.constant 0 : i32
    %c0_i32_1 = arith.constant 0 : i32
    return %c0_i32, %c0_i32_0 : i32, i32
  }
  func.func @transform_3(%arg0: i32) -> (i32, i32) {
    %c0_i32 = arith.constant 0 : i32
    %c0_i32_0 = arith.constant 0 : i32
    %c0_i32_1 = arith.constant 0 : i32
    return %c0_i32, %c0_i32_0 : i32, i32
  }
  func.func @transform_4(%arg0: i32) -> (i32, i32) {
    %c0_i32 = arith.constant 0 : i32
    %c0_i32_0 = arith.constant 0 : i32
    %c0_i32_1 = arith.constant 0 : i32
    return %c0_i32, %c0_i32_0 : i32, i32
  }
  func.func @transform_5(%arg0: i32) -> (i32, i32) {
    %c0_i32 = arith.constant 0 : i32
    %c0_i32_0 = arith.constant 0 : i32
    %c0_i32_1 = arith.constant 0 : i32
    return %c0_i32, %c0_i32_0 : i32, i32
  }
  func.func @transform_6(%arg0: i32) -> (i32, i32) {
    %c0_i32 = arith.constant 0 : i32
    %c0_i32_0 = arith.constant 0 : i32
    %c0_i32_1 = arith.constant 0 : i32
    return %c0_i32, %c0_i32_0 : i32, i32
  }
  func.func @transform_7(%arg0: i32) -> (i32, i32) {
    %c0_i32 = arith.constant 0 : i32
    %c0_i32_0 = arith.constant 0 : i32
    return %arg0, %c0_i32 : i32, i32
  }
}

module attributes {stable_mosaic.version = 11 : i64} {
  func.func @_proj_residual_ln_kernel(%arg0: i32, %arg1: memref<16x32xbf16, #tpu.memory_space<vmem>>, %arg2: memref<32x32xbf16, #tpu.memory_space<vmem>>, %arg3: memref<1x32xf32, #tpu.memory_space<vmem>>, %arg4: memref<16x32xbf16, #tpu.memory_space<vmem>>, %arg5: memref<1x32xf32, #tpu.memory_space<vmem>>, %arg6: memref<1x32xf32, #tpu.memory_space<vmem>>, %arg7: memref<16x32xbf16, #tpu.memory_space<vmem>>) attributes {dimension_semantics = [#tpu.dimension_semantics<parallel>], iteration_bounds = array<i64: 1>, scalar_prefetch = 0 : i64, scratch_operands = 0 : i64, tpu.core_type = #tpu.core_type<tc>, window_params = [{transform_indices = @transform_0, window_bounds = array<i64: 16, 32>}, {pipeline_mode = #tpu.pipeline_mode<synchronous>, transform_indices = @transform_1, window_bounds = array<i64: 32, 32>}, {pipeline_mode = #tpu.pipeline_mode<synchronous>, transform_indices = @transform_2, window_bounds = array<i64: 1, 32>}, {transform_indices = @transform_3, window_bounds = array<i64: 16, 32>}, {pipeline_mode = #tpu.pipeline_mode<synchronous>, transform_indices = @transform_4, window_bounds = array<i64: 1, 32>}, {pipeline_mode = #tpu.pipeline_mode<synchronous>, transform_indices = @transform_5, window_bounds = array<i64: 1, 32>}, {transform_indices = @transform_6, window_bounds = array<i64: 16, 32>}]} {
    %c0 = arith.constant 0 : index
    %c0_0 = arith.constant 0 : index
    %0 = vector.load %arg1[%c0, %c0_0] : memref<16x32xbf16, #tpu.memory_space<vmem>>, vector<16x32xbf16>
    %c0_1 = arith.constant 0 : index
    %c0_2 = arith.constant 0 : index
    %1 = vector.load %arg2[%c0_1, %c0_2] : memref<32x32xbf16, #tpu.memory_space<vmem>>, vector<32x32xbf16>
    %cst = arith.constant dense<0.000000e+00> : vector<16x32xf32>
    %2 = tpu.matmul %0, %1, %cst {dimension_numbers = #tpu.dot_dimension_numbers<[1], [0], [0], [1], [0, 0, 1, 1], [], []>} : vector<16x32xbf16>, vector<32x32xbf16>, vector<16x32xf32> -> vector<16x32xf32>
    %c0_3 = arith.constant 0 : index
    %c0_4 = arith.constant 0 : index
    %3 = vector.load %arg3[%c0_3, %c0_4] : memref<1x32xf32, #tpu.memory_space<vmem>>, vector<1x32xf32>
    %4 = vector.broadcast %3 : vector<1x32xf32> to vector<16x32xf32>
    %5 = arith.addf %2, %4 : vector<16x32xf32>
    %c0_5 = arith.constant 0 : index
    %c0_6 = arith.constant 0 : index
    %6 = vector.load %arg4[%c0_5, %c0_6] : memref<16x32xbf16, #tpu.memory_space<vmem>>, vector<16x32xbf16>
    %7 = arith.extf %6 : vector<16x32xbf16> to vector<16x32xf32>
    %8 = arith.addf %5, %7 : vector<16x32xf32>
    %cst_7 = arith.constant dense<0.000000e+00> : vector<16xf32>
    %9 = vector.multi_reduction <add>, %8, %cst_7 [1] : vector<16x32xf32> to vector<16xf32>
    %10 = vector.shape_cast %9 : vector<16xf32> to vector<16x1xf32>
    %cst_8 = arith.constant 3.200000e+01 : f32
    %11 = vector.broadcast %cst_8 : f32 to vector<16x1xf32>
    %12 = arith.divf %10, %11 : vector<16x1xf32>
    %13 = vector.broadcast %12 : vector<16x1xf32> to vector<16x32xf32>
    %14 = arith.subf %8, %13 : vector<16x32xf32>
    %15 = arith.mulf %14, %14 : vector<16x32xf32>
    %cst_9 = arith.constant dense<0.000000e+00> : vector<16xf32>
    %16 = vector.multi_reduction <add>, %15, %cst_9 [1] : vector<16x32xf32> to vector<16xf32>
    %17 = vector.shape_cast %16 : vector<16xf32> to vector<16x1xf32>
    %cst_10 = arith.constant 3.200000e+01 : f32
    %18 = vector.broadcast %cst_10 : f32 to vector<16x1xf32>
    %19 = arith.divf %17, %18 : vector<16x1xf32>
    %20 = vector.broadcast %12 : vector<16x1xf32> to vector<16x32xf32>
    %21 = arith.subf %8, %20 : vector<16x32xf32>
    %cst_11 = arith.constant 9.99999974E-6 : f32
    %22 = vector.broadcast %cst_11 : f32 to vector<16x1xf32>
    %23 = arith.addf %19, %22 : vector<16x1xf32>
    %24 = math.rsqrt %23 : vector<16x1xf32>
    %25 = vector.broadcast %24 : vector<16x1xf32> to vector<16x32xf32>
    %26 = arith.mulf %21, %25 : vector<16x32xf32>
    %c0_12 = arith.constant 0 : index
    %c0_13 = arith.constant 0 : index
    %27 = vector.load %arg5[%c0_12, %c0_13] : memref<1x32xf32, #tpu.memory_space<vmem>>, vector<1x32xf32>
    %28 = vector.broadcast %27 : vector<1x32xf32> to vector<16x32xf32>
    %29 = arith.mulf %26, %28 : vector<16x32xf32>
    %c0_14 = arith.constant 0 : index
    %c0_15 = arith.constant 0 : index
    %30 = vector.load %arg6[%c0_14, %c0_15] : memref<1x32xf32, #tpu.memory_space<vmem>>, vector<1x32xf32>
    %31 = vector.broadcast %30 : vector<1x32xf32> to vector<16x32xf32>
    %32 = arith.addf %29, %31 : vector<16x32xf32>
    %33 = arith.truncf %32 : vector<16x32xf32> to vector<16x32xbf16>
    %c0_16 = arith.constant 0 : index
    %c0_17 = arith.constant 0 : index
    %34 = vector.load %arg7[%c0_16, %c0_17] : memref<16x32xbf16, #tpu.memory_space<vmem>>, vector<16x32xbf16>
    tpu.vector_store %arg7[%c0_16, %c0_17], %33 {strides = array<i32>} : memref<16x32xbf16, #tpu.memory_space<vmem>>, vector<16x32xbf16>,
    return
  }
  func.func @transform_0(%arg0: i32) -> (i32, i32) {
    %c0_i32 = arith.constant 0 : i32
    %c0_i32_0 = arith.constant 0 : i32
    return %arg0, %c0_i32 : i32, i32
  }
  func.func @transform_1(%arg0: i32) -> (i32, i32) {
    %c0_i32 = arith.constant 0 : i32
    %c0_i32_0 = arith.constant 0 : i32
    %c0_i32_1 = arith.constant 0 : i32
    return %c0_i32, %c0_i32_0 : i32, i32
  }
  func.func @transform_2(%arg0: i32) -> (i32, i32) {
    %c0_i32 = arith.constant 0 : i32
    %c0_i32_0 = arith.constant 0 : i32
    %c0_i32_1 = arith.constant 0 : i32
    return %c0_i32, %c0_i32_0 : i32, i32
  }
  func.func @transform_3(%arg0: i32) -> (i32, i32) {
    %c0_i32 = arith.constant 0 : i32
    %c0_i32_0 = arith.constant 0 : i32
    return %arg0, %c0_i32 : i32, i32
  }
  func.func @transform_4(%arg0: i32) -> (i32, i32) {
    %c0_i32 = arith.constant 0 : i32
    %c0_i32_0 = arith.constant 0 : i32
    %c0_i32_1 = arith.constant 0 : i32
    return %c0_i32, %c0_i32_0 : i32, i32
  }
  func.func @transform_5(%arg0: i32) -> (i32, i32) {
    %c0_i32 = arith.constant 0 : i32
    %c0_i32_0 = arith.constant 0 : i32
    %c0_i32_1 = arith.constant 0 : i32
    return %c0_i32, %c0_i32_0 : i32, i32
  }
  func.func @transform_6(%arg0: i32) -> (i32, i32) {
    %c0_i32 = arith.constant 0 : i32
    %c0_i32_0 = arith.constant 0 : i32
    return %arg0, %c0_i32 : i32, i32
  }
}

module attributes {stable_mosaic.version = 11 : i64} {
  func.func @_heads_kernel(%arg0: i32, %arg1: memref<16x32xbf16, #tpu.memory_space<vmem>>, %arg2: memref<32x160xf32, #tpu.memory_space<vmem>>, %arg3: memref<1x160xf32, #tpu.memory_space<vmem>>, %arg4: memref<32x128xf32, #tpu.memory_space<vmem>>, %arg5: memref<1x128xf32, #tpu.memory_space<vmem>>, %arg6: memref<16x128xf32, #tpu.memory_space<vmem>>, %arg7: memref<16x128xf32, #tpu.memory_space<vmem>>) attributes {dimension_semantics = [#tpu.dimension_semantics<parallel>], iteration_bounds = array<i64: 1>, scalar_prefetch = 0 : i64, scratch_operands = 0 : i64, tpu.core_type = #tpu.core_type<tc>, window_params = [{transform_indices = @transform_0, window_bounds = array<i64: 16, 32>}, {pipeline_mode = #tpu.pipeline_mode<synchronous>, transform_indices = @transform_1, window_bounds = array<i64: 32, 160>}, {pipeline_mode = #tpu.pipeline_mode<synchronous>, transform_indices = @transform_2, window_bounds = array<i64: 1, 160>}, {pipeline_mode = #tpu.pipeline_mode<synchronous>, transform_indices = @transform_3, window_bounds = array<i64: 32, 128>}, {pipeline_mode = #tpu.pipeline_mode<synchronous>, transform_indices = @transform_4, window_bounds = array<i64: 1, 128>}, {transform_indices = @transform_5, window_bounds = array<i64: 16, 128>}, {transform_indices = @transform_6, window_bounds = array<i64: 16, 128>}]} {
    %c0 = arith.constant 0 : index
    %c0_0 = arith.constant 0 : index
    %0 = vector.load %arg1[%c0, %c0_0] : memref<16x32xbf16, #tpu.memory_space<vmem>>, vector<16x32xbf16>
    %1 = arith.extf %0 : vector<16x32xbf16> to vector<16x32xf32>
    %c0_1 = arith.constant 0 : index
    %c0_2 = arith.constant 0 : index
    %2 = vector.load %arg2[%c0_1, %c0_2] : memref<32x160xf32, #tpu.memory_space<vmem>>, vector<32x160xf32>
    %cst = arith.constant dense<0.000000e+00> : vector<16x160xf32>
    %3 = tpu.matmul %1, %2, %cst {dimension_numbers = #tpu.dot_dimension_numbers<[1], [0], [0], [1], [0, 0, 1, 1], [], []>} : vector<16x32xf32>, vector<32x160xf32>, vector<16x160xf32> -> vector<16x160xf32>
    %c0_3 = arith.constant 0 : index
    %c0_4 = arith.constant 0 : index
    %4 = vector.load %arg3[%c0_3, %c0_4] : memref<1x160xf32, #tpu.memory_space<vmem>>, vector<1x160xf32>
    %5 = vector.broadcast %4 : vector<1x160xf32> to vector<16x160xf32>
    %6 = arith.addf %3, %5 : vector<16x160xf32>
    %7 = vector.extract_strided_slice %6 {offsets = [0, 0], sizes = [16, 128], strides = [1, 1]} : vector<16x160xf32> to vector<16x128xf32>
    %8 = vector.extract_strided_slice %6 {offsets = [0, 128], sizes = [16, 32], strides = [1, 1]} : vector<16x160xf32> to vector<16x32xf32>
    %cst_5 = arith.constant 0.000000e+00 : f32
    %9 = vector.broadcast %cst_5 : f32 to vector<16x32xf32>
    %10 = arith.maximumf %8, %9 : vector<16x32xf32>
    %c0_6 = arith.constant 0 : index
    %c0_7 = arith.constant 0 : index
    %11 = vector.load %arg4[%c0_6, %c0_7] : memref<32x128xf32, #tpu.memory_space<vmem>>, vector<32x128xf32>
    %cst_8 = arith.constant dense<0.000000e+00> : vector<16x128xf32>
    %12 = tpu.matmul %10, %11, %cst_8 {dimension_numbers = #tpu.dot_dimension_numbers<[1], [0], [0], [1], [0, 0, 1, 1], [], []>} : vector<16x32xf32>, vector<32x128xf32>, vector<16x128xf32> -> vector<16x128xf32>
    %c0_9 = arith.constant 0 : index
    %c0_10 = arith.constant 0 : index
    %13 = vector.load %arg5[%c0_9, %c0_10] : memref<1x128xf32, #tpu.memory_space<vmem>>, vector<1x128xf32>
    %14 = vector.broadcast %13 : vector<1x128xf32> to vector<16x128xf32>
    %15 = arith.addf %12, %14 : vector<16x128xf32>
    %16 = arith.negf %15 : vector<16x128xf32>
    %17 = math.exp %16 : vector<16x128xf32>
    %cst_11 = arith.constant 1.000000e+00 : f32
    %18 = vector.broadcast %cst_11 : f32 to vector<16x128xf32>
    %19 = arith.addf %18, %17 : vector<16x128xf32>
    %20 = arith.divf %18, %19 : vector<16x128xf32>
    %c0_12 = arith.constant 0 : index
    %c0_13 = arith.constant 0 : index
    %21 = vector.load %arg6[%c0_12, %c0_13] : memref<16x128xf32, #tpu.memory_space<vmem>>, vector<16x128xf32>
    tpu.vector_store %arg6[%c0_12, %c0_13], %7 {strides = array<i32>} : memref<16x128xf32, #tpu.memory_space<vmem>>, vector<16x128xf32>,
    %c0_14 = arith.constant 0 : index
    %c0_15 = arith.constant 0 : index
    %22 = vector.load %arg7[%c0_14, %c0_15] : memref<16x128xf32, #tpu.memory_space<vmem>>, vector<16x128xf32>
    tpu.vector_store %arg7[%c0_14, %c0_15], %20 {strides = array<i32>} : memref<16x128xf32, #tpu.memory_space<vmem>>, vector<16x128xf32>,
    return
  }
  func.func @transform_0(%arg0: i32) -> (i32, i32) {
    %c0_i32 = arith.constant 0 : i32
    %c0_i32_0 = arith.constant 0 : i32
    return %arg0, %c0_i32 : i32, i32
  }
  func.func @transform_1(%arg0: i32) -> (i32, i32) {
    %c0_i32 = arith.constant 0 : i32
    %c0_i32_0 = arith.constant 0 : i32
    %c0_i32_1 = arith.constant 0 : i32
    return %c0_i32, %c0_i32_0 : i32, i32
  }
  func.func @transform_2(%arg0: i32) -> (i32, i32) {
    %c0_i32 = arith.constant 0 : i32
    %c0_i32_0 = arith.constant 0 : i32
    %c0_i32_1 = arith.constant 0 : i32
    return %c0_i32, %c0_i32_0 : i32, i32
  }
  func.func @transform_3(%arg0: i32) -> (i32, i32) {
    %c0_i32 = arith.constant 0 : i32
    %c0_i32_0 = arith.constant 0 : i32
    %c0_i32_1 = arith.constant 0 : i32
    return %c0_i32, %c0_i32_0 : i32, i32
  }
  func.func @transform_4(%arg0: i32) -> (i32, i32) {
    %c0_i32 = arith.constant 0 : i32
    %c0_i32_0 = arith.constant 0 : i32
    %c0_i32_1 = arith.constant 0 : i32
    return %c0_i32, %c0_i32_0 : i32, i32
  }
  func.func @transform_5(%arg0: i32) -> (i32, i32) {
    %c0_i32 = arith.constant 0 : i32
    %c0_i32_0 = arith.constant 0 : i32
    return %arg0, %c0_i32 : i32, i32
  }
  func.func @transform_6(%arg0: i32) -> (i32, i32) {
    %c0_i32 = arith.constant 0 : i32
    %c0_i32_0 = arith.constant 0 : i32
    return %arg0, %c0_i32 : i32, i32
  }
}

</mosaic_0001>

<bundles_post_ra>
// kernel: rtdetr_forward.12
= control target key start
LH: loop header
LB: loop body
LE: loop exit
PB: predicated region body
PF: predicated region fallthrough
CT: control target
= control target key end

     0   :  { %s877_s30 = smov 0   ;;  %s1029_s0 = inlined_call_operand.vmem [shape: bf16[128,32], index: 0, kind: input, shape index: {}]   ;;  %s1030_s1 = inlined_call_operand.vmem [shape: bf16[32,32], index: 1, kind: input, shape index: {}]   ;;  %s1031_s2 = inlined_call_operand.vmem [shape: bf16[32,32], index: 2, kind: input, shape index: {}]   ;;  %s1032_s3 = inlined_call_operand.vmem [shape: bf16[32,32], index: 3, kind: input, shape index: {}]   ;;  %s1033_s4 = inlined_call_operand.vmem [shape: f32[1,32], index: 4, kind: input, shape index: {}]   ;;  %s1034_s5 = inlined_call_operand.vmem [shape: f32[1,32], index: 5, kind: input, shape index: {}]   ;;  %s1035_s6 = inlined_call_operand.vmem [shape: f32[1,32], index: 6, kind: input, shape index: {}]   ;;  %s1036_s7 = inlined_call_operand.vmem [shape: bf16[128,32], index: 7, kind: output, shape index: {0}]   ;;  %s1037_s8 = inlined_call_operand.vmem [shape: bf16[128,32], index: 8, kind: output, shape index: {1}]   ;;  %s1038_s9 = inlined_call_operand.vmem [shape: bf16[128,32], index: 9, kind: output, shape index: {2}]  }
   0x1 LB: > { %s725_s10 = sadd.s32 4294967295, %s825_s30   ;;  %p729_p0 = scmp.ge.s32.totalorder %s825_s30, 1  ;;  %s825_s30 = sphi %s877_s30, %s20_s30  }
   0x2   : > { %p293_p1 = scmp.lt.s32.totalorder %s825_s30, 3 }
   0x4   : > { %p294_p2 = pnand %p729_p0, %p293_p1 }
   0x5   : > { %s730_s17 = sshll.u32 (!%p294_p2), %s725_s10, 3 }
   0x6   : > { %297 = sbr.rel (%p294_p2) target bundleno = 198 (0xc6), region = 48  ;;  %p340_p3 = scmp.lt.s32.totalorder (!%p294_p2), %s730_s17, 15 }
   0xb   : > { %v797_v0 = vld [vmem:[%s1030_s1 + $0x8] sm:$0xff]  ;;  %v796_v3 = vld [vmem:[%s1030_s1] sm:$0xff]  ;;  %s1040_s17 = smov (!%p340_p3, %s730_s17), 15  ;;  %vm412_vm0 = vcmask 261120   ;;  %vm462_vm1 = vcmask 257024  }
   0xc   : > { %v799_v1 = vld [vmem:[%s1031_s2 + $0x8] sm:$0xff]  ;;  %431 = vmatpush.bf16.msra.mxu0 %v797_v0  ;;  %802 = vmatpush.bf16.msra.mxu3 %v797_v0  ;;  %v798_v4 = vld [vmem:[%s1031_s2] sm:$0xff]  ;;  %s903_s24 = sshll.u32 %s1040_s17, 2 }
   0xd   : > { %v801_v2 = vld [vmem:[%s1032_s3 + $0x8] sm:$0xff]  ;;  %804 = vmatpush.bf16.msra.mxu1 %v799_v1  ;;  %v800_v5 = vld [vmem:[%s1032_s3] sm:$0xff]  ;;  %s343_s27 = scalar_lea.vmem %s1029_s0, %s903_s24  ;;  %s936_s14 = scalar_lea.vmem %s1036_s7, %s903_s24 }
   0xe   : > { %806 = vmatpush.bf16.msra.mxu2 %v801_v2  ;;  %v792_v6 = vld [vmem:[%s343_s27] sm:$0xff]  ;;  %v793_v7 = vld [vmem:[%s343_s27 + $0x8] sm:$0xff]  ;;  %v794_v8 = vld [vmem:[%s343_s27 + $0x10] sm:$0xff]  ;;  %s943_s17 = scalar_lea.vmem %s1037_s8, %s903_s24  ;;  %s960_s22 = scalar_lea.vmem %s1038_s9, %s903_s24 }
   0xf   : > { %v795_v9 = vld [vmem:[%s343_s27 + $0x18] sm:$0xff]  ;;  %v924_v10 = vld [vmem:[%s1033_s4] ss:$0 sm:$0xff] }
  0x10   : > { %432 = vmatpush.bf16.msra.mxu0 %v796_v3  ;;  %803 = vmatpush.bf16.msra.mxu3 %v796_v3  ;;  %v929_v11 = vld [vmem:[%s1034_s5] ss:$0 sm:$0xff] }
  0x11   : > { %805 = vmatpush.bf16.msra.mxu1 %v798_v4  ;;  %v948_v18 = vld [vmem:[%s1035_s6] ss:$0 sm:$0xff] }
  0x12   : > { %807 = vmatpush.bf16.msra.mxu2 %v800_v5 }
  0x13   : > { %762 = vmatmul.msk.bf16.vlgmr.msra.gmra.mxu0 %vm412_vm0, %v792_v6  ;;  %763 = vmatmul.msk.bf16.vlgmr.msra.gmra.mxu3 %vm412_vm0, %v793_v7 }
  0x14   : > { %497 = vmatpush.bf16.msrb.mxu0 %v799_v1  ;;  %775 = vmatmul.msk.bf16.vlgmr.msra.gmra.mxu1 %vm412_vm0, %v793_v7 }
  0x15   : > { %787 = vmatmul.msk.bf16.vlgmr.msra.gmra.mxu2 %vm412_vm0, %v793_v7 }
  0x18   : > { %498 = vmatpush.bf16.msrb.mxu0 %v798_v4 }
  0x1c   : > { %562 = vmatpush.bf16.msra.mxu0 %v801_v2 }
  0x20   : > { %563 = vmatpush.bf16.msra.mxu0 %v800_v5 }
  0x23   : > { %764 = vmatmul.msk.bf16.gmra.mxu3 %vm412_vm0, %v794_v8  ;;  %774 = vmatmul.msk.bf16.vlgmr.msrb.gmra.mxu0 %vm412_vm0, %v792_v6 }
  0x24   : > { %776 = vmatmul.msk.bf16.gmra.mxu1 %vm412_vm0, %v794_v8 }
  0x25   : > { %788 = vmatmul.msk.bf16.gmra.mxu2 %vm412_vm0, %v794_v8 }
  0x33   : > { %765 = vmatmul.msk.bf16.gmra.mxu3 %vm412_vm0, %v795_v9  ;;  %786 = vmatmul.msk.bf16.vlgmr.msra.gmra.mxu0 %vm412_vm0, %v792_v6 }
  0x34   : > { %777 = vmatmul.msk.bf16.gmra.mxu1 %vm412_vm0, %v795_v9 }
  0x35   : > { %789 = vmatmul.msk.bf16.gmra.mxu2 %vm412_vm0, %v795_v9 }
  0x90   : > { %v434_v12 = vpop.f32.mrf.mxu0 }
  0x91   : > { %v435_v13 = vadd.f32 %v924_v10, %v434_v12  ;;  %v505_v14 = vpop.f32.mrf.mxu1 }
  0x92   : > { %v506_v15 = vadd.f32 %v929_v11, %v505_v14 }
  0x93   : > { %v454_v16 = vpack.c.bf16 %v435_v13, %v435_v13 }
  0x94   : > { %v522_v17 = vpack.c.bf16 %v506_v15, %v506_v15 }
  0x95   : > { %463 = vst.msk [vmem:[%s936_s14] sm:$0xf] %vm462_vm1, %v454_v16 }
  0x96   : > { %530 = vst.msk [vmem:[%s943_s17 + $0x8] sm:$0xf] %vm462_vm1, %v522_v17  ;;  %v439_v19 = vpop.f32.mrf.mxu3 }
  0x97   : > { %v440_v20 = vadd.f32 %v924_v10, %v439_v19 }
  0x98   : > { %v570_v21 = vpop.f32.mrf.mxu2  ;;  %v436_v23 = vpop.f32.mrf.mxu0 }
  0x99   : > { %v571_v22 = vadd.f32 %v948_v18, %v570_v21  ;;  %v456_v24 = vpack.c.bf16 %v440_v20, %v440_v20  ;;  %v437_v25 = vadd.f32 %v924_v10, %v436_v23  ;;  %v507_v26 = vpop.f32.mrf.mxu1 }
  0x9a   : > { %v508_v28 = vadd.f32 %v929_v11, %v507_v26 }
  0x9b   : > { %v587_v27 = vpack.c.bf16 %v571_v22, %v571_v22  ;;  %465 = vst.msk [vmem:[%s936_s14 + $0x8] sm:$0xf] %vm462_vm1, %v456_v24  ;;  %v455_v29 = vpack.c.bf16 %v437_v25, %v437_v25 }
  0x9c   : > { %v523_v30 = vpack.c.bf16 %v508_v28, %v508_v28 }
  0x9d   : > { %595 = vst.msk [vmem:[%s960_s22 + $0x8] sm:$0xf] %vm462_vm1, %v587_v27 }
  0x9e   : > { %464 = vst.msk [vmem:[%s936_s14 + $0x4] sm:$0xf] %vm462_vm1, %v455_v29  ;;  %v441_v31 = vpop.f32.mrf.mxu3 }
  0x9f   : > { %531 = vst.msk [vmem:[%s943_s17 + $0xc] sm:$0xf] %vm462_vm1, %v523_v30  ;;  %v442_v32 = vadd.f32 %v924_v10, %v441_v31 }
  0xa0   : > { %v572_v33 = vpop.f32.mrf.mxu2  ;;  %v500_v35 = vpop.f32.mrf.mxu0 }
  0xa1   : > { %v573_v34 = vadd.f32 %v948_v18, %v572_v33  ;;  %v457_v36 = vpack.c.bf16 %v442_v32, %v442_v32  ;;  %v501_v37 = vadd.f32 %v929_v11, %v500_v35  ;;  %v510_v38 = vpop.f32.mrf.mxu1 }
  0xa2   : > { %v511_v40 = vadd.f32 %v929_v11, %v510_v38 }
  0xa3   : > { %v588_v39 = vpack.c.bf16 %v573_v34, %v573_v34  ;;  %466 = vst.msk [vmem:[%s936_s14 + $0xc] sm:$0xf] %vm462_vm1, %v457_v36  ;;  %v520_v41 = vpack.c.bf16 %v501_v37, %v501_v37 }
  0xa4   : > { %v524_v42 = vpack.c.bf16 %v511_v40, %v511_v40 }
  0xa5   : > { %596 = vst.msk [vmem:[%s960_s22 + $0xc] sm:$0xf] %vm462_vm1, %v588_v39 }
  0xa6   : > { %528 = vst.msk [vmem:[%s943_s17] sm:$0xf] %vm462_vm1, %v520_v41  ;;  %v444_v43 = vpop.f32.mrf.mxu3 }
  0xa7   : > { %532 = vst.msk [vmem:[%s943_s17 + $0x10] sm:$0xf] %vm462_vm1, %v524_v42  ;;  %v445_v44 = vadd.f32 %v924_v10, %v444_v43 }
  0xa8   : > { %v575_v45 = vpop.f32.mrf.mxu2  ;;  %v502_v47 = vpop.f32.mrf.mxu0 }
  0xa9   : > { %v576_v46 = vadd.f32 %v948_v18, %v575_v45  ;;  %v458_v48 = vpack.c.bf16 %v445_v44, %v445_v44  ;;  %v503_v49 = vadd.f32 %v929_v11, %v502_v47  ;;  %v512_v50 = vpop.f32.mrf.mxu1 }
  0xaa   : > { %v513_v52 = vadd.f32 %v929_v11, %v512_v50 }
  0xab   : > { %v589_v51 = vpack.c.bf16 %v576_v46, %v576_v46  ;;  %467 = vst.msk [vmem:[%s936_s14 + $0x10] sm:$0xf] %vm462_vm1, %v458_v48  ;;  %v521_v53 = vpack.c.bf16 %v503_v49, %v503_v49 }
  0xac   : > { %v525_v54 = vpack.c.bf16 %v513_v52, %v513_v52 }
  0xad   : > { %597 = vst.msk [vmem:[%s960_s22 + $0x10] sm:$0xf] %vm462_vm1, %v589_v51 }
  0xae   : > { %529 = vst.msk [vmem:[%s943_s17 + $0x4] sm:$0xf] %vm462_vm1, %v521_v53  ;;  %v446_v55 = vpop.f32.mrf.mxu3 }
  0xaf   : > { %533 = vst.msk [vmem:[%s943_s17 + $0x14] sm:$0xf] %vm462_vm1, %v525_v54  ;;  %v447_v56 = vadd.f32 %v924_v10, %v446_v55 }
  0xb0   : > { %v577_v57 = vpop.f32.mrf.mxu2  ;;  %v565_v59 = vpop.f32.mrf.mxu0 }
  0xb1   : > { %v578_v58 = vadd.f32 %v948_v18, %v577_v57  ;;  %v459_v60 = vpack.c.bf16 %v447_v56, %v447_v56  ;;  %v515_v61 = vpop.f32.mrf.mxu1  ;;  %v566_v62 = vadd.f32 %v948_v18, %v565_v59 }
  0xb2   : > { %v516_v0 = vadd.f32 %v929_v11, %v515_v61 }
  0xb3   : > { %v590_v63 = vpack.c.bf16 %v578_v58, %v578_v58  ;;  %468 = vst.msk [vmem:[%s936_s14 + $0x14] sm:$0xf] %vm462_vm1, %v459_v60  ;;  %v585_v1 = vpack.c.bf16 %v566_v62, %v566_v62 }
  0xb4   : > { %v526_v2 = vpack.c.bf16 %v516_v0, %v516_v0 }
  0xb5   : > { %598 = vst.msk [vmem:[%s960_s22 + $0x14] sm:$0xf] %vm462_vm1, %v590_v63 }
  0xb6   : > { %593 = vst.msk [vmem:[%s960_s22] sm:$0xf] %vm462_vm1, %v585_v1  ;;  %v449_v3 = vpop.f32.mrf.mxu3 }
  0xb7   : > { %534 = vst.msk [vmem:[%s943_s17 + $0x18] sm:$0xf] %vm462_vm1, %v526_v2  ;;  %v450_v4 = vadd.f32 %v924_v10, %v449_v3 }
  0xb8   : > { %v580_v5 = vpop.f32.mrf.mxu2  ;;  %v567_v7 = vpop.f32.mrf.mxu0 }
  0xb9   : > { %v581_v6 = vadd.f32 %v948_v18, %v580_v5  ;;  %v460_v8 = vpack.c.bf16 %v450_v4, %v450_v4  ;;  %v517_v9 = vpop.f32.mrf.mxu1  ;;  %v568_v12 = vadd.f32 %v948_v18, %v567_v7 }
  0xba   : > { %v518_v14 = vadd.f32 %v929_v11, %v517_v9 }
  0xbb   : > { %v591_v13 = vpack.c.bf16 %v581_v6, %v581_v6  ;;  %469 = vst.msk [vmem:[%s936_s14 + $0x18] sm:$0xf] %vm462_vm1, %v460_v8  ;;  %v586_v15 = vpack.c.bf16 %v568_v12, %v568_v12 }
  0xbc   : > { %v527_v16 = vpack.c.bf16 %v518_v14, %v518_v14 }
  0xbd   : > { %599 = vst.msk [vmem:[%s960_s22 + $0x18] sm:$0xf] %vm462_vm1, %v591_v13 }
  0xbe   : > { %594 = vst.msk [vmem:[%s960_s22 + $0x4] sm:$0xf] %vm462_vm1, %v586_v15  ;;  %v451_v17 = vpop.f32.mrf.mxu3 }
  0xbf   : > { %535 = vst.msk [vmem:[%s943_s17 + $0x1c] sm:$0xf] %vm462_vm1, %v527_v16  ;;  %v452_v19 = vadd.f32 %v924_v10, %v451_v17 }
  0xc0   : > { %v582_v20 = vpop.f32.mrf.mxu2 }
  0xc1   : > { %v583_v21 = vadd.f32 %v948_v18, %v582_v20  ;;  %v461_v22 = vpack.c.bf16 %v452_v19, %v452_v19 }
  0xc3   : > { %v592_v23 = vpack.c.bf16 %v583_v21, %v583_v21  ;;  %470 = vst.msk [vmem:[%s936_s14 + $0x1c] sm:$0xf] %vm462_vm1, %v461_v22 }
  0xc5   : > { %600 = vst.msk [vmem:[%s960_s22 + $0x1c] sm:$0xf] %vm462_vm1, %v592_v23 }
  0xc6 PF: > { %s20_s30 = sadd.s32 1, %s825_s30  }
  0xc7   : > { %p17_p4 = scmp.ge.s32.totalorder %s20_s30, 4  }
  0xc9   :  { %19 = sbr.rel (!%p17_p4) target bundleno = 1 (0x1), region = 102 }

// kernel: rtdetr_forward.11
= control target key start
LH: loop header
LB: loop body
LE: loop exit
PB: predicated region body
PF: predicated region fallthrough
CT: control target
= control target key end

     0   :  { %s938_s18 = smov 0   ;;  %s940_s19 = smov 0   ;;  %s1047_s0 = inlined_call_operand.vmem [shape: bf16[2,8,8,12], index: 0, kind: input, shape index: {}]   ;;  %s1048_s1 = inlined_call_operand.vmem [shape: bf16[2,8,8,12], index: 1, kind: input, shape index: {}]   ;;  %s1049_s2 = inlined_call_operand.vmem [shape: bf16[2,8,8,12], index: 2, kind: input, shape index: {}]   ;;  %s1050_s3 = inlined_call_operand.vmem [shape: bf16[3,12,32], index: 3, kind: input, shape index: {}]   ;;  %s1051_s4 = inlined_call_operand.vmem [shape: f32[1,32], index: 4, kind: input, shape index: {}]   ;;  %s1052_s5 = inlined_call_operand.vmem [shape: bf16[2,8,8,32], index: 5, kind: output, shape index: {}]  }
   0x1   :  { %s942_s20 = smov 0  }
   0x2 LB: > { %s27_s21 = sadd.s32 1, %s902_s19  ;;  %p750_p0 = scmp.ge.s32.totalorder %s906_s20, 1  ;;  %s906_s20 = sphi %s942_s20, %s15_s20   ;;  %s902_s19 = sphi %s940_s19, %s1054_s19   ;;  %s898_s18 = sphi %s938_s18, %s1053_s18  }
   0x3   : > { %p29_p1 = scmp.ge.s32.totalorder %s27_s21, 2  ;;  %p242_p2 = scmp.lt.s32.totalorder %s906_s20, 3 }
   0x5   : > { %s1056_s21 = smov (%p29_p1, %s27_s21), 0  ;;  %p243_p3 = pnand %p750_p0, %p242_p2 }
   0x6   : > { %p297_p4 = scmp.lt.s32.totalorder (!%p243_p3), %s898_s18, 1 }
   0x7   : > { %246 = sbr.rel (%p243_p3) target bundleno = 202 (0xca), region = 40 }
   0xc   : > { %v779_v0 = vld [vmem:[%s1050_s3 + $0x8] sm:$0xf]  ;;  %v854_v1 = vld [vmem:[%s1050_s3 + $0x8] sm:$0x30]  ;;  %vm404_vm0 = vcmask 1045504   ;;  %s1058_s18 = smov (!%p297_p4, %s898_s18), 1 }
   0xd   : > { %v780_v2 = vor.u32 %v854_v1, %v779_v0  ;;  %v803_v3 = vld [vmem:[%s1050_s3] sm:$0xf]  ;;  %v853_v4 = vld [vmem:[%s1050_s3] sm:$0x30]  ;;  %v829_v5 = vld [vmem:[%s1050_s3 + $0x10] sm:$0xf] }
   0xe   : > { %v804_v6 = vor.u32 %v853_v4, %v803_v3  ;;  %v855_v7 = vld [vmem:[%s1050_s3 + $0x10] sm:$0x30]  ;;  %s976_s9 = sshll.u32 %s1058_s18, 5  ;;  %vm391_vm1 = vcmask 97280   ;;  %v1006_v29 = vld [vmem:[%s1051_s4] ss:$0 sm:$0xff] }
   0xf   : > { %v406_v8 = vsel %vm404_vm0, %v780_v2, 0  ;;  %v830_v9 = vor.u32 %v855_v7, %v829_v5  ;;  %s314_s12 = scalar_lea.vmem %s1048_s1, %s976_s9  ;;  %s304_s15 = scalar_lea.vmem %s1047_s0, %s976_s9  ;;  %vm614_vm2 = vcmask 257024  }
  0x10   : > { %415 = vmatpush.bf16.msra.mxu0 %v406_v8  ;;  %856 = vmatpush.bf16.msra.mxu3 %v406_v8  ;;  %v475_v10 = vsel %vm404_vm0, %v804_v6, 0  ;;  %v845_v12 = vld [vmem:[%s314_s12] sm:$0xff]  ;;  %v846_v13 = vld [vmem:[%s314_s12 + $0x8] sm:$0xff]  ;;  %s324_s18 = scalar_lea.vmem %s1049_s2, %s976_s9  ;;  %v847_v16 = vld [vmem:[%s314_s12 + $0x10] sm:$0xff]  ;;  %s1013_s26 = scalar_lea.vmem %s1052_s5, %s976_s9 }
  0x11   : > { %857 = vmatpush.bf16.msra.mxu1 %v475_v10  ;;  %v547_v11 = vsel %vm404_vm0, %v830_v9, 0  ;;  %v842_v14 = vld [vmem:[%s304_s15 + $0x8] sm:$0xff]  ;;  %v841_v17 = vld [vmem:[%s304_s15] sm:$0xff]  ;;  %v843_v18 = vld [vmem:[%s304_s15 + $0x10] sm:$0xff] }
  0x12   : > { %858 = vmatpush.bf16.msra.mxu2 %v547_v11  ;;  %v850_v15 = vld [vmem:[%s324_s18 + $0x8] sm:$0xff]  ;;  %v851_v19 = vld [vmem:[%s324_s18 + $0x10] sm:$0xff]  ;;  %v848_v20 = vld [vmem:[%s314_s12 + $0x18] sm:$0xff] }
  0x13   : > { %781 = vmatmul.msk.bf16.vlgmr.msra.gmra.mxu0 %vm391_vm1, %v845_v12  ;;  %782 = vmatmul.msk.bf16.vlgmr.msra.gmra.mxu3 %vm391_vm1, %v846_v13  ;;  %v849_v21 = vld [vmem:[%s324_s18] sm:$0xff]  ;;  %v844_v22 = vld [vmem:[%s304_s15 + $0x18] sm:$0xff] }
  0x14   : > { %484 = vmatpush.bf16.msrb.mxu0 %v475_v10  ;;  %806 = vmatmul.msk.bf16.vlgmr.msra.gmra.mxu1 %vm391_vm1, %v842_v14  ;;  %v852_v23 = vld [vmem:[%s324_s18 + $0x18] sm:$0xff] }
  0x15   : > { %832 = vmatmul.msk.bf16.vlgmr.msra.gmra.mxu2 %vm391_vm1, %v850_v15 }
  0x18   : > { %556 = vmatpush.bf16.msra.mxu0 %v547_v11 }
  0x23   : > { %783 = vmatmul.msk.bf16.gmra.mxu3 %vm391_vm1, %v847_v16  ;;  %805 = vmatmul.msk.bf16.vlgmr.msrb.gmra.mxu0 %vm391_vm1, %v841_v17 }
  0x24   : > { %807 = vmatmul.msk.bf16.gmra.mxu1 %vm391_vm1, %v843_v18 }
  0x25   : > { %833 = vmatmul.msk.bf16.gmra.mxu2 %vm391_vm1, %v851_v19 }
  0x33   : > { %784 = vmatmul.msk.bf16.gmra.mxu3 %vm391_vm1, %v848_v20  ;;  %831 = vmatmul.msk.bf16.vlgmr.msra.gmra.mxu0 %vm391_vm1, %v849_v21 }
  0x34   : > { %808 = vmatmul.msk.bf16.gmra.mxu1 %vm391_vm1, %v844_v22 }
  0x35   : > { %834 = vmatmul.msk.bf16.gmra.mxu2 %vm391_vm1, %v852_v23 }
  0x90   : > { %v417_v24 = vpop.f32.mrf.mxu0 }
  0x91   : > { %v491_v25 = vpop.f32.mrf.mxu1 }
  0x96   : > { %v422_v26 = vpop.f32.mrf.mxu3 }
  0x97   : > { %v492_v27 = vadd.f32 %v491_v25, %v422_v26 }
  0x98   : > { %v563_v28 = vpop.f32.mrf.mxu2  ;;  %v419_v30 = vpop.f32.mrf.mxu0 }
  0x99   : > { %v580_v31 = vadd.f32 %v563_v28, %v492_v27  ;;  %v493_v32 = vpop.f32.mrf.mxu1 }
  0x9b   : > { %v592_v33 = vadd.f32 %v1006_v29, %v580_v31 }
  0x9d   : > { %v600_v34 = vmax.f32 %v592_v33, 0.0 }
  0x9e   : > { %v424_v35 = vpop.f32.mrf.mxu3 }
  0x9f   : > { %v608_v36 = vpack.c.bf16 %v600_v34, %v600_v34  ;;  %v494_v37 = vadd.f32 %v493_v32, %v424_v35 }
  0xa0   : > { %v565_v38 = vpop.f32.mrf.mxu2  ;;  %v486_v39 = vpop.f32.mrf.mxu0 }
  0xa1   : > { %617 = vst.msk [vmem:[%s1013_s26 + $0x8] sm:$0xf] %vm614_vm2, %v608_v36  ;;  %v581_v40 = vadd.f32 %v565_v38, %v494_v37  ;;  %v496_v41 = vpop.f32.mrf.mxu1  ;;  %v487_v54 = vadd.f32 %v486_v39, %v417_v24 }
  0xa3   : > { %v593_v42 = vadd.f32 %v1006_v29, %v581_v40 }
  0xa5   : > { %v601_v43 = vmax.f32 %v593_v42, 0.0 }
  0xa6   : > { %v427_v44 = vpop.f32.mrf.mxu3 }
  0xa7   : > { %v609_v45 = vpack.c.bf16 %v601_v43, %v601_v43  ;;  %v497_v46 = vadd.f32 %v496_v41, %v427_v44 }
  0xa8   : > { %v568_v47 = vpop.f32.mrf.mxu2  ;;  %v488_v48 = vpop.f32.mrf.mxu0 }
  0xa9   : > { %618 = vst.msk [vmem:[%s1013_s26 + $0xc] sm:$0xf] %vm614_vm2, %v609_v45  ;;  %v582_v49 = vadd.f32 %v568_v47, %v497_v46  ;;  %v498_v50 = vpop.f32.mrf.mxu1  ;;  %v489_v3 = vadd.f32 %v488_v48, %v419_v30 }
  0xab   : > { %v594_v51 = vadd.f32 %v1006_v29, %v582_v49 }
  0xad   : > { %v602_v52 = vmax.f32 %v594_v51, 0.0 }
  0xae   : > { %v429_v53 = vpop.f32.mrf.mxu3 }
  0xaf   : > { %v610_v55 = vpack.c.bf16 %v602_v52, %v602_v52  ;;  %v499_v56 = vadd.f32 %v498_v50, %v429_v53 }
  0xb0   : > { %v570_v57 = vpop.f32.mrf.mxu2  ;;  %v558_v58 = vpop.f32.mrf.mxu0 }
  0xb1   : > { %619 = vst.msk [vmem:[%s1013_s26 + $0x10] sm:$0xf] %vm614_vm2, %v610_v55  ;;  %v583_v59 = vadd.f32 %v570_v57, %v499_v56  ;;  %v578_v60 = vadd.f32 %v558_v58, %v487_v54  ;;  %v501_v63 = vpop.f32.mrf.mxu1 }
  0xb3   : > { %v595_v61 = vadd.f32 %v1006_v29, %v583_v59  ;;  %v590_v62 = vadd.f32 %v1006_v29, %v578_v60 }
  0xb5   : > { %v603_v0 = vmax.f32 %v595_v61, 0.0  ;;  %v598_v1 = vmax.f32 %v590_v62, 0.0 }
  0xb6   : > { %v432_v2 = vpop.f32.mrf.mxu3 }
  0xb7   : > { %v611_v4 = vpack.c.bf16 %v603_v0, %v603_v0  ;;  %v606_v5 = vpack.c.bf16 %v598_v1, %v598_v1  ;;  %v502_v6 = vadd.f32 %v501_v63, %v432_v2 }
  0xb8   : > { %v573_v7 = vpop.f32.mrf.mxu2  ;;  %v560_v8 = vpop.f32.mrf.mxu0 }
  0xb9   : > { %620 = vst.msk [vmem:[%s1013_s26 + $0x14] sm:$0xf] %vm614_vm2, %v611_v4  ;;  %v584_v9 = vadd.f32 %v573_v7, %v502_v6  ;;  %v579_v10 = vadd.f32 %v560_v8, %v489_v3  ;;  %v503_v15 = vpop.f32.mrf.mxu1 }
  0xba   : > { %615 = vst.msk [vmem:[%s1013_s26] sm:$0xf] %vm614_vm2, %v606_v5 }
  0xbb   : > { %v596_v11 = vadd.f32 %v1006_v29, %v584_v9  ;;  %v591_v12 = vadd.f32 %v1006_v29, %v579_v10 }
  0xbd   : > { %v604_v13 = vmax.f32 %v596_v11, 0.0  ;;  %v599_v14 = vmax.f32 %v591_v12, 0.0 }
  0xbe   : > { %v434_v16 = vpop.f32.mrf.mxu3 }
  0xbf   : > { %v612_v17 = vpack.c.bf16 %v604_v13, %v604_v13  ;;  %v607_v18 = vpack.c.bf16 %v599_v14, %v599_v14  ;;  %v504_v19 = vadd.f32 %v503_v15, %v434_v16 }
  0xc0   : > { %v575_v20 = vpop.f32.mrf.mxu2 }
  0xc1   : > { %621 = vst.msk [vmem:[%s1013_s26 + $0x18] sm:$0xf] %vm614_vm2, %v612_v17  ;;  %v585_v21 = vadd.f32 %v575_v20, %v504_v19 }
  0xc2   : > { %616 = vst.msk [vmem:[%s1013_s26 + $0x4] sm:$0xf] %vm614_vm2, %v607_v18 }
  0xc3   : > { %v597_v22 = vadd.f32 %v1006_v29, %v585_v21 }
  0xc5   : > { %v605_v23 = vmax.f32 %v597_v22, 0.0 }
  0xc7   : > { %v613_v24 = vpack.c.bf16 %v605_v23, %v605_v23 }
  0xc9   : > { %622 = vst.msk [vmem:[%s1013_s26 + $0x1c] sm:$0xf] %vm614_vm2, %v613_v24 }
  0xca PF: > { %s15_s20 = sadd.s32 1, %s906_s20   ;;  %s1053_s18 = smov %s902_s19 }
  0xcb   : > { %p12_p5 = scmp.ge.s32.totalorder %s15_s20, 4   ;;  %s1054_s19 = smov %s1056_s21 }
  0xcd   :  { %14 = sbr.rel (!%p12_p5) target bundleno = 2 (0x2), region = 78 }

// kernel: rtdetr_forward.13
= control target key start
LH: loop header
LB: loop body
LE: loop exit
PB: predicated region body
PF: predicated region fallthrough
CT: control target
= control target key end

     0   :  { %s850_s12 = smov 0   ;;  %s852_s13 = smov 0   ;;  %s949_s0 = inlined_call_operand.vmem [shape: bf16[2,64,32], index: 0, kind: input, shape index: {}]   ;;  %s950_s1 = inlined_call_operand.vmem [shape: bf16[2,64,32], index: 1, kind: input, shape index: {}]   ;;  %s951_s2 = inlined_call_operand.vmem [shape: bf16[2,64,32], index: 2, kind: input, shape index: {}]   ;;  %s952_s3 = inlined_call_operand.vmem [shape: bf16[2,64,32], index: 3, kind: output, shape index: {}]  }
   0x1   :  { %s854_s14 = smov 0  }
   0x2 LB: > { %s25_s15 = sadd.s32 1, %s824_s13  ;;  %p659_p0 = scmp.ge.s32.totalorder %s828_s14, 1  ;;  %s828_s14 = sphi %s854_s14, %s13_s14   ;;  %s824_s13 = sphi %s852_s13, %s954_s13   ;;  %s820_s12 = sphi %s850_s12, %s953_s12  }
   0x3   : > { %p27_p1 = scmp.ge.s32.totalorder %s25_s15, 2  ;;  %p178_p2 = scmp.lt.s32.totalorder %s828_s14, 3 }
   0x5   : > { %s956_s15 = smov (%p27_p1, %s25_s15), 0  ;;  %p179_p3 = pnand %p659_p0, %p178_p2 }
   0x6   : > { %p221_p4 = scmp.lt.s32.totalorder (!%p179_p3), %s820_s12, 1 }
   0x7   : > { %182 = sbr.rel (%p179_p3) target bundleno = 505 (0x1f9), region = 32 }
   0xc   : > { %s958_s12 = smov (!%p221_p4, %s820_s12), 1  ;;  %vm315_vm0 = vcmask 261120   ;;  %vm369_vm1 = vcmask 523264   ;;  %vm535_vm2 = vcmask 257024  }
   0xd   : > { %s868_s16 = sshll.u32 %s958_s12, 5 }
   0xe   : > { %s234_s19 = scalar_lea.vmem %s950_s1, %s868_s16  ;;  %s228_s22 = scalar_lea.vmem %s949_s0, %s868_s16 }
   0xf   : > { %v737_v0 = vld [vmem:[%s234_s19 + $0x18] sm:$0xff]  ;;  %v736_v2 = vld [vmem:[%s234_s19 + $0x10] sm:$0xff]  ;;  %v735_v4 = vld [vmem:[%s234_s19 + $0x8] sm:$0xff]  ;;  %s239_s25 = scalar_lea.vmem %s951_s2, %s868_s16  ;;  %s922_s28 = scalar_lea.vmem %s952_s3, %s868_s16 }
  0x10   : > { %v338_v1 = vsel %vm315_vm0, %v737_v0, 0  ;;  %v335_v3 = vsel %vm315_vm0, %v736_v2, 0  ;;  %v332_v5 = vsel %vm315_vm0, %v735_v4, 0  ;;  %v734_v6 = vld [vmem:[%s234_s19] sm:$0xff]  ;;  %v732_v9 = vld [vmem:[%s228_s22 + $0x10] sm:$0xff]  ;;  %v731_v10 = vld [vmem:[%s228_s22 + $0x8] sm:$0xff] }
  0x11   : > { %344 = vmatpush.bf16.xpose.msra.mxu0 %v338_v1  ;;  %742 = vmatpush.bf16.xpose.msra.mxu2 %v338_v1  ;;  %v329_v7 = vsel %vm315_vm0, %v734_v6, 0  ;;  %v730_v8 = vld [vmem:[%s228_s22] sm:$0xff]  ;;  %v733_v11 = vld [vmem:[%s228_s22 + $0x18] sm:$0xff]  ;;  %v740_v29 = vld [vmem:[%s239_s25 + $0x10] sm:$0xff] }
  0x12   : > { %v741_v28 = vld [vmem:[%s239_s25 + $0x18] sm:$0xff]  ;;  %v739_v30 = vld [vmem:[%s239_s25 + $0x8] sm:$0xff]  ;;  %v738_v31 = vld [vmem:[%s239_s25] sm:$0xff] }
  0x13   : > { %746 = vmatpush.bf16.msra.mxu3 %v741_v28  ;;  %486 = vmatpush.bf16.msra.mxu1 %v741_v28 }
  0x17   : > { %747 = vmatpush.bf16.msra.mxu3 %v740_v29  ;;  %487 = vmatpush.bf16.msra.mxu1 %v740_v29 }
  0x19   : > { %345 = vmatpush.bf16.xpose.msra.mxu0 %v335_v3  ;;  %743 = vmatpush.bf16.xpose.msra.mxu2 %v335_v3 }
  0x1b   : > { %748 = vmatpush.bf16.msra.mxu3 %v739_v30  ;;  %488 = vmatpush.bf16.msra.mxu1 %v739_v30 }
  0x1f   : > { %749 = vmatpush.bf16.msra.mxu3 %v738_v31  ;;  %489 = vmatpush.bf16.msra.mxu1 %v738_v31 }
  0x21   : > { %346 = vmatpush.bf16.xpose.msra.mxu0 %v332_v5  ;;  %744 = vmatpush.bf16.xpose.msra.mxu2 %v332_v5 }
  0x29   : > { %347 = vmatpush.bf16.xpose.msra.mxu0 %v329_v7  ;;  %745 = vmatpush.bf16.xpose.msra.mxu2 %v329_v7 }
  0x30   : > { %700 = vmatmul.msk.bf16.vlgmr.msra.gmra.mxu0 %vm315_vm0, %v730_v8  ;;  %702 = vmatmul.msk.bf16.vlgmr.msra.gmra.mxu2 %vm315_vm0, %v732_v9 }
  0x40   : > { %701 = vmatmul.msk.bf16.gmra.mxu0 %vm315_vm0, %v731_v10  ;;  %703 = vmatmul.msk.bf16.gmra.mxu2 %vm315_vm0, %v733_v11 }
  0xad   : > { %v886_v12 = vpop.f32.mrf.mxu0 }
  0xae   : > { %v370_v27 = vsel %vm369_vm1, %v886_v12, -inf }
  0xb3   : > { %v359_v13 = vpop.f32.mrf.mxu2 }
  0xb4   : > { %v382_v14 = vsel %vm369_vm1, %v359_v13, -inf }
  0xb5   : > { %383 = vmax.xlane.f32.xlu1 %v382_v14  ;;  %v351_v15 = vpop.f32.mrf.mxu0 }
  0xb6   : > { %v373_v22 = vsel %vm369_vm1, %v351_v15, -inf }
  0xbb   : > { %v361_v16 = vpop.f32.mrf.mxu2 }
  0xbc   : > { %v385_v17 = vsel %vm369_vm1, %v361_v16, -inf }
  0xbd   : > { %386 = vmax.xlane.f32.xlu1 %v385_v17  ;;  %v354_v18 = vpop.f32.mrf.mxu0 }
  0xbe   : > { %v376_v19 = vsel %vm369_vm1, %v354_v18, -inf }
  0xbf   : > { %377 = vmax.xlane.f32.xlu0 %v376_v19 }
  0xc3   : > { %v891_v20 = vpop.f32.mrf.mxu2 }
  0xc4   : > { %v388_v21 = vsel %vm369_vm1, %v891_v20, -inf }
  0xc5   : > { %389 = vmax.xlane.f32.xlu2 %v388_v21  ;;  %374 = vmax.xlane.f32.xlu1 %v373_v22  ;;  %v356_v23 = vpop.f32.mrf.mxu0 }
  0xc6   : > { %v379_v24 = vsel %vm369_vm1, %v356_v23, -inf }
  0xc7   : > { %380 = vmax.xlane.f32.xlu0 %v379_v24 }
  0xcb   : > { %v366_v25 = vpop.f32.mrf.mxu2 }
  0xcc   : > { %v391_v26 = vsel %vm369_vm1, %v366_v25, -inf }
  0xcd   : > { %392 = vmax.xlane.f32.xlu2 %v391_v26 }
  0xcf   : > { %371 = vmax.xlane.f32.xlu0 %v370_v27 }
 0x128   : > { %v384_v32 = vpop.xlane.xlu1 %383 }
 0x129   : > { %v398_v33 = vsub.f32 %v359_v13, %v384_v32 }
 0x12b   : > { %v410_v34 = vmul.f32 1.442695, %v398_v33 }
 0x12d   : > { %774 = vpow2.f32 %v410_v34 }
 0x130   : > { %v387_v35 = vpop.xlane.xlu1 %386 }
 0x131   : > { %v399_v40 = vsub.f32 %v361_v16, %v387_v35 }
 0x132   : > { %v378_v36 = vpop.xlane.xlu0 %377 }
 0x133   : > { %v775_v37 = vpop.eup %774  ;;  %v396_v38 = vsub.f32 %v354_v18, %v378_v36  ;;  %v412_v44 = vmul.f32 1.442695, %v399_v40 }
 0x134   : > { %v430_v39 = vsel %vm369_vm1, %v775_v37, 0.0 }
 0x135   : > { %v406_v41 = vmul.f32 1.442695, %v396_v38  ;;  %431 = vadd.xlane.f32.xlu0 %v430_v39 }
 0x137   : > { %776 = vpow2.f32 %v406_v41 }
 0x138   : > { %v390_v42 = vpop.xlane.xlu2 %389  ;;  %v375_v43 = vpop.xlane.xlu1 %374  ;;  %778 = vpow2.f32 %v412_v44 }
 0x139   : > { %v395_v45 = vsub.f32 %v351_v15, %v375_v43  ;;  %v400_v3 = vsub.f32 %v891_v20, %v390_v42 }
 0x13a   : > { %v381_v46 = vpop.xlane.xlu0 %380 }
 0x13b   : > { %v404_v47 = vmul.f32 1.442695, %v395_v45  ;;  %v397_v48 = vsub.f32 %v356_v23, %v381_v46  ;;  %v414_v6 = vmul.f32 1.442695, %v400_v3 }
 0x13d   : > { %v777_v49 = vpop.eup %776  ;;  %v408_v50 = vmul.f32 1.442695, %v397_v48  ;;  %780 = vpow2.f32 %v404_v47 }
 0x13e   : > { %v424_v51 = vsel %vm369_vm1, %v777_v49, 0.0  ;;  %v779_v55 = vpop.eup %778 }
 0x13f   : > { %782 = vpow2.f32 %v408_v50  ;;  %425 = vadd.xlane.f32.xlu1 %v424_v51  ;;  %v433_v62 = vsel %vm369_vm1, %v779_v55, 0.0  ;;  %v444_v8 = vpack.c.bf16 %v779_v55, %v775_v37 }
 0x140   : > { %v393_v52 = vpop.xlane.xlu2 %392 }
 0x141   : > { %v401_v53 = vsub.f32 %v366_v25, %v393_v52 }
 0x142   : > { %v372_v54 = vpop.xlane.xlu0 %371 }
 0x143   : > { %v416_v56 = vmul.f32 1.442695, %v401_v53  ;;  %v394_v57 = vsub.f32 %v886_v12, %v372_v54  ;;  %v781_v58 = vpop.eup %780 }
 0x144   : > { %v421_v61 = vsel %vm369_vm1, %v781_v58, 0.0 }
 0x145   : > { %v783_v59 = vpop.eup %782  ;;  %784 = vpow2.f32 %v416_v56  ;;  %v402_v60 = vmul.f32 1.442695, %v394_v57  ;;  %422 = vadd.xlane.f32.xlu0 %v421_v61 }
 0x146   : > { %v443_v63 = vpack.c.bf16 %v783_v59, %v777_v49  ;;  %v427_v7 = vsel %vm369_vm1, %v783_v59, 0.0 }
 0x147   : > { %786 = vpow2.f32 %v402_v60  ;;  %434 = vadd.xlane.f32.xlu1 %v433_v62 }
 0x148   : > { %721 = vmatmul.msk.bf16.vlgmr.msra.gmra.mxu3 %vm369_vm1, %v443_v63  ;;  %788 = vpow2.f32 %v414_v6 }
 0x14b   : > { %v785_v0 = vpop.eup %784 }
 0x14c   : > { %v439_v1 = vsel %vm369_vm1, %v785_v0, 0.0 }
 0x14d   : > { %v787_v2 = vpop.eup %786  ;;  %440 = vadd.xlane.f32.xlu0 %v439_v1 }
 0x14e   : > { %v418_v4 = vsel %vm369_vm1, %v787_v2, 0.0  ;;  %v442_v5 = vpack.c.bf16 %v781_v58, %v787_v2  ;;  %v789_v9 = vpop.eup %788 }
 0x14f   : > { %419 = vadd.xlane.f32.xlu2 %v418_v4  ;;  %v436_v10 = vsel %vm369_vm1, %v789_v9, 0.0  ;;  %v445_v11 = vpack.c.bf16 %v785_v0, %v789_v9 }
 0x150   : > { %720 = vmatmul.msk.bf16.vlgmr.msra.gmra.mxu1 %vm369_vm1, %v442_v5 }
 0x157   : > { %428 = vadd.xlane.f32.xlu2 %v427_v7 }
 0x158   : > { %722 = vmatmul.msk.bf16.gmra.mxu3 %vm369_vm1, %v444_v8 }
 0x15f   : > { %437 = vadd.xlane.f32.xlu2 %v436_v10 }
 0x168   : > { %723 = vmatmul.msk.bf16.gmra.mxu3 %vm369_vm1, %v445_v11 }
 0x1a8   : > { %v432_v14 = vpop.xlane.xlu0 %431 }
 0x1b2   : > { %v426_v12 = vpop.xlane.xlu1 %425 }
 0x1b3   : > { %790 = vrcp.f32 %v426_v12 }
 0x1b8   : > { %v423_v18 = vpop.xlane.xlu0 %422 }
 0x1b9   : > { %v791_v16 = vpop.eup %790 }
 0x1ba   : > { %v435_v33 = vpop.xlane.xlu1 %434 }
 0x1c0   : > { %v441_v43 = vpop.xlane.xlu0 %440 }
 0x1c2   : > { %v420_v13 = vpop.xlane.xlu2 %419 }
 0x1c3   : > { %792 = vrcp.f32 %v420_v13 }
 0x1c9   : > { %v793_v20 = vpop.eup %792 }
 0x1ca   : > { %v429_v15 = vpop.xlane.xlu2 %428 }
 0x1cb   : > { %v496_v17 = vpop.f32.mrf.mxu3  ;;  %794 = vrcp.f32 %v429_v15 }
 0x1cc   : > { %v521_v19 = vmul.f32 %v791_v16, %v496_v17  ;;  %796 = vrcp.f32 %v423_v18 }
 0x1cd   : > { %v491_v21 = vpop.f32.mrf.mxu1  ;;  %798 = vrcp.f32 %v432_v14 }
 0x1ce   : > { %v529_v22 = vpack.c.bf16 %v521_v19, %v521_v19  ;;  %v519_v23 = vmul.f32 %v793_v20, %v491_v21  ;;  %800 = vrcp.f32 %v435_v33 }
 0x1d0   : > { %538 = vst.msk [vmem:[%s922_s28 + $0x8] sm:$0xf] %vm535_vm2, %v529_v22  ;;  %v527_v24 = vpack.c.bf16 %v519_v23, %v519_v23 }
 0x1d1   : > { %v795_v25 = vpop.eup %794 }
 0x1d2   : > { %536 = vst.msk [vmem:[%s922_s28] sm:$0xf] %vm535_vm2, %v527_v24  ;;  %v797_v28 = vpop.eup %796  ;;  %v438_v38 = vpop.xlane.xlu2 %437 }
 0x1d3   : > { %v498_v26 = vpop.f32.mrf.mxu3  ;;  %v799_v34 = vpop.eup %798  ;;  %802 = vrcp.f32 %v438_v38 }
 0x1d4   : > { %v522_v27 = vmul.f32 %v795_v25, %v498_v26  ;;  %v801_v39 = vpop.eup %800  ;;  %804 = vrcp.f32 %v441_v43 }
 0x1d5   : > { %v493_v29 = vpop.f32.mrf.mxu1 }
 0x1d6   : > { %v530_v30 = vpack.c.bf16 %v522_v27, %v522_v27  ;;  %v520_v31 = vmul.f32 %v797_v28, %v493_v29 }
 0x1d8   : > { %539 = vst.msk [vmem:[%s922_s28 + $0xc] sm:$0xf] %vm535_vm2, %v530_v30  ;;  %v528_v32 = vpack.c.bf16 %v520_v31, %v520_v31 }
 0x1d9   : > { %v803_v44 = vpop.eup %802 }
 0x1da   : > { %537 = vst.msk [vmem:[%s922_s28 + $0x4] sm:$0xf] %vm535_vm2, %v528_v32  ;;  %v805_v48 = vpop.eup %804 }
 0x1db   : > { %v501_v35 = vpop.f32.mrf.mxu3 }
 0x1dc   : > { %v523_v36 = vmul.f32 %v799_v34, %v501_v35 }
 0x1de   : > { %v531_v37 = vpack.c.bf16 %v523_v36, %v523_v36 }
 0x1e0   : > { %540 = vst.msk [vmem:[%s922_s28 + $0x10] sm:$0xf] %vm535_vm2, %v531_v37 }
 0x1e3   : > { %v503_v40 = vpop.f32.mrf.mxu3 }
 0x1e4   : > { %v524_v41 = vmul.f32 %v801_v39, %v503_v40 }
 0x1e6   : > { %v532_v42 = vpack.c.bf16 %v524_v41, %v524_v41 }
 0x1e8   : > { %541 = vst.msk [vmem:[%s922_s28 + $0x14] sm:$0xf] %vm535_vm2, %v532_v42 }
 0x1eb   : > { %v506_v45 = vpop.f32.mrf.mxu3 }
 0x1ec   : > { %v525_v46 = vmul.f32 %v803_v44, %v506_v45 }
 0x1ee   : > { %v533_v47 = vpack.c.bf16 %v525_v46, %v525_v46 }
 0x1f0   : > { %542 = vst.msk [vmem:[%s922_s28 + $0x18] sm:$0xf] %vm535_vm2, %v533_v47 }
 0x1f3   : > { %v508_v49 = vpop.f32.mrf.mxu3 }
 0x1f4   : > { %v526_v50 = vmul.f32 %v805_v48, %v508_v49 }
 0x1f6   : > { %v534_v51 = vpack.c.bf16 %v526_v50, %v526_v50 }
 0x1f8   : > { %543 = vst.msk [vmem:[%s922_s28 + $0x1c] sm:$0xf] %vm535_vm2, %v534_v51 }
 0x1f9 PF: > { %s13_s14 = sadd.s32 1, %s828_s14   ;;  %s953_s12 = smov %s824_s13 }
 0x1fa   : > { %p10_p5 = scmp.ge.s32.totalorder %s13_s14, 4   ;;  %s954_s13 = smov %s956_s15 }
 0x1fc   :  { %12 = sbr.rel (!%p10_p5) target bundleno = 2 (0x2), region = 68 }

// kernel: rtdetr_forward.14
= control target key start
LH: loop header
LB: loop body
LE: loop exit
PB: predicated region body
PF: predicated region fallthrough
CT: control target
= control target key end

     0   :  { %s830_s21 = smov 0   ;;  %s1017_s0 = inlined_call_operand.vmem [shape: bf16[128,32], index: 0, kind: input, shape index: {}]   ;;  %s1018_s1 = inlined_call_operand.vmem [shape: bf16[32,32], index: 1, kind: input, shape index: {}]   ;;  %s1019_s2 = inlined_call_operand.vmem [shape: f32[1,32], index: 2, kind: input, shape index: {}]   ;;  %s1020_s3 = inlined_call_operand.vmem [shape: bf16[128,32], index: 3, kind: input, shape index: {}]   ;;  %s1021_s4 = inlined_call_operand.vmem [shape: f32[1,32], index: 4, kind: input, shape index: {}]   ;;  %s1022_s5 = inlined_call_operand.vmem [shape: f32[1,32], index: 5, kind: input, shape index: {}]   ;;  %s1023_s6 = inlined_call_operand.vmem [shape: bf16[128,32], index: 6, kind: output, shape index: {}]  }
   0x1 LB: > { %s684_s22 = sadd.s32 4294967295, %s792_s21   ;;  %p688_p0 = scmp.ge.s32.totalorder %s792_s21, 1  ;;  %s792_s21 = sphi %s830_s21, %s16_s21  }
   0x2   : > { %p224_p1 = scmp.lt.s32.totalorder %s792_s21, 3 }
   0x4   : > { %p225_p2 = pnand %p688_p0, %p224_p1 }
   0x5   : > { %s689_s25 = sshll.u32 (!%p225_p2), %s684_s22, 3 }
   0x6   : > { %228 = sbr.rel (%p225_p2) target bundleno = 443 (0x1bb), region = 44  ;;  %p260_p3 = scmp.lt.s32.totalorder (!%p225_p2), %s689_s25, 15 }
   0xb   : > { %v730_v0 = vld [vmem:[%s1018_s1 + $0x8] sm:$0xff]  ;;  %v729_v1 = vld [vmem:[%s1018_s1] sm:$0xff]  ;;  %s1025_s25 = smov (!%p260_p3, %s689_s25), 15  ;;  %vm326_vm0 = vcmask 261120   ;;  %v794_v51 = vmov 32.0   ;;  %vm607_vm8 = vcmask 257024  }
   0xc   : > { %345 = vmatpush.bf16.msra.mxu0 %v730_v0  ;;  %750 = vmatpush.bf16.msra.mxu1 %v730_v0  ;;  %s844_s28 = sshll.u32 %s1025_s25, 2  ;;  %v765_v8 = vld [vmem:[%s1019_s2] ss:$0 sm:$0xff]  ;;  %768 = vrcp.f32 %v794_v51 }
   0xd   : > { %751 = vmatpush.bf16.msra.mxu2 %v730_v0  ;;  %752 = vmatpush.bf16.msra.mxu3 %v730_v0  ;;  %s263_s7 = scalar_lea.vmem %s1017_s0, %s844_s28  ;;  %s269_s10 = scalar_lea.vmem %s1020_s3, %s844_s28 }
   0xe   : > { %v725_v2 = vld [vmem:[%s263_s7] sm:$0xff]  ;;  %v726_v3 = vld [vmem:[%s263_s7 + $0x8] sm:$0xff]  ;;  %v727_v4 = vld [vmem:[%s263_s7 + $0x10] sm:$0xff]  ;;  %s966_s19 = scalar_lea.vmem %s1023_s6, %s844_s28 }
   0xf   : > { %v728_v5 = vld [vmem:[%s263_s7 + $0x18] sm:$0xff]  ;;  %v747_v6 = vld [vmem:[%s269_s10 + $0x8] sm:$0xff]   ;;  %v732_v7 = vld [vmem:[%s269_s10] sm:$0xff]  }
  0x10   : > { %346 = vmatpush.bf16.msra.mxu0 %v729_v1  ;;  %753 = vmatpush.bf16.msra.mxu1 %v729_v1  ;;  %v737_v9 = vunpack.c.l.bf16 %v747_v6  ;;  %v733_v10 = vunpack.c.l.bf16 %v732_v7  ;;  %v748_v17 = vld [vmem:[%s269_s10 + $0x10] sm:$0xff]   ;;  %v738_v23 = vunpack.c.h.bf16 %v747_v6  ;;  %v734_v24 = vunpack.c.h.bf16 %v732_v7  ;;  %v749_v31 = vld [vmem:[%s269_s10 + $0x18] sm:$0xff]  }
  0x11   : > { %754 = vmatpush.bf16.msra.mxu2 %v729_v1  ;;  %755 = vmatpush.bf16.msra.mxu3 %v729_v1  ;;  %v741_v20 = vunpack.c.l.bf16 %v748_v17  ;;  %v745_v38 = vunpack.c.l.bf16 %v749_v31  ;;  %v742_v39 = vunpack.c.h.bf16 %v748_v17  ;;  %v746_v40 = vunpack.c.h.bf16 %v749_v31 }
  0x12   : > { %v769_v52 = vpop.eup %768 }
  0x13   : > { %719 = vmatmul.msk.bf16.vlgmr.msra.gmra.mxu0 %vm326_vm0, %v725_v2  ;;  %720 = vmatmul.msk.bf16.vlgmr.msra.gmra.mxu1 %vm326_vm0, %v726_v3  ;;  %v417_v53 = vmul.f32 32.0, %v769_v52  ;;  %vm421_vm1 = vweird.f32 %v769_v52 }
  0x14   : > { %721 = vmatmul.msk.bf16.vlgmr.msra.gmra.mxu2 %vm326_vm0, %v727_v4  ;;  %722 = vmatmul.msk.bf16.vlgmr.msra.gmra.mxu3 %vm326_vm0, %v728_v5 }
  0x15   : > { %v418_v54 = vsub.f32 1.0, %v417_v53 }
  0x17   : > { %v419_v55 = vmul.f32 %v769_v52, %v418_v54 }
  0x19   : > { %v420_v56 = vadd.f32 %v769_v52, %v419_v55 }
  0x1b   : > { %v869_v57 = vsel %vm421_vm1, %v769_v52, %v420_v56 }
  0x90   : > { %v348_v11 = vpop.f32.mrf.mxu0  ;;  %v353_v12 = vpop.f32.mrf.mxu1 }
  0x91   : > { %v349_v13 = vadd.f32 %v765_v8, %v348_v11  ;;  %v354_v14 = vadd.f32 %v765_v8, %v353_v12 }
  0x93   : > { %v386_v15 = vadd.f32 %v737_v9, %v354_v14  ;;  %v384_v16 = vadd.f32 %v733_v10, %v349_v13 }
  0x95   : > { %v398_v18 = vsel %vm326_vm0, %v386_v15, 0.0  ;;  %v392_v19 = vsel %vm326_vm0, %v384_v16, 0.0 }
  0x96   : > { %399 = vadd.xlane.f32.xlu1 %v398_v18  ;;  %393 = vadd.xlane.f32.xlu0 %v392_v19 }
  0x97   : > { %v358_v21 = vpop.f32.mrf.mxu2  ;;  %v363_v22 = vpop.f32.mrf.mxu3 }
  0x98   : > { %v359_v25 = vadd.f32 %v765_v8, %v358_v21  ;;  %v350_v26 = vpop.f32.mrf.mxu0  ;;  %v355_v27 = vpop.f32.mrf.mxu1  ;;  %v364_v35 = vadd.f32 %v765_v8, %v363_v22 }
  0x99   : > { %v351_v28 = vadd.f32 %v765_v8, %v350_v26  ;;  %v356_v29 = vadd.f32 %v765_v8, %v355_v27 }
  0x9a   : > { %v388_v30 = vadd.f32 %v741_v20, %v359_v25  ;;  %v390_v45 = vadd.f32 %v745_v38, %v364_v35 }
  0x9b   : > { %v387_v32 = vadd.f32 %v738_v23, %v356_v29  ;;  %v385_v33 = vadd.f32 %v734_v24, %v351_v28 }
  0x9c   : > { %v404_v34 = vsel %vm326_vm0, %v388_v30, 0.0  ;;  %v410_v50 = vsel %vm326_vm0, %v390_v45, 0.0 }
  0x9d   : > { %405 = vadd.xlane.f32.xlu2 %v404_v34  ;;  %v401_v36 = vsel %vm326_vm0, %v387_v32, 0.0  ;;  %v395_v37 = vsel %vm326_vm0, %v385_v33, 0.0 }
  0x9e   : > { %402 = vadd.xlane.f32.xlu1 %v401_v36  ;;  %396 = vadd.xlane.f32.xlu0 %v395_v37 }
  0x9f   : > { %v360_v41 = vpop.f32.mrf.mxu2  ;;  %v365_v42 = vpop.f32.mrf.mxu3 }
  0xa0   : > { %v361_v43 = vadd.f32 %v765_v8, %v360_v41  ;;  %v366_v44 = vadd.f32 %v765_v8, %v365_v42 }
  0xa2   : > { %v389_v46 = vadd.f32 %v742_v39, %v361_v43  ;;  %v391_v47 = vadd.f32 %v746_v40, %v366_v44 }
  0xa4   : > { %v407_v48 = vsel %vm326_vm0, %v389_v46, 0.0  ;;  %v413_v49 = vsel %vm326_vm0, %v391_v47, 0.0 }
  0xa5   : > { %408 = vadd.xlane.f32.xlu2 %v407_v48 }
  0xa6   : > { %414 = vadd.xlane.f32.xlu1 %v413_v49  ;;  %411 = vadd.xlane.f32.xlu0 %v410_v50 }
 0x109   : > { %v400_v58 = vpop.xlane.xlu1 %399  ;;  %v394_v59 = vpop.xlane.xlu0 %393 }
 0x10a   : > { %v425_v60 = vmul.f32 %v869_v57, %v400_v58  ;;  %v423_v61 = vmul.f32 %v869_v57, %v394_v59 }
 0x10c   : > { %v873_v62 = vsub.f32 %v386_v15, %v425_v60  ;;  %v875_v63 = vsub.f32 %v384_v16, %v423_v61 }
 0x10e   : > { %v441_v0 = vmul.f32 %v873_v62, %v873_v62  ;;  %v439_v1 = vmul.f32 %v875_v63, %v875_v63 }
 0x110   : > { %v406_v2 = vpop.xlane.xlu2 %405  ;;  %v453_v3 = vsel %vm326_vm0, %v441_v0, 0.0  ;;  %v447_v4 = vsel %vm326_vm0, %v439_v1, 0.0 }
 0x111   : > { %v427_v5 = vmul.f32 %v869_v57, %v406_v2  ;;  %454 = vadd.xlane.f32.xlu1 %v453_v3  ;;  %v403_v6 = vpop.xlane.xlu1 %402  ;;  %448 = vadd.xlane.f32.xlu2 %v447_v4  ;;  %v397_v7 = vpop.xlane.xlu0 %396 }
 0x112   : > { %v426_v8 = vmul.f32 %v869_v57, %v403_v6  ;;  %v424_v10 = vmul.f32 %v869_v57, %v397_v7 }
 0x113   : > { %v885_v9 = vsub.f32 %v388_v30, %v427_v5 }
 0x114   : > { %v888_v11 = vsub.f32 %v387_v32, %v426_v8  ;;  %v894_v14 = vsub.f32 %v385_v33, %v424_v10  ;;  %v944_v10 = vld [vmem:[%s1021_s4] ss:$0 sm:$0xff] }
 0x115   : > { %v443_v12 = vmul.f32 %v885_v9, %v885_v9 }
 0x116   : > { %v442_v13 = vmul.f32 %v888_v11, %v888_v11  ;;  %v440_v24 = vmul.f32 %v894_v14, %v894_v14 }
 0x117   : > { %v459_v15 = vsel %vm326_vm0, %v443_v12, 0.0 }
 0x118   : > { %v409_v16 = vpop.xlane.xlu2 %408  ;;  %460 = vadd.xlane.f32.xlu0 %v459_v15  ;;  %v456_v17 = vsel %vm326_vm0, %v442_v13, 0.0  ;;  %v450_v30 = vsel %vm326_vm0, %v440_v24, 0.0 }
 0x119   : > { %v428_v18 = vmul.f32 %v869_v57, %v409_v16  ;;  %v415_v19 = vpop.xlane.xlu1 %414  ;;  %457 = vadd.xlane.f32.xlu2 %v456_v17  ;;  %v412_v20 = vpop.xlane.xlu0 %411  ;;  %v951_v17 = vld [vmem:[%s1022_s5] ss:$0 sm:$0xff] }
 0x11a   : > { %v429_v21 = vmul.f32 %v869_v57, %v412_v20  ;;  %v430_v23 = vmul.f32 %v869_v57, %v415_v19 }
 0x11b   : > { %v900_v22 = vsub.f32 %v389_v46, %v428_v18 }
 0x11c   : > { %v905_v25 = vsub.f32 %v390_v45, %v429_v21  ;;  %v911_v28 = vsub.f32 %v391_v47, %v430_v23 }
 0x11d   : > { %v444_v26 = vmul.f32 %v900_v22, %v900_v22 }
 0x11e   : > { %v445_v27 = vmul.f32 %v905_v25, %v905_v25  ;;  %v446_v32 = vmul.f32 %v911_v28, %v911_v28 }
 0x11f   : > { %v462_v29 = vsel %vm326_vm0, %v444_v26, 0.0 }
 0x120   : > { %463 = vadd.xlane.f32.xlu1 %v462_v29  ;;  %451 = vadd.xlane.f32.xlu0 %v450_v30  ;;  %v465_v31 = vsel %vm326_vm0, %v445_v27, 0.0  ;;  %v468_v33 = vsel %vm326_vm0, %v446_v32, 0.0 }
 0x121   : > { %466 = vadd.xlane.f32.xlu2 %v465_v31 }
 0x128   : > { %469 = vadd.xlane.f32.xlu0 %v468_v33 }
 0x184   : > { %v455_v34 = vpop.xlane.xlu1 %454  ;;  %v449_v35 = vpop.xlane.xlu2 %448 }
 0x185   : > { %v473_v36 = vmul.f32 %v455_v34, %v869_v57  ;;  %v471_v37 = vmul.f32 %v449_v35, %v869_v57 }
 0x187   : > { %v481_v38 = vadd.f32 1e-05, %v473_v36  ;;  %v479_v39 = vadd.f32 1e-05, %v471_v37 }
 0x189   : > { %770 = vrsqrt.f32 %v481_v38  ;;  %vm513_vm4 = vweird.f32 %v481_v38  ;;  %vm493_vm6 = vweird.f32 %v479_v39 }
 0x18a   : > { %772 = vrsqrt.f32 %v479_v39 }
 0x18b   : > { %v461_v40 = vpop.xlane.xlu0 %460 }
 0x18c   : > { %v475_v41 = vmul.f32 %v461_v40, %v869_v57  ;;  %v458_v42 = vpop.xlane.xlu2 %457 }
 0x18d   : > { %v474_v43 = vmul.f32 %v458_v42, %v869_v57 }
 0x18e   : > { %v923_v44 = vadd.f32 1e-05, %v475_v41 }
 0x18f   : > { %v771_v45 = vpop.eup %770  ;;  %v925_v46 = vadd.f32 1e-05, %v474_v43 }
 0x190   : > { %v773_v47 = vpop.eup %772  ;;  %v508_v48 = vmul.f32 %v771_v45, %v481_v38  ;;  %774 = vrsqrt.f32 %v923_v44  ;;  %vm514_vm2 = vweird.f32 %v771_v45  ;;  %vm533_vm10 = vweird.f32 %v923_v44 }
 0x191   : > { %v488_v49 = vmul.f32 %v773_v47, %v479_v39  ;;  %776 = vrsqrt.f32 %v925_v46  ;;  %vm494_vm3 = vweird.f32 %v773_v47  ;;  %vm515_vm5 = vmor %vm513_vm4, %vm514_vm2  ;;  %vm523_vm12 = vweird.f32 %v925_v46 }
 0x192   : > { %v509_v50 = vmul.f32 %v771_v45, %v508_v48  ;;  %vm495_vm7 = vmor %vm493_vm6, %vm494_vm3 }
 0x193   : > { %v489_v51 = vmul.f32 %v773_v47, %v488_v49  ;;  %v464_v52 = vpop.xlane.xlu1 %463  ;;  %v452_v53 = vpop.xlane.xlu0 %451 }
 0x194   : > { %v510_v54 = vmul.f32 0.5, %v509_v50  ;;  %v476_v55 = vmul.f32 %v464_v52, %v869_v57  ;;  %v472_v56 = vmul.f32 %v452_v53, %v869_v57  ;;  %v467_v58 = vpop.xlane.xlu2 %466 }
 0x195   : > { %v490_v59 = vmul.f32 0.5, %v489_v51  ;;  %v477_v60 = vmul.f32 %v467_v58, %v869_v57 }
 0x196   : > { %v775_v61 = vpop.eup %774  ;;  %v511_v0 = vsub.f32 1.5, %v510_v54  ;;  %v932_v1 = vadd.f32 1e-05, %v476_v55  ;;  %v934_v2 = vadd.f32 1e-05, %v472_v56 }
 0x197   : > { %v777_v3 = vpop.eup %776  ;;  %v491_v4 = vsub.f32 1.5, %v490_v59  ;;  %v528_v5 = vmul.f32 %v775_v61, %v923_v44  ;;  %v937_v6 = vadd.f32 1e-05, %v477_v60  ;;  %vm534_vm9 = vweird.f32 %v775_v61 }
 0x198   : > { %v512_v7 = vmul.f32 %v771_v45, %v511_v0  ;;  %v518_v8 = vmul.f32 %v777_v3, %v925_v46  ;;  %778 = vrsqrt.f32 %v932_v1  ;;  %vm524_vm11 = vweird.f32 %v777_v3  ;;  %vm535_vm13 = vmor %vm533_vm10, %vm534_vm9 }
 0x199   : > { %v492_v12 = vmul.f32 %v773_v47, %v491_v4  ;;  %v529_v13 = vmul.f32 %v775_v61, %v528_v5  ;;  %780 = vrsqrt.f32 %v934_v2  ;;  %vm525_vm14 = vmor %vm523_vm12, %vm524_vm11  ;;  %vm543_vm0 = vweird.f32 %v932_v1 }
 0x19a   : > { %v516_v15 = vsel %vm515_vm5, %v771_v45, %v512_v7  ;;  %v519_v16 = vmul.f32 %v777_v3, %v518_v8  ;;  %782 = vrsqrt.f32 %v937_v6  ;;  %vm503_vm4 = vweird.f32 %v934_v2 }
 0x19b   : > { %v569_v18 = vmul.f32 %v516_v15, %v873_v62  ;;  %v496_v19 = vsel %vm495_vm7, %v773_v47, %v492_v12  ;;  %v530_v20 = vmul.f32 0.5, %v529_v13  ;;  %v470_v21 = vpop.xlane.xlu0 %469  ;;  %vm553_vm6 = vweird.f32 %v937_v6 }
 0x19c   : > { %v567_v23 = vmul.f32 %v496_v19, %v875_v63  ;;  %v520_v24 = vmul.f32 0.5, %v519_v16  ;;  %v478_v26 = vmul.f32 %v470_v21, %v869_v57 }
 0x19d   : > { %v581_v27 = vmul.f32 %v944_v10, %v569_v18  ;;  %v531_v29 = vsub.f32 1.5, %v530_v20 }
 0x19e   : > { %v779_v30 = vpop.eup %778  ;;  %v579_v31 = vmul.f32 %v944_v10, %v567_v23  ;;  %v521_v62 = vsub.f32 1.5, %v520_v24  ;;  %v970_v38 = vadd.f32 1e-05, %v478_v26 }
 0x19f   : > { %v781_v32 = vpop.eup %780  ;;  %v593_v33 = vadd.f32 %v951_v17, %v581_v27  ;;  %v532_v63 = vmul.f32 %v775_v61, %v531_v29  ;;  %v538_v57 = vmul.f32 %v779_v30, %v932_v1  ;;  %vm544_vm15 = vweird.f32 %v779_v30 }
 0x1a0   : > { %v783_v34 = vpop.eup %782  ;;  %v591_v35 = vadd.f32 %v951_v17, %v579_v31  ;;  %v522_v36 = vmul.f32 %v777_v3, %v521_v62  ;;  %v498_v37 = vmul.f32 %v781_v32, %v934_v2  ;;  %784 = vrsqrt.f32 %v970_v38  ;;  %vm545_vm3 = vmor %vm543_vm0, %vm544_vm15 }
 0x1a1   : > { %v601_v39 = vpack.c.bf16 %v593_v33, %v593_v33  ;;  %v536_v40 = vsel %vm535_vm13, %v775_v61, %v532_v63  ;;  %v539_v41 = vmul.f32 %v779_v30, %v538_v57  ;;  %v548_v42 = vmul.f32 %v783_v34, %v937_v6 }
 0x1a2   : > { %v599_v43 = vpack.c.bf16 %v591_v35, %v591_v35  ;;  %v571_v44 = vmul.f32 %v536_v40, %v885_v9  ;;  %v526_v45 = vsel %vm525_vm14, %v777_v3, %v522_v36  ;;  %v499_v46 = vmul.f32 %v781_v32, %v498_v37 }
 0x1a3   : > { %610 = vst.msk [vmem:[%s966_s19 + $0x8] sm:$0xf] %vm607_vm8, %v601_v39  ;;  %v570_v47 = vmul.f32 %v526_v45, %v888_v11  ;;  %v540_v48 = vmul.f32 0.5, %v539_v41  ;;  %v549_v49 = vmul.f32 %v783_v34, %v548_v42  ;;  %vm504_vm1 = vweird.f32 %v781_v32 }
 0x1a4   : > { %608 = vst.msk [vmem:[%s966_s19] sm:$0xf] %vm607_vm8, %v599_v43  ;;  %v583_v50 = vmul.f32 %v944_v10, %v571_v44  ;;  %v500_v51 = vmul.f32 0.5, %v499_v46  ;;  %vm554_vm2 = vweird.f32 %v783_v34  ;;  %vm505_vm5 = vmor %vm503_vm4, %vm504_vm1  ;;  %vm563_vm10 = vweird.f32 %v970_v38 }
 0x1a5   : > { %v582_v52 = vmul.f32 %v944_v10, %v570_v47  ;;  %v541_v53 = vsub.f32 1.5, %v540_v48  ;;  %v550_v9 = vmul.f32 0.5, %v549_v49  ;;  %vm555_vm7 = vmor %vm553_vm6, %vm554_vm2 }
 0x1a6   : > { %v595_v54 = vadd.f32 %v951_v17, %v583_v50  ;;  %v501_v55 = vsub.f32 1.5, %v500_v51  ;;  %v785_v1 = vpop.eup %784 }
 0x1a7   : > { %v594_v11 = vadd.f32 %v951_v17, %v582_v52  ;;  %v542_v56 = vmul.f32 %v779_v30, %v541_v53  ;;  %v551_v58 = vsub.f32 1.5, %v550_v9  ;;  %v558_v2 = vmul.f32 %v785_v1, %v970_v38 }
 0x1a8   : > { %v603_v59 = vpack.c.bf16 %v595_v54, %v595_v54  ;;  %v502_v60 = vmul.f32 %v781_v32, %v501_v55  ;;  %vm564_vm9 = vweird.f32 %v785_v1 }
 0x1a9   : > { %v602_v61 = vpack.c.bf16 %v594_v11, %v594_v11  ;;  %v546_v0 = vsel %vm545_vm3, %v779_v30, %v542_v56  ;;  %v552_v3 = vmul.f32 %v783_v34, %v551_v58  ;;  %v559_v15 = vmul.f32 %v785_v1, %v558_v2  ;;  %vm565_vm11 = vmor %vm563_vm10, %vm564_vm9 }
 0x1aa   : > { %612 = vst.msk [vmem:[%s966_s19 + $0x10] sm:$0xf] %vm607_vm8, %v603_v59  ;;  %v572_v4 = vmul.f32 %v546_v0, %v900_v22  ;;  %v506_v5 = vsel %vm505_vm5, %v781_v32, %v502_v60 }
 0x1ab   : > { %611 = vst.msk [vmem:[%s966_s19 + $0xc] sm:$0xf] %vm607_vm8, %v602_v61  ;;  %v568_v7 = vmul.f32 %v506_v5, %v894_v14  ;;  %v556_v8 = vsel %vm555_vm7, %v783_v34, %v552_v3  ;;  %v560_v14 = vmul.f32 0.5, %v559_v15 }
 0x1ac   : > { %v584_v12 = vmul.f32 %v944_v10, %v572_v4  ;;  %v573_v6 = vmul.f32 %v556_v8, %v905_v25 }
 0x1ad   : > { %v580_v13 = vmul.f32 %v944_v10, %v568_v7  ;;  %v561_v23 = vsub.f32 1.5, %v560_v14 }
 0x1ae   : > { %v596_v22 = vadd.f32 %v951_v17, %v584_v12  ;;  %v585_v16 = vmul.f32 %v944_v10, %v573_v6 }
 0x1af   : > { %v592_v18 = vadd.f32 %v951_v17, %v580_v13  ;;  %v562_v24 = vmul.f32 %v785_v1, %v561_v23 }
 0x1b0   : > { %v604_v19 = vpack.c.bf16 %v596_v22, %v596_v22  ;;  %v597_v20 = vadd.f32 %v951_v17, %v585_v16 }
 0x1b1   : > { %v600_v21 = vpack.c.bf16 %v592_v18, %v592_v18  ;;  %v566_v26 = vsel %vm565_vm11, %v785_v1, %v562_v24 }
 0x1b2   : > { %613 = vst.msk [vmem:[%s966_s19 + $0x14] sm:$0xf] %vm607_vm8, %v604_v19  ;;  %v605_v25 = vpack.c.bf16 %v597_v20, %v597_v20  ;;  %v574_v27 = vmul.f32 %v566_v26, %v911_v28 }
 0x1b3   : > { %609 = vst.msk [vmem:[%s966_s19 + $0x4] sm:$0xf] %vm607_vm8, %v600_v21 }
 0x1b4   : > { %614 = vst.msk [vmem:[%s966_s19 + $0x18] sm:$0xf] %vm607_vm8, %v605_v25  ;;  %v586_v29 = vmul.f32 %v944_v10, %v574_v27 }
 0x1b6   : > { %v598_v30 = vadd.f32 %v951_v17, %v586_v29 }
 0x1b8   : > { %v606_v31 = vpack.c.bf16 %v598_v30, %v598_v30 }
 0x1ba   : > { %615 = vst.msk [vmem:[%s966_s19 + $0x1c] sm:$0xf] %vm607_vm8, %v606_v31 }
 0x1bb PF: > { %s16_s21 = sadd.s32 1, %s792_s21  }
 0x1bc   : > { %p13_p4 = scmp.ge.s32.totalorder %s16_s21, 4  }
 0x1be   :  { %15 = sbr.rel (!%p13_p4) target bundleno = 1 (0x1), region = 77 }

// kernel: rtdetr_forward.16
= control target key start
LH: loop header
LB: loop body
LE: loop exit
PB: predicated region body
PF: predicated region fallthrough
CT: control target
= control target key end

     0   :  { %vm42_vm0 = vcmask 261120   ;;  %vm62_vm1 = vcmask 257024   ;;  %s124_s1 = inlined_call_operand.vmem [shape: bf16[32,32], index: 1, kind: input, shape index: {}]   ;;  %s125_s2 = inlined_call_operand.vmem [shape: f32[1,32], index: 2, kind: input, shape index: {}]   ;;  %s126_s0 = inlined_call_operand.vmem [shape: bf16[16,32], index: 0, kind: input, shape index: {}]   ;;  %s127_s3 = inlined_call_operand.vmem [shape: bf16[16,32], index: 3, kind: output, shape index: {}]  }
   0x1   :  { %v84_v0 = vld [vmem:[%s124_s1 + $0x8] sm:$0xff]  ;;  %v83_v1 = vld [vmem:[%s124_s1] sm:$0xff] }
   0x2   :  { %52 = vmatpush.bf16.msra.mxu0 %v84_v0  ;;  %v82_v2 = vld [vmem:[%s126_s0] sm:$0xff] }
   0x3   :  { %v85_v3 = vld [vmem:[%s125_s2] ss:$0 sm:$0xff] }
   0x6   :  { %53 = vmatpush.bf16.msra.mxu0 %v83_v1 }
   0x9   :  { %81 = vmatmul.msk.bf16.vlgmr.msra.gmra.mxu0 %vm42_vm0, %v82_v2 }
  0x86   :  { %v55_v4 = vpop.f32.mrf.mxu0 }
  0x87   :  { %v56_v5 = vadd.f32 %v85_v3, %v55_v4 }
  0x89   :  { %v60_v6 = vpack.c.bf16 %v56_v5, %v56_v5 }
  0x8b   :  { %63 = vst.msk [vmem:[%s127_s3] sm:$0xf] %vm62_vm1, %v60_v6 }
  0x8e   :  { %v57_v7 = vpop.f32.mrf.mxu0 }
  0x8f   :  { %v58_v8 = vadd.f32 %v85_v3, %v57_v7 }
  0x91   :  { %v61_v9 = vpack.c.bf16 %v58_v8, %v58_v8 }
  0x93   :  { %64 = vst.msk [vmem:[%s127_s3 + $0x4] sm:$0xf] %vm62_vm1, %v61_v9 }

// kernel: rtdetr_forward.17
= control target key start
LH: loop header
LB: loop body
LE: loop exit
PB: predicated region body
PF: predicated region fallthrough
CT: control target
= control target key end

     0   :  { %s650_s21 = smov 0   ;;  %s734_s0 = inlined_call_operand.vmem [shape: bf16[128,32], index: 0, kind: input, shape index: {}]   ;;  %s735_s1 = inlined_call_operand.vmem [shape: bf16[32,32], index: 1, kind: input, shape index: {}]   ;;  %s736_s2 = inlined_call_operand.vmem [shape: bf16[32,32], index: 2, kind: input, shape index: {}]   ;;  %s737_s3 = inlined_call_operand.vmem [shape: f32[1,32], index: 3, kind: input, shape index: {}]   ;;  %s738_s4 = inlined_call_operand.vmem [shape: f32[1,32], index: 4, kind: input, shape index: {}]   ;;  %s739_s5 = inlined_call_operand.vmem [shape: bf16[128,32], index: 5, kind: output, shape index: {0}]   ;;  %s740_s6 = inlined_call_operand.vmem [shape: bf16[128,32], index: 6, kind: output, shape index: {1}]  }
   0x1 LB: > { %s532_s22 = sadd.s32 4294967295, %s613_s21   ;;  %p536_p0 = scmp.ge.s32.totalorder %s613_s21, 1  ;;  %s613_s21 = sphi %s650_s21, %s17_s21  }
   0x2   : > { %p216_p1 = scmp.lt.s32.totalorder %s613_s21, 3 }
   0x4   : > { %p217_p2 = pnand %p536_p0, %p216_p1 }
   0x5   : > { %s537_s27 = sshll.u32 (!%p217_p2), %s532_s22, 3 }
   0x6   : > { %220 = sbr.rel (%p217_p2) target bundleno = 181 (0xb5), region = 40  ;;  %p252_p3 = scmp.lt.s32.totalorder (!%p217_p2), %s537_s27, 15 }
   0xb   : > { %v590_v0 = vld [vmem:[%s735_s1 + $0x8] sm:$0xff]  ;;  %v589_v2 = vld [vmem:[%s735_s1] sm:$0xff]  ;;  %s742_s27 = smov (!%p252_p3, %s537_s27), 15  ;;  %vm318_vm0 = vcmask 261120   ;;  %vm368_vm1 = vcmask 257024  }
   0xc   : > { %v592_v1 = vld [vmem:[%s736_s2 + $0x8] sm:$0xff]  ;;  %337 = vmatpush.bf16.msra.mxu0 %v590_v0  ;;  %593 = vmatpush.bf16.msra.mxu2 %v590_v0  ;;  %v591_v3 = vld [vmem:[%s736_s2] sm:$0xff]  ;;  %s538_s8 = sshll.u32 %s742_s27, 2 }
   0xd   : > { %403 = vmatpush.bf16.msra.mxu1 %v592_v1  ;;  %595 = vmatpush.bf16.msra.mxu3 %v592_v1  ;;  %s255_s11 = scalar_lea.vmem %s734_s0, %s538_s8  ;;  %v605_v8 = vld [vmem:[%s737_s3] ss:$0 sm:$0xff]  ;;  %s684_s18 = scalar_lea.vmem %s739_s5, %s538_s8 }
   0xe   : > { %v585_v4 = vld [vmem:[%s255_s11] sm:$0xff]  ;;  %v587_v5 = vld [vmem:[%s255_s11 + $0x10] sm:$0xff]  ;;  %v586_v6 = vld [vmem:[%s255_s11 + $0x8] sm:$0xff]  ;;  %s690_s22 = scalar_lea.vmem %s740_s6, %s538_s8 }
   0xf   : > { %v588_v7 = vld [vmem:[%s255_s11 + $0x18] sm:$0xff]  ;;  %v679_v9 = vld [vmem:[%s738_s4] ss:$0 sm:$0xff] }
  0x10   : > { %338 = vmatpush.bf16.msra.mxu0 %v589_v2  ;;  %594 = vmatpush.bf16.msra.mxu2 %v589_v2 }
  0x11   : > { %404 = vmatpush.bf16.msra.mxu1 %v591_v3  ;;  %596 = vmatpush.bf16.msra.mxu3 %v591_v3 }
  0x13   : > { %567 = vmatmul.msk.bf16.vlgmr.msra.gmra.mxu0 %vm318_vm0, %v585_v4  ;;  %569 = vmatmul.msk.bf16.vlgmr.msra.gmra.mxu2 %vm318_vm0, %v587_v5 }
  0x14   : > { %579 = vmatmul.msk.bf16.vlgmr.msra.gmra.mxu1 %vm318_vm0, %v585_v4  ;;  %581 = vmatmul.msk.bf16.vlgmr.msra.gmra.mxu3 %vm318_vm0, %v587_v5 }
  0x23   : > { %568 = vmatmul.msk.bf16.gmra.mxu0 %vm318_vm0, %v586_v6  ;;  %570 = vmatmul.msk.bf16.gmra.mxu2 %vm318_vm0, %v588_v7 }
  0x24   : > { %580 = vmatmul.msk.bf16.gmra.mxu1 %vm318_vm0, %v586_v6  ;;  %582 = vmatmul.msk.bf16.gmra.mxu3 %vm318_vm0, %v588_v7 }
  0x90   : > { %v340_v10 = vpop.f32.mrf.mxu0 }
  0x91   : > { %v341_v11 = vadd.f32 %v605_v8, %v340_v10  ;;  %v406_v12 = vpop.f32.mrf.mxu1 }
  0x92   : > { %v407_v13 = vadd.f32 %v679_v9, %v406_v12 }
  0x93   : > { %v360_v14 = vpack.c.bf16 %v341_v11, %v341_v11 }
  0x94   : > { %v426_v15 = vpack.c.bf16 %v407_v13, %v407_v13 }
  0x95   : > { %369 = vst.msk [vmem:[%s684_s18] sm:$0xf] %vm368_vm1, %v360_v14 }
  0x96   : > { %434 = vst.msk [vmem:[%s690_s22] sm:$0xf] %vm368_vm1, %v426_v15  ;;  %v350_v16 = vpop.f32.mrf.mxu2 }
  0x97   : > { %v351_v17 = vadd.f32 %v605_v8, %v350_v16  ;;  %v416_v18 = vpop.f32.mrf.mxu3 }
  0x98   : > { %v417_v19 = vadd.f32 %v679_v9, %v416_v18  ;;  %v342_v20 = vpop.f32.mrf.mxu0 }
  0x99   : > { %v364_v21 = vpack.c.bf16 %v351_v17, %v351_v17  ;;  %v343_v22 = vadd.f32 %v605_v8, %v342_v20  ;;  %v408_v23 = vpop.f32.mrf.mxu1 }
  0x9a   : > { %v430_v24 = vpack.c.bf16 %v417_v19, %v417_v19  ;;  %v409_v25 = vadd.f32 %v679_v9, %v408_v23 }
  0x9b   : > { %373 = vst.msk [vmem:[%s684_s18 + $0x10] sm:$0xf] %vm368_vm1, %v364_v21  ;;  %v361_v26 = vpack.c.bf16 %v343_v22, %v343_v22 }
  0x9c   : > { %438 = vst.msk [vmem:[%s690_s22 + $0x10] sm:$0xf] %vm368_vm1, %v430_v24  ;;  %v427_v27 = vpack.c.bf16 %v409_v25, %v409_v25 }
  0x9d   : > { %370 = vst.msk [vmem:[%s684_s18 + $0x4] sm:$0xf] %vm368_vm1, %v361_v26 }
  0x9e   : > { %435 = vst.msk [vmem:[%s690_s22 + $0x4] sm:$0xf] %vm368_vm1, %v427_v27  ;;  %v352_v28 = vpop.f32.mrf.mxu2 }
  0x9f   : > { %v353_v29 = vadd.f32 %v605_v8, %v352_v28  ;;  %v418_v30 = vpop.f32.mrf.mxu3 }
  0xa0   : > { %v419_v31 = vadd.f32 %v679_v9, %v418_v30  ;;  %v345_v32 = vpop.f32.mrf.mxu0 }
  0xa1   : > { %v365_v33 = vpack.c.bf16 %v353_v29, %v353_v29  ;;  %v346_v34 = vadd.f32 %v605_v8, %v345_v32  ;;  %v411_v35 = vpop.f32.mrf.mxu1 }
  0xa2   : > { %v431_v36 = vpack.c.bf16 %v419_v31, %v419_v31  ;;  %v412_v37 = vadd.f32 %v679_v9, %v411_v35 }
  0xa3   : > { %374 = vst.msk [vmem:[%s684_s18 + $0x14] sm:$0xf] %vm368_vm1, %v365_v33  ;;  %v362_v38 = vpack.c.bf16 %v346_v34, %v346_v34 }
  0xa4   : > { %439 = vst.msk [vmem:[%s690_s22 + $0x14] sm:$0xf] %vm368_vm1, %v431_v36  ;;  %v428_v39 = vpack.c.bf16 %v412_v37, %v412_v37 }
  0xa5   : > { %371 = vst.msk [vmem:[%s684_s18 + $0x8] sm:$0xf] %vm368_vm1, %v362_v38 }
  0xa6   : > { %436 = vst.msk [vmem:[%s690_s22 + $0x8] sm:$0xf] %vm368_vm1, %v428_v39  ;;  %v355_v40 = vpop.f32.mrf.mxu2 }
  0xa7   : > { %v356_v41 = vadd.f32 %v605_v8, %v355_v40  ;;  %v421_v42 = vpop.f32.mrf.mxu3 }
  0xa8   : > { %v422_v43 = vadd.f32 %v679_v9, %v421_v42  ;;  %v347_v44 = vpop.f32.mrf.mxu0 }
  0xa9   : > { %v366_v45 = vpack.c.bf16 %v356_v41, %v356_v41  ;;  %v348_v46 = vadd.f32 %v605_v8, %v347_v44  ;;  %v413_v47 = vpop.f32.mrf.mxu1 }
  0xaa   : > { %v432_v48 = vpack.c.bf16 %v422_v43, %v422_v43  ;;  %v414_v49 = vadd.f32 %v679_v9, %v413_v47 }
  0xab   : > { %375 = vst.msk [vmem:[%s684_s18 + $0x18] sm:$0xf] %vm368_vm1, %v366_v45  ;;  %v363_v50 = vpack.c.bf16 %v348_v46, %v348_v46 }
  0xac   : > { %440 = vst.msk [vmem:[%s690_s22 + $0x18] sm:$0xf] %vm368_vm1, %v432_v48  ;;  %v429_v51 = vpack.c.bf16 %v414_v49, %v414_v49 }
  0xad   : > { %372 = vst.msk [vmem:[%s684_s18 + $0xc] sm:$0xf] %vm368_vm1, %v363_v50 }
  0xae   : > { %437 = vst.msk [vmem:[%s690_s22 + $0xc] sm:$0xf] %vm368_vm1, %v429_v51  ;;  %v357_v52 = vpop.f32.mrf.mxu2 }
  0xaf   : > { %v358_v53 = vadd.f32 %v605_v8, %v357_v52  ;;  %v423_v54 = vpop.f32.mrf.mxu3 }
  0xb0   : > { %v424_v55 = vadd.f32 %v679_v9, %v423_v54 }
  0xb1   : > { %v367_v56 = vpack.c.bf16 %v358_v53, %v358_v53 }
  0xb2   : > { %v433_v57 = vpack.c.bf16 %v424_v55, %v424_v55 }
  0xb3   : > { %376 = vst.msk [vmem:[%s684_s18 + $0x1c] sm:$0xf] %vm368_vm1, %v367_v56 }
  0xb4   : > { %441 = vst.msk [vmem:[%s690_s22 + $0x1c] sm:$0xf] %vm368_vm1, %v433_v57 }
  0xb5 PF: > { %s17_s21 = sadd.s32 1, %s613_s21  }
  0xb6   : > { %p14_p4 = scmp.ge.s32.totalorder %s17_s21, 4  }
  0xb8   :  { %16 = sbr.rel (!%p14_p4) target bundleno = 1 (0x1), region = 82 }

// kernel: rtdetr_forward.15
= control target key start
LH: loop header
LB: loop body
LE: loop exit
PB: predicated region body
PF: predicated region fallthrough
CT: control target
= control target key end

     0   :  { %s914_s24 = smov 0   ;;  %s1098_s0 = inlined_call_operand.vmem [shape: bf16[128,32], index: 0, kind: input, shape index: {}]   ;;  %s1099_s1 = inlined_call_operand.vmem [shape: bf16[32,64], index: 1, kind: input, shape index: {}]   ;;  %s1100_s2 = inlined_call_operand.vmem [shape: f32[1,64], index: 2, kind: input, shape index: {}]   ;;  %s1101_s3 = inlined_call_operand.vmem [shape: bf16[64,32], index: 3, kind: input, shape index: {}]   ;;  %s1102_s4 = inlined_call_operand.vmem [shape: f32[1,32], index: 4, kind: input, shape index: {}]   ;;  %s1103_s5 = inlined_call_operand.vmem [shape: f32[1,32], index: 5, kind: input, shape index: {}]   ;;  %s1104_s6 = inlined_call_operand.vmem [shape: f32[1,32], index: 6, kind: input, shape index: {}]   ;;  %s1105_s7 = inlined_call_operand.vmem [shape: bf16[128,32], index: 7, kind: output, shape index: {}]  }
   0x1 LB: > { %s759_s25 = sadd.s32 4294967295, %s871_s24   ;;  %p763_p0 = scmp.ge.s32.totalorder %s871_s24, 1  ;;  %s871_s24 = sphi %s914_s24, %s17_s24  }
   0x2   : > { %p238_p1 = scmp.lt.s32.totalorder %s871_s24, 3 }
   0x4   : > { %p239_p2 = pnand %p763_p0, %p238_p1 }
   0x5   : > { %s764_s28 = sshll.u32 (!%p239_p2), %s759_s25, 3 }
   0x6   : > { %242 = sbr.rel (%p239_p2) target bundleno = 612 (0x264), region = 48  ;;  %p271_p3 = scmp.lt.s32.totalorder (!%p239_p2), %s764_s28, 15 }
   0xb   : > { %v823_v0 = vld [vmem:[%s1099_s1 + $0x8] sm:$0xff]  ;;  %v822_v1 = vld [vmem:[%s1099_s1] sm:$0xff]  ;;  %s1107_s28 = smov (!%p271_p3, %s764_s28), 15  ;;  %vm331_vm0 = vcmask 261120   ;;  %v827_v6 = vld [vmem:[%s1101_s3 + $0x18] sm:$0xff]  ;;  %vm421_vm1 = vcmask 523264  }
   0xc   : > { %350 = vmatpush.bf16.msra.mxu0 %v823_v0  ;;  %828 = vmatpush.bf16.msra.mxu3 %v823_v0  ;;  %s765_s8 = sshll.u32 %s1107_s28, 2  ;;  %v826_v7 = vld [vmem:[%s1101_s3 + $0x10] sm:$0xff]  ;;  %v825_v8 = vld [vmem:[%s1101_s3 + $0x8] sm:$0xff]  ;;  %v824_v9 = vld [vmem:[%s1101_s3] sm:$0xff]  ;;  %vm694_vm7 = vcmask 257024  }
   0xd   : > { %s936_s11 = scalar_lea.vmem %s1098_s0, %s765_s8  ;;  %438 = vmatpush.bf16.msra.mxu1 %v827_v6  ;;  %830 = vmatpush.bf16.msra.mxu2 %v827_v6  ;;  %v843_v11 = vld [vmem:[%s1100_s2] ss:$0 sm:$0xff]  ;;  %s1052_s10 = scalar_lea.vmem %s1105_s7, %s765_s8 }
   0xe   : > { %v818_v2 = vld [vmem:[%s936_s11] sm:$0xff]  ;;  %v819_v3 = vld [vmem:[%s936_s11 + $0x8] sm:$0xff]  ;;  %v820_v4 = vld [vmem:[%s936_s11 + $0x10] sm:$0xff] }
   0xf   : > { %v821_v5 = vld [vmem:[%s936_s11 + $0x18] sm:$0xff]  ;;  %v283_v39 = vld [vmem:[%s936_s11] sm:$0xff]   ;;  %v285_v50 = vld [vmem:[%s936_s11 + $0x8] sm:$0xff]  }
  0x10   : > { %351 = vmatpush.bf16.msra.mxu0 %v822_v1  ;;  %829 = vmatpush.bf16.msra.mxu3 %v822_v1  ;;  %v844_v40 = vld [vmem:[%s1102_s4] ss:$0 sm:$0xff]  ;;  %v463_v41 = vunpack.c.l.bf16 %v283_v39  ;;  %v464_v46 = vunpack.c.h.bf16 %v283_v39  ;;  %v465_v52 = vunpack.c.l.bf16 %v285_v50  ;;  %v466_v57 = vunpack.c.h.bf16 %v285_v50  ;;  %v287_v59 = vld [vmem:[%s936_s11 + $0x10] sm:$0xff]  }
  0x11   : > { %439 = vmatpush.bf16.msra.mxu1 %v826_v7  ;;  %831 = vmatpush.bf16.msra.mxu2 %v826_v7  ;;  %v467_v62 = vunpack.c.l.bf16 %v287_v59 }
  0x13   : > { %792 = vmatmul.msk.bf16.vlgmr.msra.gmra.mxu0 %vm331_vm0, %v818_v2  ;;  %793 = vmatmul.msk.bf16.vlgmr.msra.gmra.mxu3 %vm331_vm0, %v819_v3 }
  0x15   : > { %440 = vmatpush.bf16.msra.mxu1 %v825_v8  ;;  %832 = vmatpush.bf16.msra.mxu2 %v825_v8  ;;  %v289_v8 = vld [vmem:[%s936_s11 + $0x18] sm:$0xff]  }
  0x19   : > { %441 = vmatpush.bf16.msra.mxu1 %v824_v9  ;;  %833 = vmatpush.bf16.msra.mxu2 %v824_v9 }
  0x23   : > { %794 = vmatmul.msk.bf16.gmra.mxu3 %vm331_vm0, %v820_v4  ;;  %v468_v4 = vunpack.c.h.bf16 %v287_v59 }
  0x33   : > { %795 = vmatmul.msk.bf16.gmra.mxu3 %vm331_vm0, %v821_v5 }
  0x90   : > { %v353_v10 = vpop.f32.mrf.mxu0 }
  0x91   : > { %v354_v12 = vadd.f32 %v843_v11, %v353_v10  ;;  %v469_v10 = vunpack.c.l.bf16 %v289_v8 }
  0x93   : > { %v373_v15 = vmax.f32 %v354_v12, 0.0 }
  0x96   : > { %v358_v13 = vpop.f32.mrf.mxu3 }
  0x97   : > { %v359_v22 = vadd.f32 %v843_v11, %v358_v13 }
  0x98   : > { %v355_v14 = vpop.f32.mrf.mxu0 }
  0x99   : > { %v356_v16 = vadd.f32 %v843_v11, %v355_v14  ;;  %v375_v24 = vmax.f32 %v359_v22, 0.0 }
  0x9b   : > { %v374_v17 = vmax.f32 %v356_v16, 0.0 }
  0x9d   : > { %v381_v18 = vpack.c.bf16 %v374_v17, %v373_v15  ;;  %v470_v15 = vunpack.c.h.bf16 %v289_v8 }
  0x9e   : > { %v360_v19 = vpop.f32.mrf.mxu3 }
  0x9f   : > { %812 = vmatmul.msk.bf16.vlgmr.msra.gmra.mxu1 %vm421_vm1, %v381_v18  ;;  %v361_v20 = vadd.f32 %v843_v11, %v360_v19 }
  0xa1   : > { %v376_v23 = vmax.f32 %v361_v20, 0.0  ;;  %v873_v20 = vmov 32.0  }
  0xa2   : > { %847 = vrcp.f32 %v873_v20  ;;  %v1036_v20 = vld [vmem:[%s1103_s5] ss:$0 sm:$0xff] }
  0xa3   : > { %v382_v25 = vpack.c.bf16 %v376_v23, %v375_v24 }
  0xa6   : > { %v363_v21 = vpop.f32.mrf.mxu3 }
  0xa7   : > { %v364_v26 = vadd.f32 %v843_v11, %v363_v21 }
  0xa8   : > { %v848_v21 = vpop.eup %847 }
  0xa9   : > { %v377_v29 = vmax.f32 %v364_v26, 0.0  ;;  %v504_v22 = vmul.f32 32.0, %v848_v21  ;;  %vm508_vm2 = vweird.f32 %v848_v21 }
  0xab   : > { %v505_v23 = vsub.f32 1.0, %v504_v22 }
  0xad   : > { %v506_v24 = vmul.f32 %v848_v21, %v505_v23  ;;  %v1041_v23 = vld [vmem:[%s1104_s6] ss:$0 sm:$0xff] }
  0xae   : > { %v365_v27 = vpop.f32.mrf.mxu3 }
  0xaf   : > { %v366_v28 = vadd.f32 %v843_v11, %v365_v27  ;;  %813 = vmatmul.msk.bf16.gmra.mxu1 %vm421_vm1, %v382_v25  ;;  %v507_v25 = vadd.f32 %v848_v21, %v506_v24 }
  0xb1   : > { %v378_v30 = vmax.f32 %v366_v28, 0.0  ;;  %v980_v26 = vsel %vm508_vm2, %v848_v21, %v507_v25 }
  0xb3   : > { %v383_v31 = vpack.c.bf16 %v378_v30, %v377_v29 }
  0xb5   : > { %814 = vmatmul.msk.bf16.vlgmr.msra.gmra.mxu2 %vm421_vm1, %v383_v31 }
  0xb6   : > { %v368_v32 = vpop.f32.mrf.mxu3 }
  0xb7   : > { %v369_v33 = vadd.f32 %v843_v11, %v368_v32 }
  0xb9   : > { %v379_v36 = vmax.f32 %v369_v33, 0.0 }
  0xbe   : > { %v370_v34 = vpop.f32.mrf.mxu3 }
  0xbf   : > { %v371_v35 = vadd.f32 %v843_v11, %v370_v34 }
  0xc1   : > { %v380_v37 = vmax.f32 %v371_v35, 0.0 }
  0xc3   : > { %v384_v38 = vpack.c.bf16 %v380_v37, %v379_v36 }
  0xc5   : > { %815 = vmatmul.msk.bf16.gmra.mxu2 %vm421_vm1, %v384_v38 }
 0x11c   : > { %v443_v42 = vpop.f32.mrf.mxu1 }
 0x11d   : > { %v444_v43 = vadd.f32 %v844_v40, %v443_v42 }
 0x11f   : > { %v471_v44 = vadd.f32 %v463_v41, %v444_v43 }
 0x121   : > { %v479_v45 = vsel %vm331_vm0, %v471_v44, 0.0 }
 0x122   : > { %480 = vadd.xlane.f32.xlu0 %v479_v45 }
 0x124   : > { %v445_v47 = vpop.f32.mrf.mxu1 }
 0x125   : > { %v446_v48 = vadd.f32 %v844_v40, %v445_v47 }
 0x127   : > { %v472_v49 = vadd.f32 %v464_v46, %v446_v48 }
 0x129   : > { %v482_v51 = vsel %vm331_vm0, %v472_v49, 0.0 }
 0x12a   : > { %483 = vadd.xlane.f32.xlu0 %v482_v51 }
 0x12c   : > { %v448_v53 = vpop.f32.mrf.mxu1 }
 0x12d   : > { %v449_v54 = vadd.f32 %v844_v40, %v448_v53 }
 0x12f   : > { %v473_v55 = vadd.f32 %v465_v52, %v449_v54 }
 0x131   : > { %v485_v56 = vsel %vm331_vm0, %v473_v55, 0.0 }
 0x132   : > { %486 = vadd.xlane.f32.xlu1 %v485_v56 }
 0x134   : > { %v450_v58 = vpop.f32.mrf.mxu1 }
 0x135   : > { %v451_v60 = vadd.f32 %v844_v40, %v450_v58 }
 0x137   : > { %v474_v61 = vadd.f32 %v466_v57, %v451_v60 }
 0x138   : > { %v453_v63 = vpop.f32.mrf.mxu2 }
 0x139   : > { %v454_v0 = vadd.f32 %v844_v40, %v453_v63  ;;  %v488_v1 = vsel %vm331_vm0, %v474_v61, 0.0 }
 0x13a   : > { %489 = vadd.xlane.f32.xlu1 %v488_v1 }
 0x13b   : > { %v475_v2 = vadd.f32 %v467_v62, %v454_v0 }
 0x13d   : > { %v491_v3 = vsel %vm331_vm0, %v475_v2, 0.0 }
 0x13e   : > { %492 = vadd.xlane.f32.xlu2 %v491_v3 }
 0x140   : > { %v455_v5 = vpop.f32.mrf.mxu2 }
 0x141   : > { %v456_v6 = vadd.f32 %v844_v40, %v455_v5 }
 0x143   : > { %v476_v7 = vadd.f32 %v468_v4, %v456_v6 }
 0x145   : > { %v494_v9 = vsel %vm331_vm0, %v476_v7, 0.0 }
 0x146   : > { %495 = vadd.xlane.f32.xlu2 %v494_v9 }
 0x148   : > { %v458_v11 = vpop.f32.mrf.mxu2 }
 0x149   : > { %v459_v12 = vadd.f32 %v844_v40, %v458_v11 }
 0x14b   : > { %v477_v13 = vadd.f32 %v469_v10, %v459_v12 }
 0x14d   : > { %v497_v14 = vsel %vm331_vm0, %v477_v13, 0.0 }
 0x14e   : > { %498 = vadd.xlane.f32.xlu0 %v497_v14 }
 0x150   : > { %v460_v16 = vpop.f32.mrf.mxu2 }
 0x151   : > { %v461_v17 = vadd.f32 %v844_v40, %v460_v16 }
 0x153   : > { %v478_v18 = vadd.f32 %v470_v15, %v461_v17 }
 0x155   : > { %v500_v19 = vsel %vm331_vm0, %v478_v18, 0.0 }
 0x156   : > { %501 = vadd.xlane.f32.xlu1 %v500_v19 }
 0x195   : > { %v481_v27 = vpop.xlane.xlu0 %480 }
 0x196   : > { %v510_v28 = vmul.f32 %v980_v26, %v481_v27 }
 0x198   : > { %v983_v29 = vsub.f32 %v471_v44, %v510_v28 }
 0x19a   : > { %v526_v30 = vmul.f32 %v983_v29, %v983_v29 }
 0x19c   : > { %v534_v31 = vsel %vm331_vm0, %v526_v30, 0.0 }
 0x19d   : > { %535 = vadd.xlane.f32.xlu2 %v534_v31  ;;  %v484_v32 = vpop.xlane.xlu0 %483 }
 0x19e   : > { %v511_v33 = vmul.f32 %v980_v26, %v484_v32 }
 0x1a0   : > { %v989_v34 = vsub.f32 %v472_v49, %v511_v33 }
 0x1a2   : > { %v527_v35 = vmul.f32 %v989_v34, %v989_v34 }
 0x1a4   : > { %v537_v36 = vsel %vm331_vm0, %v527_v35, 0.0 }
 0x1a5   : > { %v487_v37 = vpop.xlane.xlu1 %486  ;;  %538 = vadd.xlane.f32.xlu0 %v537_v36 }
 0x1a6   : > { %v512_v38 = vmul.f32 %v980_v26, %v487_v37 }
 0x1a8   : > { %v995_v39 = vsub.f32 %v473_v55, %v512_v38 }
 0x1aa   : > { %v528_v40 = vmul.f32 %v995_v39, %v995_v39 }
 0x1ac   : > { %v540_v41 = vsel %vm331_vm0, %v528_v40, 0.0 }
 0x1ad   : > { %541 = vadd.xlane.f32.xlu1 %v540_v41  ;;  %v490_v42 = vpop.xlane.xlu1 %489 }
 0x1ae   : > { %v513_v43 = vmul.f32 %v980_v26, %v490_v42 }
 0x1b0   : > { %v1001_v44 = vsub.f32 %v474_v61, %v513_v43 }
 0x1b1   : > { %v493_v45 = vpop.xlane.xlu2 %492 }
 0x1b2   : > { %v514_v46 = vmul.f32 %v980_v26, %v493_v45  ;;  %v529_v47 = vmul.f32 %v1001_v44, %v1001_v44 }
 0x1b4   : > { %v1006_v48 = vsub.f32 %v475_v2, %v514_v46  ;;  %v543_v49 = vsel %vm331_vm0, %v529_v47, 0.0 }
 0x1b5   : > { %544 = vadd.xlane.f32.xlu2 %v543_v49 }
 0x1b6   : > { %v530_v50 = vmul.f32 %v1006_v48, %v1006_v48 }
 0x1b8   : > { %v546_v51 = vsel %vm331_vm0, %v530_v50, 0.0 }
 0x1b9   : > { %v496_v52 = vpop.xlane.xlu2 %495  ;;  %547 = vadd.xlane.f32.xlu0 %v546_v51 }
 0x1ba   : > { %v515_v53 = vmul.f32 %v980_v26, %v496_v52 }
 0x1bc   : > { %v1013_v54 = vsub.f32 %v476_v7, %v515_v53 }
 0x1be   : > { %v531_v55 = vmul.f32 %v1013_v54, %v1013_v54 }
 0x1c0   : > { %v549_v56 = vsel %vm331_vm0, %v531_v55, 0.0 }
 0x1c1   : > { %550 = vadd.xlane.f32.xlu1 %v549_v56  ;;  %v499_v57 = vpop.xlane.xlu0 %498 }
 0x1c2   : > { %v516_v58 = vmul.f32 %v980_v26, %v499_v57 }
 0x1c4   : > { %v1019_v59 = vsub.f32 %v477_v13, %v516_v58 }
 0x1c6   : > { %v532_v60 = vmul.f32 %v1019_v59, %v1019_v59 }
 0x1c8   : > { %v552_v61 = vsel %vm331_vm0, %v532_v60, 0.0 }
 0x1c9   : > { %v502_v62 = vpop.xlane.xlu1 %501  ;;  %553 = vadd.xlane.f32.xlu2 %v552_v61 }
 0x1ca   : > { %v517_v63 = vmul.f32 %v980_v26, %v502_v62 }
 0x1cc   : > { %v1025_v0 = vsub.f32 %v478_v18, %v517_v63 }
 0x1ce   : > { %v533_v1 = vmul.f32 %v1025_v0, %v1025_v0 }
 0x1d0   : > { %v555_v2 = vsel %vm331_vm0, %v533_v1, 0.0 }
 0x1d1   : > { %556 = vadd.xlane.f32.xlu0 %v555_v2 }
 0x210   : > { %v536_v3 = vpop.xlane.xlu2 %535 }
 0x211   : > { %v558_v4 = vmul.f32 %v536_v3, %v980_v26 }
 0x213   : > { %v566_v5 = vadd.f32 1e-05, %v558_v4 }
 0x215   : > { %849 = vrsqrt.f32 %v566_v5  ;;  %vm580_vm4 = vweird.f32 %v566_v5 }
 0x218   : > { %v539_v6 = vpop.xlane.xlu0 %538 }
 0x219   : > { %v559_v7 = vmul.f32 %v539_v6, %v980_v26 }
 0x21b   : > { %v850_v8 = vpop.eup %849  ;;  %v567_v9 = vadd.f32 1e-05, %v559_v7 }
 0x21c   : > { %v575_v10 = vmul.f32 %v850_v8, %v566_v5  ;;  %vm581_vm3 = vweird.f32 %v850_v8 }
 0x21d   : > { %851 = vrsqrt.f32 %v567_v9  ;;  %vm582_vm5 = vmor %vm580_vm4, %vm581_vm3  ;;  %vm590_vm8 = vweird.f32 %v567_v9 }
 0x21e   : > { %v576_v11 = vmul.f32 %v850_v8, %v575_v10 }
 0x220   : > { %v577_v12 = vmul.f32 0.5, %v576_v11  ;;  %v542_v13 = vpop.xlane.xlu1 %541 }
 0x221   : > { %v560_v14 = vmul.f32 %v542_v13, %v980_v26 }
 0x222   : > { %v578_v15 = vsub.f32 1.5, %v577_v12 }
 0x223   : > { %v852_v16 = vpop.eup %851  ;;  %v568_v17 = vadd.f32 1e-05, %v560_v14 }
 0x224   : > { %v579_v18 = vmul.f32 %v850_v8, %v578_v15  ;;  %v585_v19 = vmul.f32 %v852_v16, %v567_v9  ;;  %vm591_vm6 = vweird.f32 %v852_v16 }
 0x225   : > { %853 = vrsqrt.f32 %v568_v17  ;;  %vm592_vm9 = vmor %vm590_vm8, %vm591_vm6  ;;  %vm600_vm11 = vweird.f32 %v568_v17 }
 0x226   : > { %v583_v21 = vsel %vm582_vm5, %v850_v8, %v579_v18  ;;  %v586_v22 = vmul.f32 %v852_v16, %v585_v19 }
 0x227   : > { %v654_v24 = vmul.f32 %v583_v21, %v983_v29 }
 0x228   : > { %v587_v25 = vmul.f32 0.5, %v586_v22  ;;  %v545_v27 = vpop.xlane.xlu2 %544 }
 0x229   : > { %v666_v28 = vmul.f32 %v1036_v20, %v654_v24  ;;  %v561_v30 = vmul.f32 %v545_v27, %v980_v26 }
 0x22a   : > { %v588_v31 = vsub.f32 1.5, %v587_v25 }
 0x22b   : > { %v854_v32 = vpop.eup %853  ;;  %v678_v33 = vadd.f32 %v1041_v23, %v666_v28  ;;  %v569_v35 = vadd.f32 1e-05, %v561_v30 }
 0x22c   : > { %v589_v29 = vmul.f32 %v852_v16, %v588_v31  ;;  %v595_v36 = vmul.f32 %v854_v32, %v568_v17  ;;  %v548_v37 = vpop.xlane.xlu0 %547  ;;  %vm601_vm10 = vweird.f32 %v854_v32 }
 0x22d   : > { %v686_v38 = vpack.c.bf16 %v678_v33, %v678_v33  ;;  %855 = vrsqrt.f32 %v569_v35  ;;  %v562_v40 = vmul.f32 %v548_v37, %v980_v26  ;;  %vm602_vm12 = vmor %vm600_vm11, %vm601_vm10  ;;  %vm610_vm14 = vweird.f32 %v569_v35 }
 0x22e   : > { %v593_v41 = vsel %vm592_vm9, %v852_v16, %v589_v29  ;;  %v596_v42 = vmul.f32 %v854_v32, %v595_v36 }
 0x22f   : > { %695 = vst.msk [vmem:[%s1052_s10] sm:$0xf] %vm694_vm7, %v686_v38  ;;  %v655_v43 = vmul.f32 %v593_v41, %v989_v34  ;;  %v570_v45 = vadd.f32 1e-05, %v562_v40 }
 0x230   : > { %v597_v46 = vmul.f32 0.5, %v596_v42 }
 0x231   : > { %v667_v47 = vmul.f32 %v1036_v20, %v655_v43  ;;  %857 = vrsqrt.f32 %v570_v45  ;;  %vm620_vm1 = vweird.f32 %v570_v45 }
 0x232   : > { %v598_v49 = vsub.f32 1.5, %v597_v46 }
 0x233   : > { %v856_v50 = vpop.eup %855  ;;  %v679_v51 = vadd.f32 %v1041_v23, %v667_v47 }
 0x234   : > { %v599_v52 = vmul.f32 %v854_v32, %v598_v49  ;;  %v605_v53 = vmul.f32 %v856_v50, %v569_v35  ;;  %v551_v55 = vpop.xlane.xlu1 %550  ;;  %vm611_vm13 = vweird.f32 %v856_v50 }
 0x235   : > { %v687_v56 = vpack.c.bf16 %v679_v51, %v679_v51  ;;  %v563_v57 = vmul.f32 %v551_v55, %v980_v26  ;;  %vm612_vm15 = vmor %vm610_vm14, %vm611_vm13 }
 0x236   : > { %v603_v34 = vsel %vm602_vm12, %v854_v32, %v599_v52  ;;  %v606_v58 = vmul.f32 %v856_v50, %v605_v53 }
 0x237   : > { %v858_v60 = vpop.eup %857  ;;  %696 = vst.msk [vmem:[%s1052_s10 + $0x4] sm:$0xf] %vm694_vm7, %v687_v56  ;;  %v656_v61 = vmul.f32 %v603_v34, %v995_v39  ;;  %v571_v62 = vadd.f32 1e-05, %v563_v57 }
 0x238   : > { %v607_v63 = vmul.f32 0.5, %v606_v58  ;;  %v615_v1 = vmul.f32 %v858_v60, %v570_v45  ;;  %vm621_vm0 = vweird.f32 %v858_v60 }
 0x239   : > { %v668_v2 = vmul.f32 %v1036_v20, %v656_v61  ;;  %859 = vrsqrt.f32 %v571_v62  ;;  %vm622_vm2 = vmor %vm620_vm1, %vm621_vm0  ;;  %vm630_vm4 = vweird.f32 %v571_v62 }
 0x23a   : > { %v608_v3 = vsub.f32 1.5, %v607_v63  ;;  %v616_v4 = vmul.f32 %v858_v60, %v615_v1 }
 0x23b   : > { %v680_v5 = vadd.f32 %v1041_v23, %v668_v2 }
 0x23c   : > { %v609_v6 = vmul.f32 %v856_v50, %v608_v3  ;;  %v617_v7 = vmul.f32 0.5, %v616_v4  ;;  %v554_v8 = vpop.xlane.xlu2 %553 }
 0x23d   : > { %v688_v9 = vpack.c.bf16 %v680_v5, %v680_v5  ;;  %v564_v39 = vmul.f32 %v554_v8, %v980_v26 }
 0x23e   : > { %v613_v10 = vsel %vm612_vm15, %v856_v50, %v609_v6  ;;  %v618_v11 = vsub.f32 1.5, %v617_v7 }
 0x23f   : > { %v860_v12 = vpop.eup %859  ;;  %697 = vst.msk [vmem:[%s1052_s10 + $0x8] sm:$0xf] %vm694_vm7, %v688_v9  ;;  %v657_v13 = vmul.f32 %v613_v10, %v1001_v44  ;;  %v572_v14 = vadd.f32 1e-05, %v564_v39 }
 0x240   : > { %v619_v15 = vmul.f32 %v858_v60, %v618_v11  ;;  %v625_v16 = vmul.f32 %v860_v12, %v571_v62  ;;  %vm631_vm3 = vweird.f32 %v860_v12 }
 0x241   : > { %v669_v17 = vmul.f32 %v1036_v20, %v657_v13  ;;  %861 = vrsqrt.f32 %v572_v14  ;;  %vm632_vm5 = vmor %vm630_vm4, %vm631_vm3  ;;  %vm640_vm8 = vweird.f32 %v572_v14 }
 0x242   : > { %v623_v18 = vsel %vm622_vm2, %v858_v60, %v619_v15  ;;  %v626_v19 = vmul.f32 %v860_v12, %v625_v16 }
 0x243   : > { %v681_v21 = vadd.f32 %v1041_v23, %v669_v17  ;;  %v658_v22 = vmul.f32 %v623_v18, %v1006_v48 }
 0x244   : > { %v627_v24 = vmul.f32 0.5, %v626_v19  ;;  %v557_v25 = vpop.xlane.xlu0 %556 }
 0x245   : > { %v689_v27 = vpack.c.bf16 %v681_v21, %v681_v21  ;;  %v670_v44 = vmul.f32 %v1036_v20, %v658_v22  ;;  %v565_v28 = vmul.f32 %v557_v25, %v980_v26 }
 0x246   : > { %v628_v30 = vsub.f32 1.5, %v627_v24 }
 0x247   : > { %v862_v31 = vpop.eup %861  ;;  %698 = vst.msk [vmem:[%s1052_s10 + $0xc] sm:$0xf] %vm694_vm7, %v689_v27  ;;  %v682_v32 = vadd.f32 %v1041_v23, %v670_v44  ;;  %v573_v33 = vadd.f32 1e-05, %v565_v28 }
 0x248   : > { %v629_v35 = vmul.f32 %v860_v12, %v628_v30  ;;  %v635_v29 = vmul.f32 %v862_v31, %v572_v14  ;;  %vm641_vm6 = vweird.f32 %v862_v31 }
 0x249   : > { %v690_v48 = vpack.c.bf16 %v682_v32, %v682_v32  ;;  %863 = vrsqrt.f32 %v573_v33  ;;  %vm642_vm9 = vmor %vm640_vm8, %vm641_vm6  ;;  %vm650_vm11 = vweird.f32 %v573_v33 }
 0x24a   : > { %v633_v36 = vsel %vm632_vm5, %v860_v12, %v629_v35  ;;  %v636_v37 = vmul.f32 %v862_v31, %v635_v29 }
 0x24b   : > { %699 = vst.msk [vmem:[%s1052_s10 + $0x10] sm:$0xf] %vm694_vm7, %v690_v48  ;;  %v659_v26 = vmul.f32 %v633_v36, %v1013_v54 }
 0x24c   : > { %v637_v38 = vmul.f32 0.5, %v636_v37 }
 0x24d   : > { %v671_v40 = vmul.f32 %v1036_v20, %v659_v26 }
 0x24e   : > { %v638_v41 = vsub.f32 1.5, %v637_v38 }
 0x24f   : > { %v864_v42 = vpop.eup %863  ;;  %v683_v43 = vadd.f32 %v1041_v23, %v671_v40 }
 0x250   : > { %v639_v45 = vmul.f32 %v862_v31, %v638_v41  ;;  %v645_v46 = vmul.f32 %v864_v42, %v573_v33  ;;  %vm651_vm10 = vweird.f32 %v864_v42 }
 0x251   : > { %v691_v47 = vpack.c.bf16 %v683_v43, %v683_v43  ;;  %vm652_vm12 = vmor %vm650_vm11, %vm651_vm10 }
 0x252   : > { %v643_v49 = vsel %vm642_vm9, %v862_v31, %v639_v45  ;;  %v646_v50 = vmul.f32 %v864_v42, %v645_v46 }
 0x253   : > { %700 = vst.msk [vmem:[%s1052_s10 + $0x14] sm:$0xf] %vm694_vm7, %v691_v47  ;;  %v660_v54 = vmul.f32 %v643_v49, %v1019_v59 }
 0x254   : > { %v647_v51 = vmul.f32 0.5, %v646_v50 }
 0x255   : > { %v672_v52 = vmul.f32 %v1036_v20, %v660_v54 }
 0x256   : > { %v648_v53 = vsub.f32 1.5, %v647_v51 }
 0x257   : > { %v684_v55 = vadd.f32 %v1041_v23, %v672_v52 }
 0x258   : > { %v649_v56 = vmul.f32 %v864_v42, %v648_v53 }
 0x259   : > { %v692_v57 = vpack.c.bf16 %v684_v55, %v684_v55 }
 0x25a   : > { %v653_v34 = vsel %vm652_vm12, %v864_v42, %v649_v56 }
 0x25b   : > { %701 = vst.msk [vmem:[%s1052_s10 + $0x18] sm:$0xf] %vm694_vm7, %v692_v57  ;;  %v661_v58 = vmul.f32 %v653_v34, %v1025_v0 }
 0x25d   : > { %v673_v60 = vmul.f32 %v1036_v20, %v661_v58 }
 0x25f   : > { %v685_v59 = vadd.f32 %v1041_v23, %v673_v60 }
 0x261   : > { %v693_v61 = vpack.c.bf16 %v685_v59, %v685_v59 }
 0x263   : > { %702 = vst.msk [vmem:[%s1052_s10 + $0x1c] sm:$0xf] %vm694_vm7, %v693_v61 }
 0x264 PF: > { %s17_s24 = sadd.s32 1, %s871_s24  }
 0x265   : > { %p14_p4 = scmp.ge.s32.totalorder %s17_s24, 4  }
 0x267   :  { %16 = sbr.rel (!%p14_p4) target bundleno = 1 (0x1), region = 78 }

// kernel: rtdetr_forward.18
= control target key start
LH: loop header
LB: loop body
LE: loop exit
PB: predicated region body
PF: predicated region fallthrough
CT: control target
= control target key end

     0   :  { %s647_s12 = smov 0   ;;  %s649_s13 = smov 0   ;;  %s704_s0 = inlined_call_operand.vmem [shape: bf16[2,16,32], index: 0, kind: input, shape index: {}]   ;;  %s705_s1 = inlined_call_operand.vmem [shape: bf16[2,64,32], index: 1, kind: input, shape index: {}]   ;;  %s706_s2 = inlined_call_operand.vmem [shape: bf16[2,64,32], index: 2, kind: input, shape index: {}]   ;;  %s707_s3 = inlined_call_operand.vmem [shape: bf16[2,16,32], index: 3, kind: output, shape index: {}]  }
   0x1   :  { %s651_s14 = smov 0  }
   0x2 LB: > { %s25_s15 = sadd.s32 1, %s621_s13  ;;  %p509_p0 = scmp.ge.s32.totalorder %s625_s14, 1  ;;  %s625_s14 = sphi %s651_s14, %s13_s14   ;;  %s621_s13 = sphi %s649_s13, %s709_s13   ;;  %s617_s12 = sphi %s647_s12, %s708_s12  }
   0x3   : > { %p27_p1 = scmp.ge.s32.totalorder %s25_s15, 2  ;;  %p178_p2 = scmp.lt.s32.totalorder %s625_s14, 3 }
   0x5   : > { %s711_s15 = smov (%p27_p1, %s25_s15), 0  ;;  %p179_p3 = pnand %p509_p0, %p178_p2 }
   0x6   : > { %p221_p4 = scmp.lt.s32.totalorder (!%p179_p3), %s617_s12, 1 }
   0x7   : > { %182 = sbr.rel (%p179_p3) target bundleno = 451 (0x1c3), region = 32 }
   0xc   : > { %s713_s12 = smov (!%p221_p4, %s617_s12), 1  ;;  %vm294_vm0 = vcmask 261120   ;;  %vm324_vm1 = vcmask 523264   ;;  %vm391_vm2 = vcmask 257024  }
   0xd   : > { %s559_s16 = sshll.u32 %s713_s12, 5  ;;  %s558_s20 = sshll.u32 %s713_s12, 3 }
   0xe   : > { %s234_s19 = scalar_lea.vmem %s705_s1, %s559_s16  ;;  %s228_s23 = scalar_lea.vmem %s704_s0, %s558_s20 }
   0xf   : > { %v566_v0 = vld [vmem:[%s234_s19 + $0x18] sm:$0xff]  ;;  %v565_v2 = vld [vmem:[%s234_s19 + $0x10] sm:$0xff]  ;;  %v564_v4 = vld [vmem:[%s234_s19 + $0x8] sm:$0xff]  ;;  %s239_s26 = scalar_lea.vmem %s706_s2, %s559_s16  ;;  %s248_s29 = scalar_lea.vmem %s707_s3, %s558_s20 }
  0x10   : > { %v308_v1 = vsel %vm294_vm0, %v566_v0, 0  ;;  %v305_v3 = vsel %vm294_vm0, %v565_v2, 0  ;;  %v302_v5 = vsel %vm294_vm0, %v564_v4, 0  ;;  %v563_v6 = vld [vmem:[%s234_s19] sm:$0xff]  ;;  %v570_v13 = vld [vmem:[%s239_s26 + $0x18] sm:$0xff]  ;;  %v569_v14 = vld [vmem:[%s239_s26 + $0x10] sm:$0xff] }
  0x11   : > { %314 = vmatpush.bf16.xpose.msra.mxu0 %v308_v1  ;;  %v299_v7 = vsel %vm294_vm0, %v563_v6, 0  ;;  %v562_v8 = vld [vmem:[%s228_s23] sm:$0xff]  ;;  %375 = vmatpush.bf16.msra.mxu1 %v570_v13  ;;  %v568_v15 = vld [vmem:[%s239_s26 + $0x8] sm:$0xff] }
  0x12   : > { %v567_v16 = vld [vmem:[%s239_s26] sm:$0xff] }
  0x15   : > { %376 = vmatpush.bf16.msra.mxu1 %v569_v14 }
  0x19   : > { %315 = vmatpush.bf16.xpose.msra.mxu0 %v305_v3  ;;  %377 = vmatpush.bf16.msra.mxu1 %v568_v15 }
  0x1d   : > { %378 = vmatpush.bf16.msra.mxu1 %v567_v16 }
  0x21   : > { %316 = vmatpush.bf16.xpose.msra.mxu0 %v302_v5 }
  0x29   : > { %317 = vmatpush.bf16.xpose.msra.mxu0 %v299_v7 }
  0x30   : > { %538 = vmatmul.msk.bf16.vlgmr.msra.gmra.mxu0 %vm294_vm0, %v562_v8 }
  0xad   : > { %v319_v9 = vpop.f32.mrf.mxu0 }
  0xae   : > { %v325_v10 = vsel %vm324_vm1, %v319_v9, -inf }
  0xaf   : > { %326 = vmax.xlane.f32.xlu0 %v325_v10 }
  0xb5   : > { %v321_v11 = vpop.f32.mrf.mxu0 }
  0xb6   : > { %v328_v12 = vsel %vm324_vm1, %v321_v11, -inf }
  0xb7   : > { %329 = vmax.xlane.f32.xlu0 %v328_v12 }
 0x122   : > { %v327_v17 = vpop.xlane.xlu0 %326 }
 0x123   : > { %v331_v18 = vsub.f32 %v319_v9, %v327_v17 }
 0x125   : > { %v333_v19 = vmul.f32 1.442695, %v331_v18 }
 0x127   : > { %595 = vpow2.f32 %v333_v19 }
 0x12a   : > { %v330_v20 = vpop.xlane.xlu0 %329 }
 0x12b   : > { %v332_v21 = vsub.f32 %v321_v11, %v330_v20 }
 0x12d   : > { %v596_v22 = vpop.eup %595  ;;  %v335_v23 = vmul.f32 1.442695, %v332_v21 }
 0x12e   : > { %v337_v24 = vsel %vm324_vm1, %v596_v22, 0.0 }
 0x12f   : > { %597 = vpow2.f32 %v335_v23  ;;  %338 = vadd.xlane.f32.xlu1 %v337_v24 }
 0x135   : > { %v598_v25 = vpop.eup %597 }
 0x136   : > { %v340_v26 = vsel %vm324_vm1, %v598_v25, 0.0  ;;  %v343_v27 = vpack.c.bf16 %v598_v25, %v596_v22 }
 0x137   : > { %341 = vadd.xlane.f32.xlu1 %v340_v26 }
 0x138   : > { %555 = vmatmul.msk.bf16.vlgmr.msra.gmra.mxu1 %vm324_vm1, %v343_v27 }
 0x1a2   : > { %v339_v28 = vpop.xlane.xlu1 %338 }
 0x1a3   : > { %599 = vrcp.f32 %v339_v28 }
 0x1a9   : > { %v600_v30 = vpop.eup %599 }
 0x1aa   : > { %v342_v29 = vpop.xlane.xlu1 %341 }
 0x1ab   : > { %601 = vrcp.f32 %v342_v29 }
 0x1b1   : > { %v602_v34 = vpop.eup %601 }
 0x1b5   : > { %v380_v31 = vpop.f32.mrf.mxu1 }
 0x1b6   : > { %v387_v32 = vmul.f32 %v600_v30, %v380_v31 }
 0x1b8   : > { %v389_v33 = vpack.c.bf16 %v387_v32, %v387_v32 }
 0x1ba   : > { %392 = vst.msk [vmem:[%s248_s29] sm:$0xf] %vm391_vm2, %v389_v33 }
 0x1bd   : > { %v382_v35 = vpop.f32.mrf.mxu1 }
 0x1be   : > { %v388_v36 = vmul.f32 %v602_v34, %v382_v35 }
 0x1c0   : > { %v390_v37 = vpack.c.bf16 %v388_v36, %v388_v36 }
 0x1c2   : > { %393 = vst.msk [vmem:[%s248_s29 + $0x4] sm:$0xf] %vm391_vm2, %v390_v37 }
 0x1c3 PF: > { %s13_s14 = sadd.s32 1, %s625_s14   ;;  %s708_s12 = smov %s621_s13 }
 0x1c4   : > { %p10_p5 = scmp.ge.s32.totalorder %s13_s14, 4   ;;  %s709_s13 = smov %s711_s15 }
 0x1c6   :  { %12 = sbr.rel (!%p10_p5) target bundleno = 2 (0x2), region = 68 }

// kernel: rtdetr_forward.20
= control target key start
LH: loop header
LB: loop body
LE: loop exit
PB: predicated region body
PF: predicated region fallthrough
CT: control target
= control target key end

     0   :  { %vm54_vm0 = vcmask 261120   ;;  %vm111_vm1 = vcmask 523264   ;;  %v253_v27 = vmov 32.0   ;;  %vm198_vm7 = vcmask 257024   ;;  %s341_s1 = inlined_call_operand.vmem [shape: bf16[32,64], index: 1, kind: input, shape index: {}]   ;;  %s342_s2 = inlined_call_operand.vmem [shape: f32[1,64], index: 2, kind: input, shape index: {}]   ;;  %s343_s0 = inlined_call_operand.vmem [shape: bf16[16,32], index: 0, kind: input, shape index: {}]   ;;  %s344_s4 = inlined_call_operand.vmem [shape: f32[1,32], index: 4, kind: input, shape index: {}]   ;;  %s345_s3 = inlined_call_operand.vmem [shape: bf16[64,32], index: 3, kind: input, shape index: {}]   ;;  %s346_s5 = inlined_call_operand.vmem [shape: f32[1,32], index: 5, kind: input, shape index: {}]   ;;  %s347_s6 = inlined_call_operand.vmem [shape: f32[1,32], index: 6, kind: input, shape index: {}]   ;;  %s348_s7 = inlined_call_operand.vmem [shape: bf16[16,32], index: 7, kind: output, shape index: {}]  }
   0x1   :  { %v237_v0 = vld [vmem:[%s341_s1 + $0x8] sm:$0xff]  ;;  %v236_v1 = vld [vmem:[%s341_s1] sm:$0xff]  ;;  %v241_v3 = vld [vmem:[%s345_s3 + $0x18] sm:$0xff]  ;;  %247 = vrcp.f32 %v253_v27 }
   0x2   :  { %64 = vmatpush.bf16.msra.mxu0 %v237_v0  ;;  %v235_v2 = vld [vmem:[%s343_s0] sm:$0xff]  ;;  %119 = vmatpush.bf16.msra.mxu1 %v241_v3  ;;  %v240_v4 = vld [vmem:[%s345_s3 + $0x10] sm:$0xff]  ;;  %v239_v5 = vld [vmem:[%s345_s3 + $0x8] sm:$0xff] }
   0x3   :  { %v238_v6 = vld [vmem:[%s345_s3] sm:$0xff] }
   0x4   :  { %v243_v8 = vld [vmem:[%s342_s2] ss:$0 sm:$0xff] }
   0x5   :  { %v27_v15 = vld [vmem:[%s343_s0] sm:$0xff]  }
   0x6   :  { %65 = vmatpush.bf16.msra.mxu0 %v236_v1  ;;  %120 = vmatpush.bf16.msra.mxu1 %v240_v4  ;;  %v244_v16 = vld [vmem:[%s344_s4] ss:$0 sm:$0xff]  ;;  %v129_v17 = vunpack.c.l.bf16 %v27_v15  ;;  %v130_v22 = vunpack.c.h.bf16 %v27_v15 }
   0x7   :  { %v248_v28 = vpop.eup %247  ;;  %v245_v58 = vld [vmem:[%s346_s5] ss:$0 sm:$0xff] }
   0x8   :  { %v140_v29 = vmul.f32 32.0, %v248_v28  ;;  %vm144_vm2 = vweird.f32 %v248_v28  ;;  %v246_v61 = vld [vmem:[%s347_s6] ss:$0 sm:$0xff] }
   0x9   :  { %217 = vmatmul.msk.bf16.vlgmr.msra.gmra.mxu0 %vm54_vm0, %v235_v2 }
   0xa   :  { %121 = vmatpush.bf16.msra.mxu1 %v239_v5  ;;  %v141_v30 = vsub.f32 1.0, %v140_v29 }
   0xc   :  { %v142_v31 = vmul.f32 %v248_v28, %v141_v30 }
   0xe   :  { %122 = vmatpush.bf16.msra.mxu1 %v238_v6  ;;  %v143_v32 = vadd.f32 %v248_v28, %v142_v31 }
  0x10   :  { %v145_v33 = vsel %vm144_vm2, %v248_v28, %v143_v32 }
  0x86   :  { %v67_v7 = vpop.f32.mrf.mxu0 }
  0x87   :  { %v68_v9 = vadd.f32 %v243_v8, %v67_v7 }
  0x89   :  { %v72_v12 = vmax.f32 %v68_v9, 0.0 }
  0x8e   :  { %v69_v10 = vpop.f32.mrf.mxu0 }
  0x8f   :  { %v70_v11 = vadd.f32 %v243_v8, %v69_v10 }
  0x91   :  { %v73_v13 = vmax.f32 %v70_v11, 0.0 }
  0x93   :  { %v74_v14 = vpack.c.bf16 %v73_v13, %v72_v12 }
  0x95   :  { %234 = vmatmul.msk.bf16.vlgmr.msra.gmra.mxu1 %vm111_vm1, %v74_v14 }
 0x112   :  { %v124_v18 = vpop.f32.mrf.mxu1 }
 0x113   :  { %v125_v19 = vadd.f32 %v244_v16, %v124_v18 }
 0x115   :  { %v131_v20 = vadd.f32 %v129_v17, %v125_v19 }
 0x117   :  { %v133_v21 = vsel %vm54_vm0, %v131_v20, 0.0 }
 0x118   :  { %134 = vadd.xlane.f32.xlu0 %v133_v21 }
 0x11a   :  { %v126_v23 = vpop.f32.mrf.mxu1 }
 0x11b   :  { %v127_v24 = vadd.f32 %v244_v16, %v126_v23 }
 0x11d   :  { %v132_v25 = vadd.f32 %v130_v22, %v127_v24 }
 0x11f   :  { %v136_v26 = vsel %vm54_vm0, %v132_v25, 0.0 }
 0x120   :  { %137 = vadd.xlane.f32.xlu0 %v136_v26 }
 0x18b   :  { %v135_v34 = vpop.xlane.xlu0 %134 }
 0x18c   :  { %v146_v35 = vmul.f32 %v145_v33, %v135_v34 }
 0x18e   :  { %v148_v36 = vsub.f32 %v131_v20, %v146_v35 }
 0x190   :  { %v150_v37 = vmul.f32 %v148_v36, %v148_v36 }
 0x192   :  { %v152_v38 = vsel %vm54_vm0, %v150_v37, 0.0 }
 0x193   :  { %153 = vadd.xlane.f32.xlu1 %v152_v38  ;;  %v138_v39 = vpop.xlane.xlu0 %137 }
 0x194   :  { %v147_v40 = vmul.f32 %v145_v33, %v138_v39 }
 0x196   :  { %v149_v41 = vsub.f32 %v132_v25, %v147_v40 }
 0x198   :  { %v151_v42 = vmul.f32 %v149_v41, %v149_v41 }
 0x19a   :  { %v155_v43 = vsel %vm54_vm0, %v151_v42, 0.0 }
 0x19b   :  { %156 = vadd.xlane.f32.xlu1 %v155_v43 }
 0x206   :  { %v154_v44 = vpop.xlane.xlu1 %153 }
 0x207   :  { %v158_v45 = vmul.f32 %v154_v44, %v145_v33 }
 0x209   :  { %v160_v46 = vadd.f32 1e-05, %v158_v45 }
 0x20b   :  { %249 = vrsqrt.f32 %v160_v46  ;;  %vm168_vm4 = vweird.f32 %v160_v46 }
 0x20e   :  { %v157_v47 = vpop.xlane.xlu1 %156 }
 0x20f   :  { %v159_v48 = vmul.f32 %v157_v47, %v145_v33 }
 0x211   :  { %v250_v49 = vpop.eup %249  ;;  %v161_v50 = vadd.f32 1e-05, %v159_v48 }
 0x212   :  { %v163_v51 = vmul.f32 %v250_v49, %v160_v46  ;;  %vm169_vm3 = vweird.f32 %v250_v49 }
 0x213   :  { %251 = vrsqrt.f32 %v161_v50  ;;  %vm170_vm5 = vmor %vm168_vm4, %vm169_vm3  ;;  %vm178_vm8 = vweird.f32 %v161_v50 }
 0x214   :  { %v164_v52 = vmul.f32 %v250_v49, %v163_v51 }
 0x216   :  { %v165_v53 = vmul.f32 0.5, %v164_v52 }
 0x218   :  { %v166_v54 = vsub.f32 1.5, %v165_v53 }
 0x219   :  { %v252_v55 = vpop.eup %251 }
 0x21a   :  { %v167_v56 = vmul.f32 %v250_v49, %v166_v54  ;;  %v173_v57 = vmul.f32 %v252_v55, %v161_v50  ;;  %vm179_vm6 = vweird.f32 %v252_v55 }
 0x21b   :  { %vm180_vm9 = vmor %vm178_vm8, %vm179_vm6 }
 0x21c   :  { %v171_v59 = vsel %vm170_vm5, %v250_v49, %v167_v56  ;;  %v174_v60 = vmul.f32 %v252_v55, %v173_v57 }
 0x21d   :  { %v182_v62 = vmul.f32 %v171_v59, %v148_v36 }
 0x21e   :  { %v175_v63 = vmul.f32 0.5, %v174_v60 }
 0x21f   :  { %v188_v0 = vmul.f32 %v245_v58, %v182_v62 }
 0x220   :  { %v176_v1 = vsub.f32 1.5, %v175_v63 }
 0x221   :  { %v194_v2 = vadd.f32 %v246_v61, %v188_v0 }
 0x222   :  { %v177_v3 = vmul.f32 %v252_v55, %v176_v1 }
 0x223   :  { %v196_v4 = vpack.c.bf16 %v194_v2, %v194_v2 }
 0x224   :  { %v181_v5 = vsel %vm180_vm9, %v252_v55, %v177_v3 }
 0x225   :  { %199 = vst.msk [vmem:[%s348_s7] sm:$0xf] %vm198_vm7, %v196_v4  ;;  %v183_v6 = vmul.f32 %v181_v5, %v149_v41 }
 0x227   :  { %v189_v7 = vmul.f32 %v245_v58, %v183_v6 }
 0x229   :  { %v195_v8 = vadd.f32 %v246_v61, %v189_v7 }
 0x22b   :  { %v197_v9 = vpack.c.bf16 %v195_v8, %v195_v8 }
 0x22d   :  { %200 = vst.msk [vmem:[%s348_s7 + $0x4] sm:$0xf] %vm198_vm7, %v197_v9 }

// kernel: rtdetr_forward.19
= control target key start
LH: loop header
LB: loop body
LE: loop exit
PB: predicated region body
PF: predicated region fallthrough
CT: control target
= control target key end

     0   :  { %vm51_vm0 = vcmask 261120   ;;  %v177_v15 = vmov 32.0   ;;  %vm140_vm6 = vcmask 257024   ;;  %s245_s1 = inlined_call_operand.vmem [shape: bf16[32,32], index: 1, kind: input, shape index: {}]   ;;  %s246_s2 = inlined_call_operand.vmem [shape: f32[1,32], index: 2, kind: input, shape index: {}]   ;;  %s247_s0 = inlined_call_operand.vmem [shape: bf16[16,32], index: 0, kind: input, shape index: {}]   ;;  %s248_s3 = inlined_call_operand.vmem [shape: bf16[16,32], index: 3, kind: input, shape index: {}]   ;;  %s249_s4 = inlined_call_operand.vmem [shape: f32[1,32], index: 4, kind: input, shape index: {}]   ;;  %s250_s5 = inlined_call_operand.vmem [shape: f32[1,32], index: 5, kind: input, shape index: {}]   ;;  %s251_s6 = inlined_call_operand.vmem [shape: bf16[16,32], index: 6, kind: output, shape index: {}]  }
   0x1   :  { %v162_v0 = vld [vmem:[%s245_s1 + $0x8] sm:$0xff]  ;;  %v161_v1 = vld [vmem:[%s245_s1] sm:$0xff]  ;;  %171 = vrcp.f32 %v177_v15 }
   0x2   :  { %61 = vmatpush.bf16.msra.mxu0 %v162_v0  ;;  %v160_v2 = vld [vmem:[%s247_s0] sm:$0xff] }
   0x3   :  { %v164_v3 = vld [vmem:[%s248_s3] sm:$0xff]  }
   0x4   :  { %v168_v4 = vld [vmem:[%s246_s2] ss:$0 sm:$0xff]  ;;  %v165_v5 = vunpack.c.l.bf16 %v164_v3  ;;  %v166_v10 = vunpack.c.h.bf16 %v164_v3 }
   0x5   :  { %v169_v46 = vld [vmem:[%s249_s4] ss:$0 sm:$0xff] }
   0x6   :  { %62 = vmatpush.bf16.msra.mxu0 %v161_v1  ;;  %v170_v49 = vld [vmem:[%s250_s5] ss:$0 sm:$0xff] }
   0x7   :  { %v172_v16 = vpop.eup %171 }
   0x8   :  { %v82_v17 = vmul.f32 32.0, %v172_v16  ;;  %vm86_vm1 = vweird.f32 %v172_v16 }
   0x9   :  { %159 = vmatmul.msk.bf16.vlgmr.msra.gmra.mxu0 %vm51_vm0, %v160_v2 }
   0xa   :  { %v83_v18 = vsub.f32 1.0, %v82_v17 }
   0xc   :  { %v84_v19 = vmul.f32 %v172_v16, %v83_v18 }
   0xe   :  { %v85_v20 = vadd.f32 %v172_v16, %v84_v19 }
  0x10   :  { %v87_v21 = vsel %vm86_vm1, %v172_v16, %v85_v20 }
  0x86   :  { %v64_v6 = vpop.f32.mrf.mxu0 }
  0x87   :  { %v65_v7 = vadd.f32 %v168_v4, %v64_v6 }
  0x89   :  { %v73_v8 = vadd.f32 %v165_v5, %v65_v7 }
  0x8b   :  { %v75_v9 = vsel %vm51_vm0, %v73_v8, 0.0 }
  0x8c   :  { %76 = vadd.xlane.f32.xlu0 %v75_v9 }
  0x8e   :  { %v66_v11 = vpop.f32.mrf.mxu0 }
  0x8f   :  { %v67_v12 = vadd.f32 %v168_v4, %v66_v11 }
  0x91   :  { %v74_v13 = vadd.f32 %v166_v10, %v67_v12 }
  0x93   :  { %v78_v14 = vsel %vm51_vm0, %v74_v13, 0.0 }
  0x94   :  { %79 = vadd.xlane.f32.xlu0 %v78_v14 }
  0xff   :  { %v77_v22 = vpop.xlane.xlu0 %76 }
 0x100   :  { %v88_v23 = vmul.f32 %v87_v21, %v77_v22 }
 0x102   :  { %v90_v24 = vsub.f32 %v73_v8, %v88_v23 }
 0x104   :  { %v92_v25 = vmul.f32 %v90_v24, %v90_v24 }
 0x106   :  { %v94_v26 = vsel %vm51_vm0, %v92_v25, 0.0 }
 0x107   :  { %95 = vadd.xlane.f32.xlu1 %v94_v26  ;;  %v80_v27 = vpop.xlane.xlu0 %79 }
 0x108   :  { %v89_v28 = vmul.f32 %v87_v21, %v80_v27 }
 0x10a   :  { %v91_v29 = vsub.f32 %v74_v13, %v89_v28 }
 0x10c   :  { %v93_v30 = vmul.f32 %v91_v29, %v91_v29 }
 0x10e   :  { %v97_v31 = vsel %vm51_vm0, %v93_v30, 0.0 }
 0x10f   :  { %98 = vadd.xlane.f32.xlu1 %v97_v31 }
 0x17a   :  { %v96_v32 = vpop.xlane.xlu1 %95 }
 0x17b   :  { %v100_v33 = vmul.f32 %v96_v32, %v87_v21 }
 0x17d   :  { %v102_v34 = vadd.f32 1e-05, %v100_v33 }
 0x17f   :  { %173 = vrsqrt.f32 %v102_v34  ;;  %vm110_vm3 = vweird.f32 %v102_v34 }
 0x182   :  { %v99_v35 = vpop.xlane.xlu1 %98 }
 0x183   :  { %v101_v36 = vmul.f32 %v99_v35, %v87_v21 }
 0x185   :  { %v174_v37 = vpop.eup %173  ;;  %v103_v38 = vadd.f32 1e-05, %v101_v36 }
 0x186   :  { %v105_v39 = vmul.f32 %v174_v37, %v102_v34  ;;  %vm111_vm2 = vweird.f32 %v174_v37 }
 0x187   :  { %175 = vrsqrt.f32 %v103_v38  ;;  %vm112_vm4 = vmor %vm110_vm3, %vm111_vm2  ;;  %vm120_vm7 = vweird.f32 %v103_v38 }
 0x188   :  { %v106_v40 = vmul.f32 %v174_v37, %v105_v39 }
 0x18a   :  { %v107_v41 = vmul.f32 0.5, %v106_v40 }
 0x18c   :  { %v108_v42 = vsub.f32 1.5, %v107_v41 }
 0x18d   :  { %v176_v43 = vpop.eup %175 }
 0x18e   :  { %v109_v44 = vmul.f32 %v174_v37, %v108_v42  ;;  %v115_v45 = vmul.f32 %v176_v43, %v103_v38  ;;  %vm121_vm5 = vweird.f32 %v176_v43 }
 0x18f   :  { %vm122_vm8 = vmor %vm120_vm7, %vm121_vm5 }
 0x190   :  { %v113_v47 = vsel %vm112_vm4, %v174_v37, %v109_v44  ;;  %v116_v48 = vmul.f32 %v176_v43, %v115_v45 }
 0x191   :  { %v124_v50 = vmul.f32 %v113_v47, %v90_v24 }
 0x192   :  { %v117_v51 = vmul.f32 0.5, %v116_v48 }
 0x193   :  { %v130_v52 = vmul.f32 %v169_v46, %v124_v50 }
 0x194   :  { %v118_v53 = vsub.f32 1.5, %v117_v51 }
 0x195   :  { %v136_v54 = vadd.f32 %v170_v49, %v130_v52 }
 0x196   :  { %v119_v55 = vmul.f32 %v176_v43, %v118_v53 }
 0x197   :  { %v138_v56 = vpack.c.bf16 %v136_v54, %v136_v54 }
 0x198   :  { %v123_v57 = vsel %vm122_vm8, %v176_v43, %v119_v55 }
 0x199   :  { %141 = vst.msk [vmem:[%s251_s6] sm:$0xf] %vm140_vm6, %v138_v56  ;;  %v125_v58 = vmul.f32 %v123_v57, %v91_v29 }
 0x19b   :  { %v131_v59 = vmul.f32 %v169_v46, %v125_v58 }
 0x19d   :  { %v137_v60 = vadd.f32 %v170_v49, %v131_v59 }
 0x19f   :  { %v139_v61 = vpack.c.bf16 %v137_v60, %v137_v60 }
 0x1a1   :  { %142 = vst.msk [vmem:[%s251_s6 + $0x4] sm:$0xf] %vm140_vm6, %v139_v61 }

// kernel: rtdetr_forward.21
= control target key start
LH: loop header
LB: loop body
LE: loop exit
PB: predicated region body
PF: predicated region fallthrough
CT: control target
= control target key end

     0   :  { %vm40_vm0 = vcmask 261120   ;;  %s305_s1 = inlined_call_operand.vmem [shape: f32[32,160], index: 1, kind: input, shape index: {}]   ;;  %s306_s0 = inlined_call_operand.vmem [shape: bf16[16,32], index: 0, kind: input, shape index: {}]   ;;  %s307_s3 = inlined_call_operand.vmem [shape: f32[32,128], index: 3, kind: input, shape index: {}]   ;;  %s308_s4 = inlined_call_operand.vmem [shape: f32[1,128], index: 4, kind: input, shape index: {}]   ;;  %s309_s2 = inlined_call_operand.vmem [shape: f32[1,160], index: 2, kind: input, shape index: {}]   ;;  %s310_s5 = inlined_call_operand.vmem [shape: f32[16,128], index: 5, kind: output, shape index: {0}]   ;;  %s311_s6 = inlined_call_operand.vmem [shape: f32[16,128], index: 6, kind: output, shape index: {1}]  }
   0x1   :  { %v33_v0 = vld [vmem:[%s305_s1 + $0x38] sm:$0xff]  ;;  %v31_v1 = vld [vmem:[%s305_s1 + $0x28] sm:$0xff]  ;;  %v191_v2 = vld [vmem:[%s306_s0] sm:$0xff]  }
   0x2   :  { %82 = vmatpush.msra.mxu1 %v33_v0  ;;  %v98_v3 = vld [vmem:[%s307_s3 + $0x18] sm:$0xff]  ;;  %v27_v5 = vld [vmem:[%s305_s1 + $0x8] sm:$0xff]  ;;  %v192_v6 = vunpack.c.l.bf16 %v191_v2  ;;  %v193_v7 = vunpack.c.h.bf16 %v191_v2  ;;  %v97_v8 = vld [vmem:[%s307_s3 + $0x10] sm:$0xff] }
   0x3   :  { %v29_v4 = vld [vmem:[%s305_s1 + $0x18] sm:$0xff]  ;;  %121 = vmatpush.msra.mxu2 %v98_v3  ;;  %v96_v9 = vld [vmem:[%s307_s3 + $0x8] sm:$0xff]  ;;  %v95_v10 = vld [vmem:[%s307_s3] sm:$0xff] }
   0x4   :  { %83 = vmatpush.msra.mxu1 %v31_v1  ;;  %v32_v11 = vld [vmem:[%s305_s1 + $0x30] sm:$0xff]  ;;  %v30_v12 = vld [vmem:[%s305_s1 + $0x20] sm:$0xff] }
   0x5   :  { %122 = vmatpush.msra.mxu2 %v97_v8  ;;  %194 = vmatpush.msra.mxu3 %v32_v11  ;;  %v28_v13 = vld [vmem:[%s305_s1 + $0x10] sm:$0xff]  ;;  %v26_v14 = vld [vmem:[%s305_s1] sm:$0xff] }
   0x6   :  { %84 = vmatpush.msra.mxu1 %v29_v4  ;;  %59 = vmatpush.msra.mxu0 %v32_v11  ;;  %v34_v15 = vld [vmem:[%s309_s2] sm:$0x3] }
   0x7   :  { %123 = vmatpush.msra.mxu2 %v96_v9  ;;  %195 = vmatpush.msra.mxu3 %v30_v12  ;;  %v37_v16 = vperm.slane %v34_v15, 1  ;;  %v198_v23 = vld [vmem:[%s308_s4] ss:$0 sm:$0xff]  ;;  %v36_v27 = vperm.slane %v34_v15, 0 }
   0x8   :  { %85 = vmatpush.msra.mxu1 %v27_v5  ;;  %60 = vmatpush.msra.mxu0 %v30_v12 }
   0x9   :  { %184 = vmatmul.msk.f32.vlgmr.msra.gmra.mxu1 %vm40_vm0, %v192_v6  ;;  %124 = vmatpush.msra.mxu2 %v95_v10 }
   0xa   :  { %196 = vmatpush.msra.mxu3 %v28_v13  ;;  %61 = vmatpush.msra.mxu0 %v28_v13 }
   0xc   :  { %197 = vmatpush.msra.mxu3 %v26_v14  ;;  %62 = vmatpush.msra.mxu0 %v26_v14 }
   0xd   :  { %183 = vmatmul.msk.f32.vlgmr.msra.gmra.mxu3 %vm40_vm0, %v193_v7  ;;  %182 = vmatmul.msk.f32.vlgmr.msra.gmra.mxu0 %vm40_vm0, %v192_v6 }
  0x11   :  { %185 = vmatmul.msk.f32.gmra.mxu1 %vm40_vm0, %v193_v7 }
  0x86   :  { %v87_v17 = vpop.f32.mrf.mxu1 }
  0x87   :  { %v88_v18 = vadd.f32 %v87_v17, %v37_v16 }
  0x89   :  { %v93_v19 = vmax.f32 %v88_v18, 0.0 }
  0x8a   :  { %v64_v28 = vpop.f32.mrf.mxu0 }
  0x8b   :  { %186 = vmatmul.msk.f32.vlgmr.msra.gmra.mxu2 %vm40_vm0, %v93_v19  ;;  %v65_v30 = vadd.f32 %v64_v28, %v36_v27 }
  0x8d   :  { %170 = vst [vmem:[%s310_s5] sm:$0xff] %v65_v30 }
  0x8e   :  { %v90_v20 = vpop.f32.mrf.mxu1 }
  0x8f   :  { %v91_v21 = vadd.f32 %v90_v20, %v37_v16 }
  0x90   :  { %v67_v29 = vpop.f32.mrf.mxu3 }
  0x91   :  { %v94_v22 = vmax.f32 %v91_v21, 0.0  ;;  %v68_v31 = vadd.f32 %v67_v29, %v36_v27 }
  0x93   :  { %187 = vmatmul.msk.f32.gmra.mxu2 %vm40_vm0, %v94_v22  ;;  %171 = vst [vmem:[%s310_s5 + $0x8] sm:$0xff] %v68_v31 }
 0x10e   :  { %v126_v24 = vpop.f32.mrf.mxu2 }
 0x10f   :  { %v127_v25 = vadd.f32 %v198_v23, %v126_v24 }
 0x111   :  { %v188_v26 = vmul.f32 -1.442695, %v127_v25 }
 0x113   :  { %199 = vpow2.f32 %v188_v26 }
 0x116   :  { %v129_v32 = vpop.f32.mrf.mxu2 }
 0x117   :  { %v130_v33 = vadd.f32 %v198_v23, %v129_v32 }
 0x119   :  { %v200_v34 = vpop.eup %199  ;;  %v189_v35 = vmul.f32 -1.442695, %v130_v33 }
 0x11a   :  { %v138_v36 = vadd.f32 1.0, %v200_v34 }
 0x11b   :  { %201 = vpow2.f32 %v189_v35 }
 0x11c   :  { %203 = vrcp.f32 %v138_v36  ;;  %v151_v42 = vand.u32 2147483648, %v138_v36  ;;  %v149_v44 = vand.u32 2147483647, %v138_v36  ;;  %vm145_vm2 = vweird.f32 %v138_v36 }
 0x11e   :  { %v152_v47 = vor.u32 1.1754944e-38, %v151_v42  ;;  %vm150_vm4 = vcmp.eq.f32.partialorder %v149_v44, 8.507059e+37 }
 0x121   :  { %v202_v37 = vpop.eup %201 }
 0x122   :  { %v204_v38 = vpop.eup %203  ;;  %v139_v39 = vadd.f32 1.0, %v202_v37 }
 0x123   :  { %v141_v40 = vmul.f32 %v204_v38, %v138_v36  ;;  %vm146_vm1 = vweird.f32 %v204_v38 }
 0x124   :  { %205 = vrcp.f32 %v139_v39  ;;  %vm147_vm3 = vmor %vm145_vm2, %vm146_vm1  ;;  %v166_v52 = vand.u32 2147483648, %v139_v39  ;;  %v164_v54 = vand.u32 2147483647, %v139_v39  ;;  %vm160_vm6 = vweird.f32 %v139_v39 }
 0x125   :  { %v142_v41 = vsub.f32 1.0, %v141_v40 }
 0x126   :  { %v167_v56 = vor.u32 1.1754944e-38, %v166_v52  ;;  %vm165_vm8 = vcmp.eq.f32.partialorder %v164_v54, 8.507059e+37 }
 0x127   :  { %v143_v43 = vmul.f32 %v204_v38, %v142_v41 }
 0x129   :  { %v144_v45 = vadd.f32 %v204_v38, %v143_v43 }
 0x12a   :  { %v206_v46 = vpop.eup %205 }
 0x12b   :  { %v148_v48 = vsel %vm147_vm3, %v204_v38, %v144_v45  ;;  %v156_v49 = vmul.f32 %v206_v46, %v139_v39  ;;  %vm161_vm5 = vweird.f32 %v206_v46 }
 0x12c   :  { %v153_v50 = vsel %vm150_vm4, %v152_v47, %v148_v48  ;;  %vm162_vm7 = vmor %vm160_vm6, %vm161_vm5 }
 0x12d   :  { %172 = vst [vmem:[%s311_s6] sm:$0xff] %v153_v50  ;;  %v157_v51 = vsub.f32 1.0, %v156_v49 }
 0x12f   :  { %v158_v53 = vmul.f32 %v206_v46, %v157_v51 }
 0x131   :  { %v159_v55 = vadd.f32 %v206_v46, %v158_v53 }
 0x133   :  { %v163_v57 = vsel %vm162_vm7, %v206_v46, %v159_v55 }
 0x134   :  { %v168_v58 = vsel %vm165_vm8, %v167_v56, %v163_v57 }
 0x135   :  { %173 = vst [vmem:[%s311_s6 + $0x8] sm:$0xff] %v168_v58 }

</bundles_post_ra>
